<compile_context>
chip_gen: v7x
topology: tpu7x:2x2x1
jax: 0.10.0
libtpu: 0.0.40
codegen_flags: <defaults>
</compile_context>

<pallas_src>
import numpy as np

import jax
import jax.numpy as jnp
from jax.experimental import pallas as pl
from jax.experimental.pallas import tpu as pltpu


# -----------------------------------------------------------------------------
# Fused whole-decoder kernel.
# -----------------------------------------------------------------------------
def _build_decoder_kernel(*, K, C, LANES, PAD, dilations, num_conv_blocks,
                          uniq_dils, compute_dtype):
    dil_idx = {d: i for i, d in enumerate(uniq_dils)}

    def kernel(x_ref, mask_ref, vmask_ref, w_ref, bn_ref, pw_ref, pb_ref,
               fw_ref, fb_ref, o_ref, pad_scr, res_scr):
        # Zero only the two 128-lane-aligned halo strips (the center region is
        # always overwritten below).  Done every grid step so it remains
        # correct when the "parallel" batch axis is split across TensorCores
        # (each core has its own scratch and may never see program_id == 0).
        zeros_pad = jnp.zeros((C, PAD), compute_dtype)
        pad_scr[:, :PAD] = zeros_pad
        pad_scr[:, PAD + LANES:2 * PAD + LANES] = zeros_pad

        # Per-dilation valid masks precomputed host-side; one (1, LANES)
        # compare per unique dilation per step.
        masks = {d: vmask_ref[i:i + 1, :] > 0.0 for d, i in dil_idx.items()}

        xm = mask_ref[0]                                   # (1, LANES) f32
        x0 = x_ref[0]                                      # (C, LANES) f32

        # Fused `o = x * x_mask` (first step of ResidualConv1dBNBlock).
        pad_scr[:, PAD:PAD + LANES] = (x0 * xm).astype(compute_dtype)

        def conv_bn(li, dil, add_residual):
            total = dil * (K - 1)
            pad_s = total // 2
            # Conv1d(dilation=dil) as K accumulating (C,C)x(C,LANES) MXU
            # contractions reading shifted taps directly from the padded
            # staging buffer (no stacked-operand materialization).
            acc = None
            for j in range(K):
                off = PAD - pad_s + j * dil
                p = jnp.dot(w_ref[li * K + j], pad_scr[:, off:off + LANES],
                            preferred_element_type=jnp.float32)
                acc = p if acc is None else acc + p
            col = 3 * li
            b = bn_ref[:, col:col + 1]            # (C, 1) f32
            sc = bn_ref[:, col + 1:col + 2]
            sh = bn_ref[:, col + 2:col + 3]
            # conv+bias -> zero at ZeroPad positions -> relu -> BN (eval, folded)
            y = jnp.where(masks[dil], jnp.maximum(acc + b, 0.0), 0.0) * sc + sh
            if add_residual:
                y = y + res_scr[...]
            pad_scr[:, PAD:PAD + LANES] = y.astype(compute_dtype)

        # --- ResidualConv1dBNBlock ---
        li = 0
        for dil in dilations:
            res_scr[...] = pad_scr[:, PAD:PAD + LANES].astype(jnp.float32)
            for j in range(num_conv_blocks):
                conv_bn(li, dil, add_residual=(j == num_conv_blocks - 1))
                li += 1

        # --- post_conv(o) + x  (original, unmasked x) ---
        cur = pad_scr[:, PAD:PAD + LANES]
        y = jnp.dot(pw_ref[...], cur, preferred_element_type=jnp.float32)
        pad_scr[:, PAD:PAD + LANES] = (y + pb_ref[...] + x0).astype(compute_dtype)

        # --- postnet: 2x Conv1dBN (dilation 1) ---
        for _ in range(2):
            conv_bn(li, 1, add_residual=False)
            li += 1

        # --- final 1x1 projection, then * x_mask ---
        cur = pad_scr[:, PAD:PAD + LANES]
        out = jnp.dot(fw_ref[...], cur, preferred_element_type=jnp.float32)
        o_ref[0] = (out + fb_ref[...]) * xm

    return kernel


# -----------------------------------------------------------------------------
# Heuristics (hoisted out of the forward path).
# -----------------------------------------------------------------------------
def default_compute_dtype():
    # v5e has no bf16 VPU and these matmuls are tiny (MXU has large slack),
    # so bf16 casts are pure extra VALU work there -> prefer f32 on v5e.
    try:
        kind = jax.devices()[0].device_kind.lower()
    except Exception:
        kind = ""
    if "v5 lite" in kind or "v5lite" in kind or "v5e" in kind:
        return jnp.float32
    return jnp.bfloat16


def _choose_group(B, T):
    """How many batches to fold into the lane axis.

    Priorities: (1) >=128 lanes per step (unmasked stores), (2) >=512 lanes
    to amortize per-grid-step overhead, (3) >=2 grid steps so the "parallel"
    batch axis can use both TensorCores (v7x), (4) no pure-padding groups.
    """
    if T >= 512:
        return 1                                  # already lane-dense
    g_wide = -(-512 // T)
    g_min = -(-128 // T)
    if B >= 2 * g_wide:
        return g_wide                             # wide lanes AND >=2 steps
    if B >= 2 * g_min:
        return max(g_min, B // 2)                 # keep >=2 steps, widen lanes
    return min(g_wide, max(g_min, B))             # tiny batch: just widen lanes


# -----------------------------------------------------------------------------
# One-time parameter packing (hoisted out of the forward path).
# -----------------------------------------------------------------------------
def pack_decoder_params(p, compute_dtype=None):
    if compute_dtype is None:
        compute_dtype = default_compute_dtype()

    conv_layers = []
    for blk in p["res_blocks"]:
        conv_layers.extend(blk["convs"])
    conv_layers.extend(p["postnet_convs"])

    shapes = {tuple(c["w"].shape) for c in conv_layers}
    assert len(shapes) == 1, "fused kernel assumes identical conv layer shapes"
    C_out, C_in, K = conv_layers[0]["w"].shape
    assert C_out == C_in, "decoder requires in_channels == hidden_channels"

    # (C_out, C_in, K) -> (K, C_out, C_in) per layer, flattened to (L*K, C, C)
    # so each tap weight is one full-extent (C, C) tile (no lane slicing).
    w_all = jnp.stack([jnp.transpose(c["w"], (2, 0, 1)) for c in conv_layers],
                      axis=0)                                   # (L, K, C, C)
    L = w_all.shape[0]
    w_all = w_all.reshape(L * K, C_out, C_in).astype(compute_dtype)

    bn_cols = []
    for c in conv_layers:
        bn_cols.extend([c["b"], c["scale"], c["shift"]])
    bn_all = jnp.stack(bn_cols, axis=1).astype(jnp.float32)     # (C, 3*L)

    packed = dict(
        w_all=w_all, bn_all=bn_all,
        post_w=p["post_w"].astype(compute_dtype),
        post_b=p["post_b"].reshape(-1, 1).astype(jnp.float32),
        final_w=p["final_w"].astype(compute_dtype),
        final_b=p["final_b"].reshape(-1, 1).astype(jnp.float32),
    )
    meta = dict(
        K=int(K),
        dilations=[int(blk["dilation"]) for blk in p["res_blocks"]],
        num_conv_blocks=len(p["res_blocks"][0]["convs"]),
        num_layers=int(L),
        C_hid=int(C_out),
        C_out=int(p["final_w"].shape[0]),
        compute_dtype=compute_dtype,
    )
    return packed, meta


# -----------------------------------------------------------------------------
# Forward pass: one pallas_call for the whole decoder.
# -----------------------------------------------------------------------------
def decoder_forward_pallas(x, x_mask, packed, meta):
    B, C_in, T = x.shape
    C_hid, C_out, K = meta["C_hid"], meta["C_out"], meta["K"]
    L = meta["num_layers"]
    compute_dtype = meta["compute_dtype"]
    assert C_in == C_hid
    assert x_mask.shape == (B, 1, T)
    assert packed["w_all"].shape == (L * K, C_hid, C_hid)

    dils = list(meta["dilations"]) + [1, 1]
    assert T - max(d * (K - 1) for d in dils) > 0, "sequence too short"

    # Halo width, rounded up to 128 so the working region is lane-aligned.
    pad_raw = max((d * (K - 1)) - (d * (K - 1)) // 2 for d in dils)
    PAD = max(128, -(-pad_raw // 128) * 128)

    # Fold G batches into the lane axis (see _choose_group priorities).
    G = _choose_group(B, T)
    Bp = -(-B // G) * G
    if Bp != B:                                 # pad batch to a multiple of G
        pb = Bp - B
        x = jnp.concatenate([x, jnp.zeros((pb, C_in, T), x.dtype)], axis=0)
        x_mask = jnp.concatenate(
            [x_mask, jnp.zeros((pb, 1, T), x_mask.dtype)], axis=0)
    NG = Bp // G
    LANES = G * T

    if G == 1:
        x_g, m_g = x, x_mask                    # skip the fold/unfold passes
    else:
        x_g = x.reshape(NG, G, C_in, T).transpose(0, 2, 1, 3).reshape(NG, C_in, LANES)
        m_g = x_mask.reshape(NG, G, 1, T).transpose(0, 2, 1, 3).reshape(NG, 1, LANES)

    # Host-precomputed per-dilation valid masks (positions NOT produced by the
    # ZeroPad zeros), one row per unique dilation.
    uniq_dils = sorted(set(dils))
    lane_pos = np.arange(LANES) % T
    rows = []
    for d in uniq_dils:
        total = d * (K - 1)
        ps, pe = total // 2, total - total // 2
        rows.append(((lane_pos >= ps) & (lane_pos < T - pe)).astype(np.float32))
    vmask = jnp.asarray(np.stack(rows, axis=0))        # (ND, LANES) f32
    ND = vmask.shape[0]

    kernel = _build_decoder_kernel(
        K=K, C=C_hid, LANES=LANES, PAD=PAD,
        dilations=meta["dilations"], num_conv_blocks=meta["num_conv_blocks"],
        uniq_dils=uniq_dils, compute_dtype=compute_dtype)

    # VMEM budget (v7x has 64 MiB physical / 32 MiB default scoped limit).
    elt = jnp.dtype(compute_dtype).itemsize
    weight_bytes = sum(int(np.prod(packed[k].shape)) * packed[k].dtype.itemsize
                       for k in ("w_all", "bn_all", "post_w", "post_b",
                                 "final_w", "final_b"))
    vmem_est = (2 * (C_hid + 1 + C_out) * LANES * 4       # dbl-buffered x/mask/out
                + 2 * ND * LANES * 4                      # mask table
                + 2 * weight_bytes                        # dbl-buffered weights
                + C_hid * (LANES + 2 * PAD) * elt         # pad_scr
                + C_hid * LANES * 4)                      # res_scr
    compiler_kwargs = dict(dimension_semantics=("parallel",))
    if vmem_est > (24 << 20):
        compiler_kwargs["vmem_limit_bytes"] = int(min(64 << 20, 2 * vmem_est))

    out_g = pl.pallas_call(
        kernel,
        out_shape=jax.ShapeDtypeStruct((NG, C_out, LANES), jnp.float32),
        grid=(NG,),
        in_specs=[
            pl.BlockSpec((1, C_in, LANES), lambda g: (g, 0, 0)),        # x
            pl.BlockSpec((1, 1, LANES), lambda g: (g, 0, 0)),           # mask
            pl.BlockSpec((ND, LANES), lambda g: (0, 0)),                # valid masks
            pl.BlockSpec((L * K, C_hid, C_hid), lambda g: (0, 0, 0)),   # conv W (per tap)
            pl.BlockSpec((C_hid, 3 * L), lambda g: (0, 0)),             # b/scale/shift
            pl.BlockSpec((C_hid, C_hid), lambda g: (0, 0)),             # post_w
            pl.BlockSpec((C_hid, 1), lambda g: (0, 0)),                 # post_b
            pl.BlockSpec((C_out, C_hid), lambda g: (0, 0)),             # final_w
            pl.BlockSpec((C_out, 1), lambda g: (0, 0)),                 # final_b
        ],
        out_specs=pl.BlockSpec((1, C_out, LANES), lambda g: (g, 0, 0)),
        scratch_shapes=[
            pltpu.VMEM((C_hid, LANES + 2 * PAD), compute_dtype),  # padded activation
            pltpu.VMEM((C_hid, LANES), jnp.float32),              # block residual
        ],
        compiler_params=pltpu.CompilerParams(**compiler_kwargs),
    )(x_g, m_g, vmask, packed["w_all"], packed["bn_all"],
      packed["post_w"], packed["post_b"], packed["final_w"], packed["final_b"])

    if G == 1:
        return out_g[:B]
    out = out_g.reshape(NG, C_out, G, T).transpose(0, 2, 1, 3).reshape(Bp, C_out, T)
    return out[:B]


# -----------------------------------------------------------------------------
# Deterministic parameter construction (mirrors module __init__ shapes).
# -----------------------------------------------------------------------------
def init_decoder_params(key, in_ch, out_ch, hid, params):
    k = params["kernel_size"]
    dilations = params["dilations"]
    ncb = params["num_conv_blocks"]
    keys = iter(jax.random.split(key, 4096))
    eps = 1e-5

    def conv_bn_params(cin, cout, ksize):
        w = jax.random.normal(next(keys), (cout, cin, ksize), jnp.float32)
        w = w / jnp.sqrt(float(cin * ksize))
        b = 0.1 * jax.random.normal(next(keys), (cout,), jnp.float32)
        gamma = jax.random.uniform(next(keys), (cout,), jnp.float32, 0.8, 1.2)
        beta = 0.05 * jax.random.normal(next(keys), (cout,), jnp.float32)
        rmean = 0.05 * jax.random.normal(next(keys), (cout,), jnp.float32)
        rvar = jax.random.uniform(next(keys), (cout,), jnp.float32, 0.5, 1.5)
        scale = gamma / jnp.sqrt(rvar + eps)
        shift = beta - rmean * scale
        return {"w": w, "b": b, "scale": scale, "shift": shift}

    res_blocks = []
    for idx, dil in enumerate(dilations):
        cin_block = in_ch if idx == 0 else hid
        convs = []
        for j in range(ncb):
            ci = cin_block if j == 0 else hid
            convs.append(conv_bn_params(ci, hid, k))
        res_blocks.append({"dilation": dil, "convs": convs})

    post_w = jax.random.normal(next(keys), (hid, hid), jnp.float32) / jnp.sqrt(float(hid))
    post_b = 0.1 * jax.random.normal(next(keys), (hid,), jnp.float32)
    postnet_convs = [conv_bn_params(hid, hid, k) for _ in range(2)]
    final_w = jax.random.normal(next(keys), (out_ch, hid), jnp.float32) / jnp.sqrt(float(hid))
    final_b = 0.1 * jax.random.normal(next(keys), (out_ch,), jnp.float32)

    return dict(res_blocks=res_blocks, post_w=post_w, post_b=post_b,
                postnet_convs=postnet_convs, final_w=final_w, final_b=final_b)


# -----------------------------------------------------------------------------
# Pure-JAX reference (mirrors PyTorch op order) for correctness checks.
# -----------------------------------------------------------------------------
def ref_conv1d_bn(x, w, b, scale, shift, dil, residual=None):
    K = w.shape[2]
    total_pad = dil * (K - 1)
    pad_s = total_pad // 2
    pad_e = total_pad - pad_s
    y = jax.lax.conv_general_dilated(
        x, w, window_strides=(1,), padding="VALID", rhs_dilation=(dil,),
        dimension_numbers=("NCH", "OIH", "NCH"))
    y = y + b[None, :, None]
    y = jnp.pad(y, ((0, 0), (0, 0), (pad_s, pad_e)))       # ZeroPad after conv
    y = jnp.maximum(y, 0.0)
    y = y * scale[None, :, None] + shift[None, :, None]
    if residual is not None:
        y = y + residual
    return y


def ref_pointwise(x, w, b, extra, mode):
    y = jnp.einsum("oi,bit->bot", w, x) + b[None, :, None]
    return y + extra if mode == "add" else y * extra


def decoder_forward_ref(x, x_mask, p):
    o = x * x_mask
    for blk in p["res_blocks"]:
        res = o
        convs = blk["convs"]
        for j, c in enumerate(convs):
            residual = res if j == len(convs) - 1 else None
            o = ref_conv1d_bn(o, c["w"], c["b"], c["scale"], c["shift"],
                              blk["dilation"], residual=residual)
    o = ref_pointwise(o, p["post_w"], p["post_b"], x, "add")
    for c in p["postnet_convs"]:
        o = ref_conv1d_bn(o, c["w"], c["b"], c["scale"], c["shift"], 1)
    o = ref_pointwise(o, p["final_w"], p["final_b"], x_mask, "mask")
    return o


# -----------------------------------------------------------------------------
if __name__ == "__main__":
    key = jax.random.PRNGKey(0)
    B, T = 4, 64
    in_ch = hid = 32        # decoder requires in_channels == hidden_channels
    out_ch = 16
    params = {"kernel_size": 4, "dilations": [1, 2, 4, 8, 1], "num_conv_blocks": 2}

    kx, kp = jax.random.split(key)
    x = jax.random.normal(kx, (B, in_ch, T), jnp.float32)
    lengths = jnp.array([T, 48, 57, 32], jnp.int32)
    x_mask = (jnp.arange(T)[None, None, :] < lengths[:, None, None]).astype(jnp.float32)

    raw = init_decoder_params(kp, in_ch, out_ch, hid, params)
    ref = decoder_forward_ref(x, x_mask, raw)

    # f32 compute path: tight structural check against the PyTorch-semantics ref.
    packed32, meta32 = pack_decoder_params(raw, compute_dtype=jnp.float32)
    out_f32 = jax.block_until_ready(decoder_forward_pallas(x, x_mask, packed32, meta32))
    np.testing.assert_allclose(np.asarray(out_f32), np.asarray(ref),
                               rtol=2e-3, atol=2e-3)

    # Default compute dtype (bf16 on v6e/v7x, f32 on v5e): bf16 MXU operands,
    # bf16-stored activations, f32 accumulation / BN / residual math.  Looser
    # tolerance appropriate for 12 chained bf16 contractions + bf16 storage.
    packeddf, metadf = pack_decoder_params(raw, compute_dtype=default_compute_dtype())
    out_df = jax.block_until_ready(decoder_forward_pallas(x, x_mask, packeddf, metadf))
    np.testing.assert_allclose(np.asarray(out_df), np.asarray(ref),
                               rtol=1.5e-1, atol=1.5e-1)

    assert out_f32.shape == (B, out_ch, T)
    print("KERNEL_OK")
</pallas_src>

<mosaic_0001>
module attributes {stable_mosaic.version = 11 : i64} {
  func.func @kernel(%arg0: i32, %arg1: memref<1x32x128xf32, #tpu.memory_space<vmem>>, %arg2: memref<1x1x128xf32, #tpu.memory_space<vmem>>, %arg3: memref<4x128xf32, #tpu.memory_space<vmem>>, %arg4: memref<48x32x32xf32, #tpu.memory_space<vmem>>, %arg5: memref<32x36xf32, #tpu.memory_space<vmem>>, %arg6: memref<32x32xf32, #tpu.memory_space<vmem>>, %arg7: memref<32x1xf32, #tpu.memory_space<vmem>>, %arg8: memref<16x32xf32, #tpu.memory_space<vmem>>, %arg9: memref<16x1xf32, #tpu.memory_space<vmem>>, %arg10: memref<1x16x128xf32, #tpu.memory_space<vmem>>, %arg11: memref<32x384xf32, #tpu.memory_space<vmem>>, %arg12: memref<32x128xf32, #tpu.memory_space<vmem>>) attributes {dimension_semantics = [#tpu.dimension_semantics<parallel>], iteration_bounds = array<i64: 2>, scalar_prefetch = 0 : i64, scratch_operands = 2 : i64, tpu.core_type = #tpu.core_type<tc>, window_params = [{transform_indices = @transform_0, window_bounds = array<i64: 1, 32, 128>}, {transform_indices = @transform_1, window_bounds = array<i64: 1, 1, 128>}, {pipeline_mode = #tpu.pipeline_mode<synchronous>, transform_indices = @transform_2, window_bounds = array<i64: 4, 128>}, {pipeline_mode = #tpu.pipeline_mode<synchronous>, transform_indices = @transform_3, window_bounds = array<i64: 48, 32, 32>}, {pipeline_mode = #tpu.pipeline_mode<synchronous>, transform_indices = @transform_4, window_bounds = array<i64: 32, 36>}, {pipeline_mode = #tpu.pipeline_mode<synchronous>, transform_indices = @transform_5, window_bounds = array<i64: 32, 32>}, {pipeline_mode = #tpu.pipeline_mode<synchronous>, transform_indices = @transform_6, window_bounds = array<i64: 32, 1>}, {pipeline_mode = #tpu.pipeline_mode<synchronous>, transform_indices = @transform_7, window_bounds = array<i64: 16, 32>}, {pipeline_mode = #tpu.pipeline_mode<synchronous>, transform_indices = @transform_8, window_bounds = array<i64: 16, 1>}, {transform_indices = @transform_9, window_bounds = array<i64: 1, 16, 128>}]} {
    %cst = arith.constant 0.000000e+00 : f32
    %0 = vector.broadcast %cst : f32 to vector<32x128xf32>
    %c0 = arith.constant 0 : index
    %c0_0 = arith.constant 0 : index
    %1 = vector.load %arg11[%c0, %c0_0] : memref<32x384xf32, #tpu.memory_space<vmem>>, vector<32x128xf32>
    tpu.vector_store %arg11[%c0, %c0_0], %0 {strides = array<i32>} : memref<32x384xf32, #tpu.memory_space<vmem>>, vector<32x128xf32>,
    %c0_1 = arith.constant 0 : index
    %c256 = arith.constant 256 : index
    %2 = vector.load %arg11[%c0_1, %c256] : memref<32x384xf32, #tpu.memory_space<vmem>>, vector<32x128xf32>
    tpu.vector_store %arg11[%c0_1, %c256], %0 {strides = array<i32>} : memref<32x384xf32, #tpu.memory_space<vmem>>, vector<32x128xf32>,
    %c0_2 = arith.constant 0 : index
    %c0_3 = arith.constant 0 : index
    %3 = vector.load %arg3[%c0_2, %c0_3] : memref<4x128xf32, #tpu.memory_space<vmem>>, vector<1x128xf32>
    %cst_4 = arith.constant 0.000000e+00 : f32
    %4 = vector.broadcast %cst_4 : f32 to vector<1x128xf32>
    %5 = arith.cmpf ogt, %3, %4 : vector<1x128xf32>
    %c1 = arith.constant 1 : index
    %c0_5 = arith.constant 0 : index
    %6 = vector.load %arg3[%c1, %c0_5] : memref<4x128xf32, #tpu.memory_space<vmem>>, vector<1x128xf32>
    %cst_6 = arith.constant 0.000000e+00 : f32
    %7 = vector.broadcast %cst_6 : f32 to vector<1x128xf32>
    %8 = arith.cmpf ogt, %6, %7 : vector<1x128xf32>
    %c2 = arith.constant 2 : index
    %c0_7 = arith.constant 0 : index
    %9 = vector.load %arg3[%c2, %c0_7] : memref<4x128xf32, #tpu.memory_space<vmem>>, vector<1x128xf32>
    %cst_8 = arith.constant 0.000000e+00 : f32
    %10 = vector.broadcast %cst_8 : f32 to vector<1x128xf32>
    %11 = arith.cmpf ogt, %9, %10 : vector<1x128xf32>
    %c3 = arith.constant 3 : index
    %c0_9 = arith.constant 0 : index
    %12 = vector.load %arg3[%c3, %c0_9] : memref<4x128xf32, #tpu.memory_space<vmem>>, vector<1x128xf32>
    %cst_10 = arith.constant 0.000000e+00 : f32
    %13 = vector.broadcast %cst_10 : f32 to vector<1x128xf32>
    %14 = arith.cmpf ogt, %12, %13 : vector<1x128xf32>
    %c0_11 = arith.constant 0 : index
    %c0_12 = arith.constant 0 : index
    %c0_13 = arith.constant 0 : index
    %15 = vector.load %arg2[%c0_11, %c0_12, %c0_13] : memref<1x1x128xf32, #tpu.memory_space<vmem>>, vector<1x1x128xf32>
    %16 = vector.shape_cast %15 : vector<1x1x128xf32> to vector<1x128xf32>
    %c0_14 = arith.constant 0 : index
    %c0_15 = arith.constant 0 : index
    %c0_16 = arith.constant 0 : index
    %17 = vector.load %arg1[%c0_14, %c0_15, %c0_16] : memref<1x32x128xf32, #tpu.memory_space<vmem>>, vector<1x32x128xf32>
    %18 = vector.shape_cast %17 : vector<1x32x128xf32> to vector<32x128xf32>
    %19 = vector.broadcast %16 : vector<1x128xf32> to vector<32x128xf32>
    %20 = arith.mulf %18, %19 : vector<32x128xf32>
    %c0_17 = arith.constant 0 : index
    %c128 = arith.constant 128 : index
    %21 = vector.load %arg11[%c0_17, %c128] : memref<32x384xf32, #tpu.memory_space<vmem>>, vector<32x128xf32>
    tpu.vector_store %arg11[%c0_17, %c128], %20 {strides = array<i32>} : memref<32x384xf32, #tpu.memory_space<vmem>>, vector<32x128xf32>,
    %c0_18 = arith.constant 0 : index
    %c128_19 = arith.constant 128 : index
    %22 = vector.load %arg11[%c0_18, %c128_19] : memref<32x384xf32, #tpu.memory_space<vmem>>, vector<32x128xf32>
    %c0_20 = arith.constant 0 : index
    %c0_21 = arith.constant 0 : index
    %23 = vector.load %arg12[%c0_20, %c0_21] : memref<32x128xf32, #tpu.memory_space<vmem>>, vector<32x128xf32>
    tpu.vector_store %arg12[%c0_20, %c0_21], %22 {strides = array<i32>} : memref<32x128xf32, #tpu.memory_space<vmem>>, vector<32x128xf32>,
    %c0_22 = arith.constant 0 : index
    %c0_23 = arith.constant 0 : index
    %c0_24 = arith.constant 0 : index
    %24 = vector.load %arg4[%c0_22, %c0_23, %c0_24] : memref<48x32x32xf32, #tpu.memory_space<vmem>>, vector<1x32x32xf32>
    %25 = vector.shape_cast %24 : vector<1x32x32xf32> to vector<32x32xf32>
    %c0_25 = arith.constant 0 : index
    %c127 = arith.constant 127 : index
    %26 = vector.load %arg11[%c0_25, %c127] : memref<32x384xf32, #tpu.memory_space<vmem>>, vector<32x128xf32>
    %cst_26 = arith.constant dense<0.000000e+00> : vector<32x128xf32>
    %27 = tpu.matmul %25, %26, %cst_26 {dimension_numbers = #tpu.dot_dimension_numbers<[1], [0], [0], [1], [0, 0, 1, 1], [], []>} : vector<32x32xf32>, vector<32x128xf32>, vector<32x128xf32> -> vector<32x128xf32>
    %c1_27 = arith.constant 1 : index
    %c0_28 = arith.constant 0 : index
    %c0_29 = arith.constant 0 : index
    %28 = vector.load %arg4[%c1_27, %c0_28, %c0_29] : memref<48x32x32xf32, #tpu.memory_space<vmem>>, vector<1x32x32xf32>
    %29 = vector.shape_cast %28 : vector<1x32x32xf32> to vector<32x32xf32>
    %c0_30 = arith.constant 0 : index
    %c128_31 = arith.constant 128 : index
    %30 = vector.load %arg11[%c0_30, %c128_31] : memref<32x384xf32, #tpu.memory_space<vmem>>, vector<32x128xf32>
    %cst_32 = arith.constant dense<0.000000e+00> : vector<32x128xf32>
    %31 = tpu.matmul %29, %30, %cst_32 {dimension_numbers = #tpu.dot_dimension_numbers<[1], [0], [0], [1], [0, 0, 1, 1], [], []>} : vector<32x32xf32>, vector<32x128xf32>, vector<32x128xf32> -> vector<32x128xf32>
    %32 = arith.addf %27, %31 : vector<32x128xf32>
    %c2_33 = arith.constant 2 : index
    %c0_34 = arith.constant 0 : index
    %c0_35 = arith.constant 0 : index
    %33 = vector.load %arg4[%c2_33, %c0_34, %c0_35] : memref<48x32x32xf32, #tpu.memory_space<vmem>>, vector<1x32x32xf32>
    %34 = vector.shape_cast %33 : vector<1x32x32xf32> to vector<32x32xf32>
    %c0_36 = arith.constant 0 : index
    %c129 = arith.constant 129 : index
    %35 = vector.load %arg11[%c0_36, %c129] : memref<32x384xf32, #tpu.memory_space<vmem>>, vector<32x128xf32>
    %cst_37 = arith.constant dense<0.000000e+00> : vector<32x128xf32>
    %36 = tpu.matmul %34, %35, %cst_37 {dimension_numbers = #tpu.dot_dimension_numbers<[1], [0], [0], [1], [0, 0, 1, 1], [], []>} : vector<32x32xf32>, vector<32x128xf32>, vector<32x128xf32> -> vector<32x128xf32>
    %37 = arith.addf %32, %36 : vector<32x128xf32>
    %c3_38 = arith.constant 3 : index
    %c0_39 = arith.constant 0 : index
    %c0_40 = arith.constant 0 : index
    %38 = vector.load %arg4[%c3_38, %c0_39, %c0_40] : memref<48x32x32xf32, #tpu.memory_space<vmem>>, vector<1x32x32xf32>
    %39 = vector.shape_cast %38 : vector<1x32x32xf32> to vector<32x32xf32>
    %c0_41 = arith.constant 0 : index
    %c130 = arith.constant 130 : index
    %40 = vector.load %arg11[%c0_41, %c130] : memref<32x384xf32, #tpu.memory_space<vmem>>, vector<32x128xf32>
    %cst_42 = arith.constant dense<0.000000e+00> : vector<32x128xf32>
    %41 = tpu.matmul %39, %40, %cst_42 {dimension_numbers = #tpu.dot_dimension_numbers<[1], [0], [0], [1], [0, 0, 1, 1], [], []>} : vector<32x32xf32>, vector<32x128xf32>, vector<32x128xf32> -> vector<32x128xf32>
    %42 = arith.addf %37, %41 : vector<32x128xf32>
    %c0_43 = arith.constant 0 : index
    %c0_44 = arith.constant 0 : index
    %43 = vector.load %arg5[%c0_43, %c0_44] : memref<32x36xf32, #tpu.memory_space<vmem>>, vector<32x1xf32>
    %c0_45 = arith.constant 0 : index
    %c1_46 = arith.constant 1 : index
    %44 = vector.load %arg5[%c0_45, %c1_46] : memref<32x36xf32, #tpu.memory_space<vmem>>, vector<32x1xf32>
    %c0_47 = arith.constant 0 : index
    %c2_48 = arith.constant 2 : index
    %45 = vector.load %arg5[%c0_47, %c2_48] : memref<32x36xf32, #tpu.memory_space<vmem>>, vector<32x1xf32>
    %46 = vector.broadcast %43 : vector<32x1xf32> to vector<32x128xf32>
    %47 = arith.addf %42, %46 : vector<32x128xf32>
    %cst_49 = arith.constant 0.000000e+00 : f32
    %48 = vector.broadcast %cst_49 : f32 to vector<32x128xf32>
    %49 = arith.maximumf %47, %48 : vector<32x128xf32>
    %cst_50 = arith.constant 0.000000e+00 : f32
    %50 = vector.shape_cast %5 : vector<1x128xi1> to vector<1x128xi1>
    %51 = vector.broadcast %50 : vector<1x128xi1> to vector<32x128xi1>
    %52 = vector.broadcast %cst_50 : f32 to vector<32x128xf32>
    %53 = arith.select %51, %49, %52 : vector<32x128xi1>, vector<32x128xf32>
    %54 = vector.broadcast %44 : vector<32x1xf32> to vector<32x128xf32>
    %55 = arith.mulf %53, %54 : vector<32x128xf32>
    %56 = vector.broadcast %45 : vector<32x1xf32> to vector<32x128xf32>
    %57 = arith.addf %55, %56 : vector<32x128xf32>
    %c0_51 = arith.constant 0 : index
    %c128_52 = arith.constant 128 : index
    %58 = vector.load %arg11[%c0_51, %c128_52] : memref<32x384xf32, #tpu.memory_space<vmem>>, vector<32x128xf32>
    tpu.vector_store %arg11[%c0_51, %c128_52], %57 {strides = array<i32>} : memref<32x384xf32, #tpu.memory_space<vmem>>, vector<32x128xf32>,
    %c4 = arith.constant 4 : index
    %c0_53 = arith.constant 0 : index
    %c0_54 = arith.constant 0 : index
    %59 = vector.load %arg4[%c4, %c0_53, %c0_54] : memref<48x32x32xf32, #tpu.memory_space<vmem>>, vector<1x32x32xf32>
    %60 = vector.shape_cast %59 : vector<1x32x32xf32> to vector<32x32xf32>
    %c0_55 = arith.constant 0 : index
    %c127_56 = arith.constant 127 : index
    %61 = vector.load %arg11[%c0_55, %c127_56] : memref<32x384xf32, #tpu.memory_space<vmem>>, vector<32x128xf32>
    %cst_57 = arith.constant dense<0.000000e+00> : vector<32x128xf32>
    %62 = tpu.matmul %60, %61, %cst_57 {dimension_numbers = #tpu.dot_dimension_numbers<[1], [0], [0], [1], [0, 0, 1, 1], [], []>} : vector<32x32xf32>, vector<32x128xf32>, vector<32x128xf32> -> vector<32x128xf32>
    %c5 = arith.constant 5 : index
    %c0_58 = arith.constant 0 : index
    %c0_59 = arith.constant 0 : index
    %63 = vector.load %arg4[%c5, %c0_58, %c0_59] : memref<48x32x32xf32, #tpu.memory_space<vmem>>, vector<1x32x32xf32>
    %64 = vector.shape_cast %63 : vector<1x32x32xf32> to vector<32x32xf32>
    %c0_60 = arith.constant 0 : index
    %c128_61 = arith.constant 128 : index
    %65 = vector.load %arg11[%c0_60, %c128_61] : memref<32x384xf32, #tpu.memory_space<vmem>>, vector<32x128xf32>
    %cst_62 = arith.constant dense<0.000000e+00> : vector<32x128xf32>
    %66 = tpu.matmul %64, %65, %cst_62 {dimension_numbers = #tpu.dot_dimension_numbers<[1], [0], [0], [1], [0, 0, 1, 1], [], []>} : vector<32x32xf32>, vector<32x128xf32>, vector<32x128xf32> -> vector<32x128xf32>
    %67 = arith.addf %62, %66 : vector<32x128xf32>
    %c6 = arith.constant 6 : index
    %c0_63 = arith.constant 0 : index
    %c0_64 = arith.constant 0 : index
    %68 = vector.load %arg4[%c6, %c0_63, %c0_64] : memref<48x32x32xf32, #tpu.memory_space<vmem>>, vector<1x32x32xf32>
    %69 = vector.shape_cast %68 : vector<1x32x32xf32> to vector<32x32xf32>
    %c0_65 = arith.constant 0 : index
    %c129_66 = arith.constant 129 : index
    %70 = vector.load %arg11[%c0_65, %c129_66] : memref<32x384xf32, #tpu.memory_space<vmem>>, vector<32x128xf32>
    %cst_67 = arith.constant dense<0.000000e+00> : vector<32x128xf32>
    %71 = tpu.matmul %69, %70, %cst_67 {dimension_numbers = #tpu.dot_dimension_numbers<[1], [0], [0], [1], [0, 0, 1, 1], [], []>} : vector<32x32xf32>, vector<32x128xf32>, vector<32x128xf32> -> vector<32x128xf32>
    %72 = arith.addf %67, %71 : vector<32x128xf32>
    %c7 = arith.constant 7 : index
    %c0_68 = arith.constant 0 : index
    %c0_69 = arith.constant 0 : index
    %73 = vector.load %arg4[%c7, %c0_68, %c0_69] : memref<48x32x32xf32, #tpu.memory_space<vmem>>, vector<1x32x32xf32>
    %74 = vector.shape_cast %73 : vector<1x32x32xf32> to vector<32x32xf32>
    %c0_70 = arith.constant 0 : index
    %c130_71 = arith.constant 130 : index
    %75 = vector.load %arg11[%c0_70, %c130_71] : memref<32x384xf32, #tpu.memory_space<vmem>>, vector<32x128xf32>
    %cst_72 = arith.constant dense<0.000000e+00> : vector<32x128xf32>
    %76 = tpu.matmul %74, %75, %cst_72 {dimension_numbers = #tpu.dot_dimension_numbers<[1], [0], [0], [1], [0, 0, 1, 1], [], []>} : vector<32x32xf32>, vector<32x128xf32>, vector<32x128xf32> -> vector<32x128xf32>
    %77 = arith.addf %72, %76 : vector<32x128xf32>
    %c0_73 = arith.constant 0 : index
    %c3_74 = arith.constant 3 : index
    %78 = vector.load %arg5[%c0_73, %c3_74] : memref<32x36xf32, #tpu.memory_space<vmem>>, vector<32x1xf32>
    %c0_75 = arith.constant 0 : index
    %c4_76 = arith.constant 4 : index
    %79 = vector.load %arg5[%c0_75, %c4_76] : memref<32x36xf32, #tpu.memory_space<vmem>>, vector<32x1xf32>
    %c0_77 = arith.constant 0 : index
    %c5_78 = arith.constant 5 : index
    %80 = vector.load %arg5[%c0_77, %c5_78] : memref<32x36xf32, #tpu.memory_space<vmem>>, vector<32x1xf32>
    %81 = vector.broadcast %78 : vector<32x1xf32> to vector<32x128xf32>
    %82 = arith.addf %77, %81 : vector<32x128xf32>
    %cst_79 = arith.constant 0.000000e+00 : f32
    %83 = vector.broadcast %cst_79 : f32 to vector<32x128xf32>
    %84 = arith.maximumf %82, %83 : vector<32x128xf32>
    %cst_80 = arith.constant 0.000000e+00 : f32
    %85 = vector.shape_cast %5 : vector<1x128xi1> to vector<1x128xi1>
    %86 = vector.broadcast %85 : vector<1x128xi1> to vector<32x128xi1>
    %87 = vector.broadcast %cst_80 : f32 to vector<32x128xf32>
    %88 = arith.select %86, %84, %87 : vector<32x128xi1>, vector<32x128xf32>
    %89 = vector.broadcast %79 : vector<32x1xf32> to vector<32x128xf32>
    %90 = arith.mulf %88, %89 : vector<32x128xf32>
    %91 = vector.broadcast %80 : vector<32x1xf32> to vector<32x128xf32>
    %92 = arith.addf %90, %91 : vector<32x128xf32>
    %c0_81 = arith.constant 0 : index
    %c0_82 = arith.constant 0 : index
    %93 = vector.load %arg12[%c0_81, %c0_82] : memref<32x128xf32, #tpu.memory_space<vmem>>, vector<32x128xf32>
    %94 = arith.addf %92, %93 : vector<32x128xf32>
    %c0_83 = arith.constant 0 : index
    %c128_84 = arith.constant 128 : index
    %95 = vector.load %arg11[%c0_83, %c128_84] : memref<32x384xf32, #tpu.memory_space<vmem>>, vector<32x128xf32>
    tpu.vector_store %arg11[%c0_83, %c128_84], %94 {strides = array<i32>} : memref<32x384xf32, #tpu.memory_space<vmem>>, vector<32x128xf32>,
    %c0_85 = arith.constant 0 : index
    %c128_86 = arith.constant 128 : index
    %96 = vector.load %arg11[%c0_85, %c128_86] : memref<32x384xf32, #tpu.memory_space<vmem>>, vector<32x128xf32>
    %c0_87 = arith.constant 0 : index
    %c0_88 = arith.constant 0 : index
    %97 = vector.load %arg12[%c0_87, %c0_88] : memref<32x128xf32, #tpu.memory_space<vmem>>, vector<32x128xf32>
    tpu.vector_store %arg12[%c0_87, %c0_88], %96 {strides = array<i32>} : memref<32x128xf32, #tpu.memory_space<vmem>>, vector<32x128xf32>,
    %c8 = arith.constant 8 : index
    %c0_89 = arith.constant 0 : index
    %c0_90 = arith.constant 0 : index
    %98 = vector.load %arg4[%c8, %c0_89, %c0_90] : memref<48x32x32xf32, #tpu.memory_space<vmem>>, vector<1x32x32xf32>
    %99 = vector.shape_cast %98 : vector<1x32x32xf32> to vector<32x32xf32>
    %c0_91 = arith.constant 0 : index
    %c125 = arith.constant 125 : index
    %100 = vector.load %arg11[%c0_91, %c125] : memref<32x384xf32, #tpu.memory_space<vmem>>, vector<32x128xf32>
    %cst_92 = arith.constant dense<0.000000e+00> : vector<32x128xf32>
    %101 = tpu.matmul %99, %100, %cst_92 {dimension_numbers = #tpu.dot_dimension_numbers<[1], [0], [0], [1], [0, 0, 1, 1], [], []>} : vector<32x32xf32>, vector<32x128xf32>, vector<32x128xf32> -> vector<32x128xf32>
    %c9 = arith.constant 9 : index
    %c0_93 = arith.constant 0 : index
    %c0_94 = arith.constant 0 : index
    %102 = vector.load %arg4[%c9, %c0_93, %c0_94] : memref<48x32x32xf32, #tpu.memory_space<vmem>>, vector<1x32x32xf32>
    %103 = vector.shape_cast %102 : vector<1x32x32xf32> to vector<32x32xf32>
    %c0_95 = arith.constant 0 : index
    %c127_96 = arith.constant 127 : index
    %104 = vector.load %arg11[%c0_95, %c127_96] : memref<32x384xf32, #tpu.memory_space<vmem>>, vector<32x128xf32>
    %cst_97 = arith.constant dense<0.000000e+00> : vector<32x128xf32>
    %105 = tpu.matmul %103, %104, %cst_97 {dimension_numbers = #tpu.dot_dimension_numbers<[1], [0], [0], [1], [0, 0, 1, 1], [], []>} : vector<32x32xf32>, vector<32x128xf32>, vector<32x128xf32> -> vector<32x128xf32>
    %106 = arith.addf %101, %105 : vector<32x128xf32>
    %c10 = arith.constant 10 : index
    %c0_98 = arith.constant 0 : index
    %c0_99 = arith.constant 0 : index
    %107 = vector.load %arg4[%c10, %c0_98, %c0_99] : memref<48x32x32xf32, #tpu.memory_space<vmem>>, vector<1x32x32xf32>
    %108 = vector.shape_cast %107 : vector<1x32x32xf32> to vector<32x32xf32>
    %c0_100 = arith.constant 0 : index
    %c129_101 = arith.constant 129 : index
    %109 = vector.load %arg11[%c0_100, %c129_101] : memref<32x384xf32, #tpu.memory_space<vmem>>, vector<32x128xf32>
    %cst_102 = arith.constant dense<0.000000e+00> : vector<32x128xf32>
    %110 = tpu.matmul %108, %109, %cst_102 {dimension_numbers = #tpu.dot_dimension_numbers<[1], [0], [0], [1], [0, 0, 1, 1], [], []>} : vector<32x32xf32>, vector<32x128xf32>, vector<32x128xf32> -> vector<32x128xf32>
    %111 = arith.addf %106, %110 : vector<32x128xf32>
    %c11 = arith.constant 11 : index
    %c0_103 = arith.constant 0 : index
    %c0_104 = arith.constant 0 : index
    %112 = vector.load %arg4[%c11, %c0_103, %c0_104] : memref<48x32x32xf32, #tpu.memory_space<vmem>>, vector<1x32x32xf32>
    %113 = vector.shape_cast %112 : vector<1x32x32xf32> to vector<32x32xf32>
    %c0_105 = arith.constant 0 : index
    %c131 = arith.constant 131 : index
    %114 = vector.load %arg11[%c0_105, %c131] : memref<32x384xf32, #tpu.memory_space<vmem>>, vector<32x128xf32>
    %cst_106 = arith.constant dense<0.000000e+00> : vector<32x128xf32>
    %115 = tpu.matmul %113, %114, %cst_106 {dimension_numbers = #tpu.dot_dimension_numbers<[1], [0], [0], [1], [0, 0, 1, 1], [], []>} : vector<32x32xf32>, vector<32x128xf32>, vector<32x128xf32> -> vector<32x128xf32>
    %116 = arith.addf %111, %115 : vector<32x128xf32>
    %c0_107 = arith.constant 0 : index
    %c6_108 = arith.constant 6 : index
    %117 = vector.load %arg5[%c0_107, %c6_108] : memref<32x36xf32, #tpu.memory_space<vmem>>, vector<32x1xf32>
    %c0_109 = arith.constant 0 : index
    %c7_110 = arith.constant 7 : index
    %118 = vector.load %arg5[%c0_109, %c7_110] : memref<32x36xf32, #tpu.memory_space<vmem>>, vector<32x1xf32>
    %c0_111 = arith.constant 0 : index
    %c8_112 = arith.constant 8 : index
    %119 = vector.load %arg5[%c0_111, %c8_112] : memref<32x36xf32, #tpu.memory_space<vmem>>, vector<32x1xf32>
    %120 = vector.broadcast %117 : vector<32x1xf32> to vector<32x128xf32>
    %121 = arith.addf %116, %120 : vector<32x128xf32>
    %cst_113 = arith.constant 0.000000e+00 : f32
    %122 = vector.broadcast %cst_113 : f32 to vector<32x128xf32>
    %123 = arith.maximumf %121, %122 : vector<32x128xf32>
    %cst_114 = arith.constant 0.000000e+00 : f32
    %124 = vector.shape_cast %8 : vector<1x128xi1> to vector<1x128xi1>
    %125 = vector.broadcast %124 : vector<1x128xi1> to vector<32x128xi1>
    %126 = vector.broadcast %cst_114 : f32 to vector<32x128xf32>
    %127 = arith.select %125, %123, %126 : vector<32x128xi1>, vector<32x128xf32>
    %128 = vector.broadcast %118 : vector<32x1xf32> to vector<32x128xf32>
    %129 = arith.mulf %127, %128 : vector<32x128xf32>
    %130 = vector.broadcast %119 : vector<32x1xf32> to vector<32x128xf32>
    %131 = arith.addf %129, %130 : vector<32x128xf32>
    %c0_115 = arith.constant 0 : index
    %c128_116 = arith.constant 128 : index
    %132 = vector.load %arg11[%c0_115, %c128_116] : memref<32x384xf32, #tpu.memory_space<vmem>>, vector<32x128xf32>
    tpu.vector_store %arg11[%c0_115, %c128_116], %131 {strides = array<i32>} : memref<32x384xf32, #tpu.memory_space<vmem>>, vector<32x128xf32>,
    %c12 = arith.constant 12 : index
    %c0_117 = arith.constant 0 : index
    %c0_118 = arith.constant 0 : index
    %133 = vector.load %arg4[%c12, %c0_117, %c0_118] : memref<48x32x32xf32, #tpu.memory_space<vmem>>, vector<1x32x32xf32>
    %134 = vector.shape_cast %133 : vector<1x32x32xf32> to vector<32x32xf32>
    %c0_119 = arith.constant 0 : index
    %c125_120 = arith.constant 125 : index
    %135 = vector.load %arg11[%c0_119, %c125_120] : memref<32x384xf32, #tpu.memory_space<vmem>>, vector<32x128xf32>
    %cst_121 = arith.constant dense<0.000000e+00> : vector<32x128xf32>
    %136 = tpu.matmul %134, %135, %cst_121 {dimension_numbers = #tpu.dot_dimension_numbers<[1], [0], [0], [1], [0, 0, 1, 1], [], []>} : vector<32x32xf32>, vector<32x128xf32>, vector<32x128xf32> -> vector<32x128xf32>
    %c13 = arith.constant 13 : index
    %c0_122 = arith.constant 0 : index
    %c0_123 = arith.constant 0 : index
    %137 = vector.load %arg4[%c13, %c0_122, %c0_123] : memref<48x32x32xf32, #tpu.memory_space<vmem>>, vector<1x32x32xf32>
    %138 = vector.shape_cast %137 : vector<1x32x32xf32> to vector<32x32xf32>
    %c0_124 = arith.constant 0 : index
    %c127_125 = arith.constant 127 : index
    %139 = vector.load %arg11[%c0_124, %c127_125] : memref<32x384xf32, #tpu.memory_space<vmem>>, vector<32x128xf32>
    %cst_126 = arith.constant dense<0.000000e+00> : vector<32x128xf32>
    %140 = tpu.matmul %138, %139, %cst_126 {dimension_numbers = #tpu.dot_dimension_numbers<[1], [0], [0], [1], [0, 0, 1, 1], [], []>} : vector<32x32xf32>, vector<32x128xf32>, vector<32x128xf32> -> vector<32x128xf32>
    %141 = arith.addf %136, %140 : vector<32x128xf32>
    %c14 = arith.constant 14 : index
    %c0_127 = arith.constant 0 : index
    %c0_128 = arith.constant 0 : index
    %142 = vector.load %arg4[%c14, %c0_127, %c0_128] : memref<48x32x32xf32, #tpu.memory_space<vmem>>, vector<1x32x32xf32>
    %143 = vector.shape_cast %142 : vector<1x32x32xf32> to vector<32x32xf32>
    %c0_129 = arith.constant 0 : index
    %c129_130 = arith.constant 129 : index
    %144 = vector.load %arg11[%c0_129, %c129_130] : memref<32x384xf32, #tpu.memory_space<vmem>>, vector<32x128xf32>
    %cst_131 = arith.constant dense<0.000000e+00> : vector<32x128xf32>
    %145 = tpu.matmul %143, %144, %cst_131 {dimension_numbers = #tpu.dot_dimension_numbers<[1], [0], [0], [1], [0, 0, 1, 1], [], []>} : vector<32x32xf32>, vector<32x128xf32>, vector<32x128xf32> -> vector<32x128xf32>
    %146 = arith.addf %141, %145 : vector<32x128xf32>
    %c15 = arith.constant 15 : index
    %c0_132 = arith.constant 0 : index
    %c0_133 = arith.constant 0 : index
    %147 = vector.load %arg4[%c15, %c0_132, %c0_133] : memref<48x32x32xf32, #tpu.memory_space<vmem>>, vector<1x32x32xf32>
    %148 = vector.shape_cast %147 : vector<1x32x32xf32> to vector<32x32xf32>
    %c0_134 = arith.constant 0 : index
    %c131_135 = arith.constant 131 : index
    %149 = vector.load %arg11[%c0_134, %c131_135] : memref<32x384xf32, #tpu.memory_space<vmem>>, vector<32x128xf32>
    %cst_136 = arith.constant dense<0.000000e+00> : vector<32x128xf32>
    %150 = tpu.matmul %148, %149, %cst_136 {dimension_numbers = #tpu.dot_dimension_numbers<[1], [0], [0], [1], [0, 0, 1, 1], [], []>} : vector<32x32xf32>, vector<32x128xf32>, vector<32x128xf32> -> vector<32x128xf32>
    %151 = arith.addf %146, %150 : vector<32x128xf32>
    %c0_137 = arith.constant 0 : index
    %c9_138 = arith.constant 9 : index
    %152 = vector.load %arg5[%c0_137, %c9_138] : memref<32x36xf32, #tpu.memory_space<vmem>>, vector<32x1xf32>
    %c0_139 = arith.constant 0 : index
    %c10_140 = arith.constant 10 : index
    %153 = vector.load %arg5[%c0_139, %c10_140] : memref<32x36xf32, #tpu.memory_space<vmem>>, vector<32x1xf32>
    %c0_141 = arith.constant 0 : index
    %c11_142 = arith.constant 11 : index
    %154 = vector.load %arg5[%c0_141, %c11_142] : memref<32x36xf32, #tpu.memory_space<vmem>>, vector<32x1xf32>
    %155 = vector.broadcast %152 : vector<32x1xf32> to vector<32x128xf32>
    %156 = arith.addf %151, %155 : vector<32x128xf32>
    %cst_143 = arith.constant 0.000000e+00 : f32
    %157 = vector.broadcast %cst_143 : f32 to vector<32x128xf32>
    %158 = arith.maximumf %156, %157 : vector<32x128xf32>
    %cst_144 = arith.constant 0.000000e+00 : f32
    %159 = vector.shape_cast %8 : vector<1x128xi1> to vector<1x128xi1>
    %160 = vector.broadcast %159 : vector<1x128xi1> to vector<32x128xi1>
    %161 = vector.broadcast %cst_144 : f32 to vector<32x128xf32>
    %162 = arith.select %160, %158, %161 : vector<32x128xi1>, vector<32x128xf32>
    %163 = vector.broadcast %153 : vector<32x1xf32> to vector<32x128xf32>
    %164 = arith.mulf %162, %163 : vector<32x128xf32>
    %165 = vector.broadcast %154 : vector<32x1xf32> to vector<32x128xf32>
    %166 = arith.addf %164, %165 : vector<32x128xf32>
    %c0_145 = arith.constant 0 : index
    %c0_146 = arith.constant 0 : index
    %167 = vector.load %arg12[%c0_145, %c0_146] : memref<32x128xf32, #tpu.memory_space<vmem>>, vector<32x128xf32>
    %168 = arith.addf %166, %167 : vector<32x128xf32>
    %c0_147 = arith.constant 0 : index
    %c128_148 = arith.constant 128 : index
    %169 = vector.load %arg11[%c0_147, %c128_148] : memref<32x384xf32, #tpu.memory_space<vmem>>, vector<32x128xf32>
    tpu.vector_store %arg11[%c0_147, %c128_148], %168 {strides = array<i32>} : memref<32x384xf32, #tpu.memory_space<vmem>>, vector<32x128xf32>,
    %c0_149 = arith.constant 0 : index
    %c128_150 = arith.constant 128 : index
    %170 = vector.load %arg11[%c0_149, %c128_150] : memref<32x384xf32, #tpu.memory_space<vmem>>, vector<32x128xf32>
    %c0_151 = arith.constant 0 : index
    %c0_152 = arith.constant 0 : index
    %171 = vector.load %arg12[%c0_151, %c0_152] : memref<32x128xf32, #tpu.memory_space<vmem>>, vector<32x128xf32>
    tpu.vector_store %arg12[%c0_151, %c0_152], %170 {strides = array<i32>} : memref<32x128xf32, #tpu.memory_space<vmem>>, vector<32x128xf32>,
    %c16 = arith.constant 16 : index
    %c0_153 = arith.constant 0 : index
    %c0_154 = arith.constant 0 : index
    %172 = vector.load %arg4[%c16, %c0_153, %c0_154] : memref<48x32x32xf32, #tpu.memory_space<vmem>>, vector<1x32x32xf32>
    %173 = vector.shape_cast %172 : vector<1x32x32xf32> to vector<32x32xf32>
    %c0_155 = arith.constant 0 : index
    %c122 = arith.constant 122 : index
    %174 = vector.load %arg11[%c0_155, %c122] : memref<32x384xf32, #tpu.memory_space<vmem>>, vector<32x128xf32>
    %cst_156 = arith.constant dense<0.000000e+00> : vector<32x128xf32>
    %175 = tpu.matmul %173, %174, %cst_156 {dimension_numbers = #tpu.dot_dimension_numbers<[1], [0], [0], [1], [0, 0, 1, 1], [], []>} : vector<32x32xf32>, vector<32x128xf32>, vector<32x128xf32> -> vector<32x128xf32>
    %c17 = arith.constant 17 : index
    %c0_157 = arith.constant 0 : index
    %c0_158 = arith.constant 0 : index
    %176 = vector.load %arg4[%c17, %c0_157, %c0_158] : memref<48x32x32xf32, #tpu.memory_space<vmem>>, vector<1x32x32xf32>
    %177 = vector.shape_cast %176 : vector<1x32x32xf32> to vector<32x32xf32>
    %c0_159 = arith.constant 0 : index
    %c126 = arith.constant 126 : index
    %178 = vector.load %arg11[%c0_159, %c126] : memref<32x384xf32, #tpu.memory_space<vmem>>, vector<32x128xf32>
    %cst_160 = arith.constant dense<0.000000e+00> : vector<32x128xf32>
    %179 = tpu.matmul %177, %178, %cst_160 {dimension_numbers = #tpu.dot_dimension_numbers<[1], [0], [0], [1], [0, 0, 1, 1], [], []>} : vector<32x32xf32>, vector<32x128xf32>, vector<32x128xf32> -> vector<32x128xf32>
    %180 = arith.addf %175, %179 : vector<32x128xf32>
    %c18 = arith.constant 18 : index
    %c0_161 = arith.constant 0 : index
    %c0_162 = arith.constant 0 : index
    %181 = vector.load %arg4[%c18, %c0_161, %c0_162] : memref<48x32x32xf32, #tpu.memory_space<vmem>>, vector<1x32x32xf32>
    %182 = vector.shape_cast %181 : vector<1x32x32xf32> to vector<32x32xf32>
    %c0_163 = arith.constant 0 : index
    %c130_164 = arith.constant 130 : index
    %183 = vector.load %arg11[%c0_163, %c130_164] : memref<32x384xf32, #tpu.memory_space<vmem>>, vector<32x128xf32>
    %cst_165 = arith.constant dense<0.000000e+00> : vector<32x128xf32>
    %184 = tpu.matmul %182, %183, %cst_165 {dimension_numbers = #tpu.dot_dimension_numbers<[1], [0], [0], [1], [0, 0, 1, 1], [], []>} : vector<32x32xf32>, vector<32x128xf32>, vector<32x128xf32> -> vector<32x128xf32>
    %185 = arith.addf %180, %184 : vector<32x128xf32>
    %c19 = arith.constant 19 : index
    %c0_166 = arith.constant 0 : index
    %c0_167 = arith.constant 0 : index
    %186 = vector.load %arg4[%c19, %c0_166, %c0_167] : memref<48x32x32xf32, #tpu.memory_space<vmem>>, vector<1x32x32xf32>
    %187 = vector.shape_cast %186 : vector<1x32x32xf32> to vector<32x32xf32>
    %c0_168 = arith.constant 0 : index
    %c134 = arith.constant 134 : index
    %188 = vector.load %arg11[%c0_168, %c134] : memref<32x384xf32, #tpu.memory_space<vmem>>, vector<32x128xf32>
    %cst_169 = arith.constant dense<0.000000e+00> : vector<32x128xf32>
    %189 = tpu.matmul %187, %188, %cst_169 {dimension_numbers = #tpu.dot_dimension_numbers<[1], [0], [0], [1], [0, 0, 1, 1], [], []>} : vector<32x32xf32>, vector<32x128xf32>, vector<32x128xf32> -> vector<32x128xf32>
    %190 = arith.addf %185, %189 : vector<32x128xf32>
    %c0_170 = arith.constant 0 : index
    %c12_171 = arith.constant 12 : index
    %191 = vector.load %arg5[%c0_170, %c12_171] : memref<32x36xf32, #tpu.memory_space<vmem>>, vector<32x1xf32>
    %c0_172 = arith.constant 0 : index
    %c13_173 = arith.constant 13 : index
    %192 = vector.load %arg5[%c0_172, %c13_173] : memref<32x36xf32, #tpu.memory_space<vmem>>, vector<32x1xf32>
    %c0_174 = arith.constant 0 : index
    %c14_175 = arith.constant 14 : index
    %193 = vector.load %arg5[%c0_174, %c14_175] : memref<32x36xf32, #tpu.memory_space<vmem>>, vector<32x1xf32>
    %194 = vector.broadcast %191 : vector<32x1xf32> to vector<32x128xf32>
    %195 = arith.addf %190, %194 : vector<32x128xf32>
    %cst_176 = arith.constant 0.000000e+00 : f32
    %196 = vector.broadcast %cst_176 : f32 to vector<32x128xf32>
    %197 = arith.maximumf %195, %196 : vector<32x128xf32>
    %cst_177 = arith.constant 0.000000e+00 : f32
    %198 = vector.shape_cast %11 : vector<1x128xi1> to vector<1x128xi1>
    %199 = vector.broadcast %198 : vector<1x128xi1> to vector<32x128xi1>
    %200 = vector.broadcast %cst_177 : f32 to vector<32x128xf32>
    %201 = arith.select %199, %197, %200 : vector<32x128xi1>, vector<32x128xf32>
    %202 = vector.broadcast %192 : vector<32x1xf32> to vector<32x128xf32>
    %203 = arith.mulf %201, %202 : vector<32x128xf32>
    %204 = vector.broadcast %193 : vector<32x1xf32> to vector<32x128xf32>
    %205 = arith.addf %203, %204 : vector<32x128xf32>
    %c0_178 = arith.constant 0 : index
    %c128_179 = arith.constant 128 : index
    %206 = vector.load %arg11[%c0_178, %c128_179] : memref<32x384xf32, #tpu.memory_space<vmem>>, vector<32x128xf32>
    tpu.vector_store %arg11[%c0_178, %c128_179], %205 {strides = array<i32>} : memref<32x384xf32, #tpu.memory_space<vmem>>, vector<32x128xf32>,
    %c20 = arith.constant 20 : index
    %c0_180 = arith.constant 0 : index
    %c0_181 = arith.constant 0 : index
    %207 = vector.load %arg4[%c20, %c0_180, %c0_181] : memref<48x32x32xf32, #tpu.memory_space<vmem>>, vector<1x32x32xf32>
    %208 = vector.shape_cast %207 : vector<1x32x32xf32> to vector<32x32xf32>
    %c0_182 = arith.constant 0 : index
    %c122_183 = arith.constant 122 : index
    %209 = vector.load %arg11[%c0_182, %c122_183] : memref<32x384xf32, #tpu.memory_space<vmem>>, vector<32x128xf32>
    %cst_184 = arith.constant dense<0.000000e+00> : vector<32x128xf32>
    %210 = tpu.matmul %208, %209, %cst_184 {dimension_numbers = #tpu.dot_dimension_numbers<[1], [0], [0], [1], [0, 0, 1, 1], [], []>} : vector<32x32xf32>, vector<32x128xf32>, vector<32x128xf32> -> vector<32x128xf32>
    %c21 = arith.constant 21 : index
    %c0_185 = arith.constant 0 : index
    %c0_186 = arith.constant 0 : index
    %211 = vector.load %arg4[%c21, %c0_185, %c0_186] : memref<48x32x32xf32, #tpu.memory_space<vmem>>, vector<1x32x32xf32>
    %212 = vector.shape_cast %211 : vector<1x32x32xf32> to vector<32x32xf32>
    %c0_187 = arith.constant 0 : index
    %c126_188 = arith.constant 126 : index
    %213 = vector.load %arg11[%c0_187, %c126_188] : memref<32x384xf32, #tpu.memory_space<vmem>>, vector<32x128xf32>
    %cst_189 = arith.constant dense<0.000000e+00> : vector<32x128xf32>
    %214 = tpu.matmul %212, %213, %cst_189 {dimension_numbers = #tpu.dot_dimension_numbers<[1], [0], [0], [1], [0, 0, 1, 1], [], []>} : vector<32x32xf32>, vector<32x128xf32>, vector<32x128xf32> -> vector<32x128xf32>
    %215 = arith.addf %210, %214 : vector<32x128xf32>
    %c22 = arith.constant 22 : index
    %c0_190 = arith.constant 0 : index
    %c0_191 = arith.constant 0 : index
    %216 = vector.load %arg4[%c22, %c0_190, %c0_191] : memref<48x32x32xf32, #tpu.memory_space<vmem>>, vector<1x32x32xf32>
    %217 = vector.shape_cast %216 : vector<1x32x32xf32> to vector<32x32xf32>
    %c0_192 = arith.constant 0 : index
    %c130_193 = arith.constant 130 : index
    %218 = vector.load %arg11[%c0_192, %c130_193] : memref<32x384xf32, #tpu.memory_space<vmem>>, vector<32x128xf32>
    %cst_194 = arith.constant dense<0.000000e+00> : vector<32x128xf32>
    %219 = tpu.matmul %217, %218, %cst_194 {dimension_numbers = #tpu.dot_dimension_numbers<[1], [0], [0], [1], [0, 0, 1, 1], [], []>} : vector<32x32xf32>, vector<32x128xf32>, vector<32x128xf32> -> vector<32x128xf32>
    %220 = arith.addf %215, %219 : vector<32x128xf32>
    %c23 = arith.constant 23 : index
    %c0_195 = arith.constant 0 : index
    %c0_196 = arith.constant 0 : index
    %221 = vector.load %arg4[%c23, %c0_195, %c0_196] : memref<48x32x32xf32, #tpu.memory_space<vmem>>, vector<1x32x32xf32>
    %222 = vector.shape_cast %221 : vector<1x32x32xf32> to vector<32x32xf32>
    %c0_197 = arith.constant 0 : index
    %c134_198 = arith.constant 134 : index
    %223 = vector.load %arg11[%c0_197, %c134_198] : memref<32x384xf32, #tpu.memory_space<vmem>>, vector<32x128xf32>
    %cst_199 = arith.constant dense<0.000000e+00> : vector<32x128xf32>
    %224 = tpu.matmul %222, %223, %cst_199 {dimension_numbers = #tpu.dot_dimension_numbers<[1], [0], [0], [1], [0, 0, 1, 1], [], []>} : vector<32x32xf32>, vector<32x128xf32>, vector<32x128xf32> -> vector<32x128xf32>
    %225 = arith.addf %220, %224 : vector<32x128xf32>
    %c0_200 = arith.constant 0 : index
    %c15_201 = arith.constant 15 : index
    %226 = vector.load %arg5[%c0_200, %c15_201] : memref<32x36xf32, #tpu.memory_space<vmem>>, vector<32x1xf32>
    %c0_202 = arith.constant 0 : index
    %c16_203 = arith.constant 16 : index
    %227 = vector.load %arg5[%c0_202, %c16_203] : memref<32x36xf32, #tpu.memory_space<vmem>>, vector<32x1xf32>
    %c0_204 = arith.constant 0 : index
    %c17_205 = arith.constant 17 : index
    %228 = vector.load %arg5[%c0_204, %c17_205] : memref<32x36xf32, #tpu.memory_space<vmem>>, vector<32x1xf32>
    %229 = vector.broadcast %226 : vector<32x1xf32> to vector<32x128xf32>
    %230 = arith.addf %225, %229 : vector<32x128xf32>
    %cst_206 = arith.constant 0.000000e+00 : f32
    %231 = vector.broadcast %cst_206 : f32 to vector<32x128xf32>
    %232 = arith.maximumf %230, %231 : vector<32x128xf32>
    %cst_207 = arith.constant 0.000000e+00 : f32
    %233 = vector.shape_cast %11 : vector<1x128xi1> to vector<1x128xi1>
    %234 = vector.broadcast %233 : vector<1x128xi1> to vector<32x128xi1>
    %235 = vector.broadcast %cst_207 : f32 to vector<32x128xf32>
    %236 = arith.select %234, %232, %235 : vector<32x128xi1>, vector<32x128xf32>
    %237 = vector.broadcast %227 : vector<32x1xf32> to vector<32x128xf32>
    %238 = arith.mulf %236, %237 : vector<32x128xf32>
    %239 = vector.broadcast %228 : vector<32x1xf32> to vector<32x128xf32>
    %240 = arith.addf %238, %239 : vector<32x128xf32>
    %c0_208 = arith.constant 0 : index
    %c0_209 = arith.constant 0 : index
    %241 = vector.load %arg12[%c0_208, %c0_209] : memref<32x128xf32, #tpu.memory_space<vmem>>, vector<32x128xf32>
    %242 = arith.addf %240, %241 : vector<32x128xf32>
    %c0_210 = arith.constant 0 : index
    %c128_211 = arith.constant 128 : index
    %243 = vector.load %arg11[%c0_210, %c128_211] : memref<32x384xf32, #tpu.memory_space<vmem>>, vector<32x128xf32>
    tpu.vector_store %arg11[%c0_210, %c128_211], %242 {strides = array<i32>} : memref<32x384xf32, #tpu.memory_space<vmem>>, vector<32x128xf32>,
    %c0_212 = arith.constant 0 : index
    %c128_213 = arith.constant 128 : index
    %244 = vector.load %arg11[%c0_212, %c128_213] : memref<32x384xf32, #tpu.memory_space<vmem>>, vector<32x128xf32>
    %c0_214 = arith.constant 0 : index
    %c0_215 = arith.constant 0 : index
    %245 = vector.load %arg12[%c0_214, %c0_215] : memref<32x128xf32, #tpu.memory_space<vmem>>, vector<32x128xf32>
    tpu.vector_store %arg12[%c0_214, %c0_215], %244 {strides = array<i32>} : memref<32x128xf32, #tpu.memory_space<vmem>>, vector<32x128xf32>,
    %c24 = arith.constant 24 : index
    %c0_216 = arith.constant 0 : index
    %c0_217 = arith.constant 0 : index
    %246 = vector.load %arg4[%c24, %c0_216, %c0_217] : memref<48x32x32xf32, #tpu.memory_space<vmem>>, vector<1x32x32xf32>
    %247 = vector.shape_cast %246 : vector<1x32x32xf32> to vector<32x32xf32>
    %c0_218 = arith.constant 0 : index
    %c116 = arith.constant 116 : index
    %248 = vector.load %arg11[%c0_218, %c116] : memref<32x384xf32, #tpu.memory_space<vmem>>, vector<32x128xf32>
    %cst_219 = arith.constant dense<0.000000e+00> : vector<32x128xf32>
    %249 = tpu.matmul %247, %248, %cst_219 {dimension_numbers = #tpu.dot_dimension_numbers<[1], [0], [0], [1], [0, 0, 1, 1], [], []>} : vector<32x32xf32>, vector<32x128xf32>, vector<32x128xf32> -> vector<32x128xf32>
    %c25 = arith.constant 25 : index
    %c0_220 = arith.constant 0 : index
    %c0_221 = arith.constant 0 : index
    %250 = vector.load %arg4[%c25, %c0_220, %c0_221] : memref<48x32x32xf32, #tpu.memory_space<vmem>>, vector<1x32x32xf32>
    %251 = vector.shape_cast %250 : vector<1x32x32xf32> to vector<32x32xf32>
    %c0_222 = arith.constant 0 : index
    %c124 = arith.constant 124 : index
    %252 = vector.load %arg11[%c0_222, %c124] : memref<32x384xf32, #tpu.memory_space<vmem>>, vector<32x128xf32>
    %cst_223 = arith.constant dense<0.000000e+00> : vector<32x128xf32>
    %253 = tpu.matmul %251, %252, %cst_223 {dimension_numbers = #tpu.dot_dimension_numbers<[1], [0], [0], [1], [0, 0, 1, 1], [], []>} : vector<32x32xf32>, vector<32x128xf32>, vector<32x128xf32> -> vector<32x128xf32>
    %254 = arith.addf %249, %253 : vector<32x128xf32>
    %c26 = arith.constant 26 : index
    %c0_224 = arith.constant 0 : index
    %c0_225 = arith.constant 0 : index
    %255 = vector.load %arg4[%c26, %c0_224, %c0_225] : memref<48x32x32xf32, #tpu.memory_space<vmem>>, vector<1x32x32xf32>
    %256 = vector.shape_cast %255 : vector<1x32x32xf32> to vector<32x32xf32>
    %c0_226 = arith.constant 0 : index
    %c132 = arith.constant 132 : index
    %257 = vector.load %arg11[%c0_226, %c132] : memref<32x384xf32, #tpu.memory_space<vmem>>, vector<32x128xf32>
    %cst_227 = arith.constant dense<0.000000e+00> : vector<32x128xf32>
    %258 = tpu.matmul %256, %257, %cst_227 {dimension_numbers = #tpu.dot_dimension_numbers<[1], [0], [0], [1], [0, 0, 1, 1], [], []>} : vector<32x32xf32>, vector<32x128xf32>, vector<32x128xf32> -> vector<32x128xf32>
    %259 = arith.addf %254, %258 : vector<32x128xf32>
    %c27 = arith.constant 27 : index
    %c0_228 = arith.constant 0 : index
    %c0_229 = arith.constant 0 : index
    %260 = vector.load %arg4[%c27, %c0_228, %c0_229] : memref<48x32x32xf32, #tpu.memory_space<vmem>>, vector<1x32x32xf32>
    %261 = vector.shape_cast %260 : vector<1x32x32xf32> to vector<32x32xf32>
    %c0_230 = arith.constant 0 : index
    %c140 = arith.constant 140 : index
    %262 = vector.load %arg11[%c0_230, %c140] : memref<32x384xf32, #tpu.memory_space<vmem>>, vector<32x128xf32>
    %cst_231 = arith.constant dense<0.000000e+00> : vector<32x128xf32>
    %263 = tpu.matmul %261, %262, %cst_231 {dimension_numbers = #tpu.dot_dimension_numbers<[1], [0], [0], [1], [0, 0, 1, 1], [], []>} : vector<32x32xf32>, vector<32x128xf32>, vector<32x128xf32> -> vector<32x128xf32>
    %264 = arith.addf %259, %263 : vector<32x128xf32>
    %c0_232 = arith.constant 0 : index
    %c18_233 = arith.constant 18 : index
    %265 = vector.load %arg5[%c0_232, %c18_233] : memref<32x36xf32, #tpu.memory_space<vmem>>, vector<32x1xf32>
    %c0_234 = arith.constant 0 : index
    %c19_235 = arith.constant 19 : index
    %266 = vector.load %arg5[%c0_234, %c19_235] : memref<32x36xf32, #tpu.memory_space<vmem>>, vector<32x1xf32>
    %c0_236 = arith.constant 0 : index
    %c20_237 = arith.constant 20 : index
    %267 = vector.load %arg5[%c0_236, %c20_237] : memref<32x36xf32, #tpu.memory_space<vmem>>, vector<32x1xf32>
    %268 = vector.broadcast %265 : vector<32x1xf32> to vector<32x128xf32>
    %269 = arith.addf %264, %268 : vector<32x128xf32>
    %cst_238 = arith.constant 0.000000e+00 : f32
    %270 = vector.broadcast %cst_238 : f32 to vector<32x128xf32>
    %271 = arith.maximumf %269, %270 : vector<32x128xf32>
    %cst_239 = arith.constant 0.000000e+00 : f32
    %272 = vector.shape_cast %14 : vector<1x128xi1> to vector<1x128xi1>
    %273 = vector.broadcast %272 : vector<1x128xi1> to vector<32x128xi1>
    %274 = vector.broadcast %cst_239 : f32 to vector<32x128xf32>
    %275 = arith.select %273, %271, %274 : vector<32x128xi1>, vector<32x128xf32>
    %276 = vector.broadcast %266 : vector<32x1xf32> to vector<32x128xf32>
    %277 = arith.mulf %275, %276 : vector<32x128xf32>
    %278 = vector.broadcast %267 : vector<32x1xf32> to vector<32x128xf32>
    %279 = arith.addf %277, %278 : vector<32x128xf32>
    %c0_240 = arith.constant 0 : index
    %c128_241 = arith.constant 128 : index
    %280 = vector.load %arg11[%c0_240, %c128_241] : memref<32x384xf32, #tpu.memory_space<vmem>>, vector<32x128xf32>
    tpu.vector_store %arg11[%c0_240, %c128_241], %279 {strides = array<i32>} : memref<32x384xf32, #tpu.memory_space<vmem>>, vector<32x128xf32>,
    %c28 = arith.constant 28 : index
    %c0_242 = arith.constant 0 : index
    %c0_243 = arith.constant 0 : index
    %281 = vector.load %arg4[%c28, %c0_242, %c0_243] : memref<48x32x32xf32, #tpu.memory_space<vmem>>, vector<1x32x32xf32>
    %282 = vector.shape_cast %281 : vector<1x32x32xf32> to vector<32x32xf32>
    %c0_244 = arith.constant 0 : index
    %c116_245 = arith.constant 116 : index
    %283 = vector.load %arg11[%c0_244, %c116_245] : memref<32x384xf32, #tpu.memory_space<vmem>>, vector<32x128xf32>
    %cst_246 = arith.constant dense<0.000000e+00> : vector<32x128xf32>
    %284 = tpu.matmul %282, %283, %cst_246 {dimension_numbers = #tpu.dot_dimension_numbers<[1], [0], [0], [1], [0, 0, 1, 1], [], []>} : vector<32x32xf32>, vector<32x128xf32>, vector<32x128xf32> -> vector<32x128xf32>
    %c29 = arith.constant 29 : index
    %c0_247 = arith.constant 0 : index
    %c0_248 = arith.constant 0 : index
    %285 = vector.load %arg4[%c29, %c0_247, %c0_248] : memref<48x32x32xf32, #tpu.memory_space<vmem>>, vector<1x32x32xf32>
    %286 = vector.shape_cast %285 : vector<1x32x32xf32> to vector<32x32xf32>
    %c0_249 = arith.constant 0 : index
    %c124_250 = arith.constant 124 : index
    %287 = vector.load %arg11[%c0_249, %c124_250] : memref<32x384xf32, #tpu.memory_space<vmem>>, vector<32x128xf32>
    %cst_251 = arith.constant dense<0.000000e+00> : vector<32x128xf32>
    %288 = tpu.matmul %286, %287, %cst_251 {dimension_numbers = #tpu.dot_dimension_numbers<[1], [0], [0], [1], [0, 0, 1, 1], [], []>} : vector<32x32xf32>, vector<32x128xf32>, vector<32x128xf32> -> vector<32x128xf32>
    %289 = arith.addf %284, %288 : vector<32x128xf32>
    %c30 = arith.constant 30 : index
    %c0_252 = arith.constant 0 : index
    %c0_253 = arith.constant 0 : index
    %290 = vector.load %arg4[%c30, %c0_252, %c0_253] : memref<48x32x32xf32, #tpu.memory_space<vmem>>, vector<1x32x32xf32>
    %291 = vector.shape_cast %290 : vector<1x32x32xf32> to vector<32x32xf32>
    %c0_254 = arith.constant 0 : index
    %c132_255 = arith.constant 132 : index
    %292 = vector.load %arg11[%c0_254, %c132_255] : memref<32x384xf32, #tpu.memory_space<vmem>>, vector<32x128xf32>
    %cst_256 = arith.constant dense<0.000000e+00> : vector<32x128xf32>
    %293 = tpu.matmul %291, %292, %cst_256 {dimension_numbers = #tpu.dot_dimension_numbers<[1], [0], [0], [1], [0, 0, 1, 1], [], []>} : vector<32x32xf32>, vector<32x128xf32>, vector<32x128xf32> -> vector<32x128xf32>
    %294 = arith.addf %289, %293 : vector<32x128xf32>
    %c31 = arith.constant 31 : index
    %c0_257 = arith.constant 0 : index
    %c0_258 = arith.constant 0 : index
    %295 = vector.load %arg4[%c31, %c0_257, %c0_258] : memref<48x32x32xf32, #tpu.memory_space<vmem>>, vector<1x32x32xf32>
    %296 = vector.shape_cast %295 : vector<1x32x32xf32> to vector<32x32xf32>
    %c0_259 = arith.constant 0 : index
    %c140_260 = arith.constant 140 : index
    %297 = vector.load %arg11[%c0_259, %c140_260] : memref<32x384xf32, #tpu.memory_space<vmem>>, vector<32x128xf32>
    %cst_261 = arith.constant dense<0.000000e+00> : vector<32x128xf32>
    %298 = tpu.matmul %296, %297, %cst_261 {dimension_numbers = #tpu.dot_dimension_numbers<[1], [0], [0], [1], [0, 0, 1, 1], [], []>} : vector<32x32xf32>, vector<32x128xf32>, vector<32x128xf32> -> vector<32x128xf32>
    %299 = arith.addf %294, %298 : vector<32x128xf32>
    %c0_262 = arith.constant 0 : index
    %c21_263 = arith.constant 21 : index
    %300 = vector.load %arg5[%c0_262, %c21_263] : memref<32x36xf32, #tpu.memory_space<vmem>>, vector<32x1xf32>
    %c0_264 = arith.constant 0 : index
    %c22_265 = arith.constant 22 : index
    %301 = vector.load %arg5[%c0_264, %c22_265] : memref<32x36xf32, #tpu.memory_space<vmem>>, vector<32x1xf32>
    %c0_266 = arith.constant 0 : index
    %c23_267 = arith.constant 23 : index
    %302 = vector.load %arg5[%c0_266, %c23_267] : memref<32x36xf32, #tpu.memory_space<vmem>>, vector<32x1xf32>
    %303 = vector.broadcast %300 : vector<32x1xf32> to vector<32x128xf32>
    %304 = arith.addf %299, %303 : vector<32x128xf32>
    %cst_268 = arith.constant 0.000000e+00 : f32
    %305 = vector.broadcast %cst_268 : f32 to vector<32x128xf32>
    %306 = arith.maximumf %304, %305 : vector<32x128xf32>
    %cst_269 = arith.constant 0.000000e+00 : f32
    %307 = vector.shape_cast %14 : vector<1x128xi1> to vector<1x128xi1>
    %308 = vector.broadcast %307 : vector<1x128xi1> to vector<32x128xi1>
    %309 = vector.broadcast %cst_269 : f32 to vector<32x128xf32>
    %310 = arith.select %308, %306, %309 : vector<32x128xi1>, vector<32x128xf32>
    %311 = vector.broadcast %301 : vector<32x1xf32> to vector<32x128xf32>
    %312 = arith.mulf %310, %311 : vector<32x128xf32>
    %313 = vector.broadcast %302 : vector<32x1xf32> to vector<32x128xf32>
    %314 = arith.addf %312, %313 : vector<32x128xf32>
    %c0_270 = arith.constant 0 : index
    %c0_271 = arith.constant 0 : index
    %315 = vector.load %arg12[%c0_270, %c0_271] : memref<32x128xf32, #tpu.memory_space<vmem>>, vector<32x128xf32>
    %316 = arith.addf %314, %315 : vector<32x128xf32>
    %c0_272 = arith.constant 0 : index
    %c128_273 = arith.constant 128 : index
    %317 = vector.load %arg11[%c0_272, %c128_273] : memref<32x384xf32, #tpu.memory_space<vmem>>, vector<32x128xf32>
    tpu.vector_store %arg11[%c0_272, %c128_273], %316 {strides = array<i32>} : memref<32x384xf32, #tpu.memory_space<vmem>>, vector<32x128xf32>,
    %c0_274 = arith.constant 0 : index
    %c128_275 = arith.constant 128 : index
    %318 = vector.load %arg11[%c0_274, %c128_275] : memref<32x384xf32, #tpu.memory_space<vmem>>, vector<32x128xf32>
    %c0_276 = arith.constant 0 : index
    %c0_277 = arith.constant 0 : index
    %319 = vector.load %arg12[%c0_276, %c0_277] : memref<32x128xf32, #tpu.memory_space<vmem>>, vector<32x128xf32>
    tpu.vector_store %arg12[%c0_276, %c0_277], %318 {strides = array<i32>} : memref<32x128xf32, #tpu.memory_space<vmem>>, vector<32x128xf32>,
    %c32 = arith.constant 32 : index
    %c0_278 = arith.constant 0 : index
    %c0_279 = arith.constant 0 : index
    %320 = vector.load %arg4[%c32, %c0_278, %c0_279] : memref<48x32x32xf32, #tpu.memory_space<vmem>>, vector<1x32x32xf32>
    %321 = vector.shape_cast %320 : vector<1x32x32xf32> to vector<32x32xf32>
    %c0_280 = arith.constant 0 : index
    %c127_281 = arith.constant 127 : index
    %322 = vector.load %arg11[%c0_280, %c127_281] : memref<32x384xf32, #tpu.memory_space<vmem>>, vector<32x128xf32>
    %cst_282 = arith.constant dense<0.000000e+00> : vector<32x128xf32>
    %323 = tpu.matmul %321, %322, %cst_282 {dimension_numbers = #tpu.dot_dimension_numbers<[1], [0], [0], [1], [0, 0, 1, 1], [], []>} : vector<32x32xf32>, vector<32x128xf32>, vector<32x128xf32> -> vector<32x128xf32>
    %c33 = arith.constant 33 : index
    %c0_283 = arith.constant 0 : index
    %c0_284 = arith.constant 0 : index
    %324 = vector.load %arg4[%c33, %c0_283, %c0_284] : memref<48x32x32xf32, #tpu.memory_space<vmem>>, vector<1x32x32xf32>
    %325 = vector.shape_cast %324 : vector<1x32x32xf32> to vector<32x32xf32>
    %c0_285 = arith.constant 0 : index
    %c128_286 = arith.constant 128 : index
    %326 = vector.load %arg11[%c0_285, %c128_286] : memref<32x384xf32, #tpu.memory_space<vmem>>, vector<32x128xf32>
    %cst_287 = arith.constant dense<0.000000e+00> : vector<32x128xf32>
    %327 = tpu.matmul %325, %326, %cst_287 {dimension_numbers = #tpu.dot_dimension_numbers<[1], [0], [0], [1], [0, 0, 1, 1], [], []>} : vector<32x32xf32>, vector<32x128xf32>, vector<32x128xf32> -> vector<32x128xf32>
    %328 = arith.addf %323, %327 : vector<32x128xf32>
    %c34 = arith.constant 34 : index
    %c0_288 = arith.constant 0 : index
    %c0_289 = arith.constant 0 : index
    %329 = vector.load %arg4[%c34, %c0_288, %c0_289] : memref<48x32x32xf32, #tpu.memory_space<vmem>>, vector<1x32x32xf32>
    %330 = vector.shape_cast %329 : vector<1x32x32xf32> to vector<32x32xf32>
    %c0_290 = arith.constant 0 : index
    %c129_291 = arith.constant 129 : index
    %331 = vector.load %arg11[%c0_290, %c129_291] : memref<32x384xf32, #tpu.memory_space<vmem>>, vector<32x128xf32>
    %cst_292 = arith.constant dense<0.000000e+00> : vector<32x128xf32>
    %332 = tpu.matmul %330, %331, %cst_292 {dimension_numbers = #tpu.dot_dimension_numbers<[1], [0], [0], [1], [0, 0, 1, 1], [], []>} : vector<32x32xf32>, vector<32x128xf32>, vector<32x128xf32> -> vector<32x128xf32>
    %333 = arith.addf %328, %332 : vector<32x128xf32>
    %c35 = arith.constant 35 : index
    %c0_293 = arith.constant 0 : index
    %c0_294 = arith.constant 0 : index
    %334 = vector.load %arg4[%c35, %c0_293, %c0_294] : memref<48x32x32xf32, #tpu.memory_space<vmem>>, vector<1x32x32xf32>
    %335 = vector.shape_cast %334 : vector<1x32x32xf32> to vector<32x32xf32>
    %c0_295 = arith.constant 0 : index
    %c130_296 = arith.constant 130 : index
    %336 = vector.load %arg11[%c0_295, %c130_296] : memref<32x384xf32, #tpu.memory_space<vmem>>, vector<32x128xf32>
    %cst_297 = arith.constant dense<0.000000e+00> : vector<32x128xf32>
    %337 = tpu.matmul %335, %336, %cst_297 {dimension_numbers = #tpu.dot_dimension_numbers<[1], [0], [0], [1], [0, 0, 1, 1], [], []>} : vector<32x32xf32>, vector<32x128xf32>, vector<32x128xf32> -> vector<32x128xf32>
    %338 = arith.addf %333, %337 : vector<32x128xf32>
    %c0_298 = arith.constant 0 : index
    %c24_299 = arith.constant 24 : index
    %339 = vector.load %arg5[%c0_298, %c24_299] : memref<32x36xf32, #tpu.memory_space<vmem>>, vector<32x1xf32>
    %c0_300 = arith.constant 0 : index
    %c25_301 = arith.constant 25 : index
    %340 = vector.load %arg5[%c0_300, %c25_301] : memref<32x36xf32, #tpu.memory_space<vmem>>, vector<32x1xf32>
    %c0_302 = arith.constant 0 : index
    %c26_303 = arith.constant 26 : index
    %341 = vector.load %arg5[%c0_302, %c26_303] : memref<32x36xf32, #tpu.memory_space<vmem>>, vector<32x1xf32>
    %342 = vector.broadcast %339 : vector<32x1xf32> to vector<32x128xf32>
    %343 = arith.addf %338, %342 : vector<32x128xf32>
    %cst_304 = arith.constant 0.000000e+00 : f32
    %344 = vector.broadcast %cst_304 : f32 to vector<32x128xf32>
    %345 = arith.maximumf %343, %344 : vector<32x128xf32>
    %cst_305 = arith.constant 0.000000e+00 : f32
    %346 = vector.shape_cast %5 : vector<1x128xi1> to vector<1x128xi1>
    %347 = vector.broadcast %346 : vector<1x128xi1> to vector<32x128xi1>
    %348 = vector.broadcast %cst_305 : f32 to vector<32x128xf32>
    %349 = arith.select %347, %345, %348 : vector<32x128xi1>, vector<32x128xf32>
    %350 = vector.broadcast %340 : vector<32x1xf32> to vector<32x128xf32>
    %351 = arith.mulf %349, %350 : vector<32x128xf32>
    %352 = vector.broadcast %341 : vector<32x1xf32> to vector<32x128xf32>
    %353 = arith.addf %351, %352 : vector<32x128xf32>
    %c0_306 = arith.constant 0 : index
    %c128_307 = arith.constant 128 : index
    %354 = vector.load %arg11[%c0_306, %c128_307] : memref<32x384xf32, #tpu.memory_space<vmem>>, vector<32x128xf32>
    tpu.vector_store %arg11[%c0_306, %c128_307], %353 {strides = array<i32>} : memref<32x384xf32, #tpu.memory_space<vmem>>, vector<32x128xf32>,
    %c36 = arith.constant 36 : index
    %c0_308 = arith.constant 0 : index
    %c0_309 = arith.constant 0 : index
    %355 = vector.load %arg4[%c36, %c0_308, %c0_309] : memref<48x32x32xf32, #tpu.memory_space<vmem>>, vector<1x32x32xf32>
    %356 = vector.shape_cast %355 : vector<1x32x32xf32> to vector<32x32xf32>
    %c0_310 = arith.constant 0 : index
    %c127_311 = arith.constant 127 : index
    %357 = vector.load %arg11[%c0_310, %c127_311] : memref<32x384xf32, #tpu.memory_space<vmem>>, vector<32x128xf32>
    %cst_312 = arith.constant dense<0.000000e+00> : vector<32x128xf32>
    %358 = tpu.matmul %356, %357, %cst_312 {dimension_numbers = #tpu.dot_dimension_numbers<[1], [0], [0], [1], [0, 0, 1, 1], [], []>} : vector<32x32xf32>, vector<32x128xf32>, vector<32x128xf32> -> vector<32x128xf32>
    %c37 = arith.constant 37 : index
    %c0_313 = arith.constant 0 : index
    %c0_314 = arith.constant 0 : index
    %359 = vector.load %arg4[%c37, %c0_313, %c0_314] : memref<48x32x32xf32, #tpu.memory_space<vmem>>, vector<1x32x32xf32>
    %360 = vector.shape_cast %359 : vector<1x32x32xf32> to vector<32x32xf32>
    %c0_315 = arith.constant 0 : index
    %c128_316 = arith.constant 128 : index
    %361 = vector.load %arg11[%c0_315, %c128_316] : memref<32x384xf32, #tpu.memory_space<vmem>>, vector<32x128xf32>
    %cst_317 = arith.constant dense<0.000000e+00> : vector<32x128xf32>
    %362 = tpu.matmul %360, %361, %cst_317 {dimension_numbers = #tpu.dot_dimension_numbers<[1], [0], [0], [1], [0, 0, 1, 1], [], []>} : vector<32x32xf32>, vector<32x128xf32>, vector<32x128xf32> -> vector<32x128xf32>
    %363 = arith.addf %358, %362 : vector<32x128xf32>
    %c38 = arith.constant 38 : index
    %c0_318 = arith.constant 0 : index
    %c0_319 = arith.constant 0 : index
    %364 = vector.load %arg4[%c38, %c0_318, %c0_319] : memref<48x32x32xf32, #tpu.memory_space<vmem>>, vector<1x32x32xf32>
    %365 = vector.shape_cast %364 : vector<1x32x32xf32> to vector<32x32xf32>
    %c0_320 = arith.constant 0 : index
    %c129_321 = arith.constant 129 : index
    %366 = vector.load %arg11[%c0_320, %c129_321] : memref<32x384xf32, #tpu.memory_space<vmem>>, vector<32x128xf32>
    %cst_322 = arith.constant dense<0.000000e+00> : vector<32x128xf32>
    %367 = tpu.matmul %365, %366, %cst_322 {dimension_numbers = #tpu.dot_dimension_numbers<[1], [0], [0], [1], [0, 0, 1, 1], [], []>} : vector<32x32xf32>, vector<32x128xf32>, vector<32x128xf32> -> vector<32x128xf32>
    %368 = arith.addf %363, %367 : vector<32x128xf32>
    %c39 = arith.constant 39 : index
    %c0_323 = arith.constant 0 : index
    %c0_324 = arith.constant 0 : index
    %369 = vector.load %arg4[%c39, %c0_323, %c0_324] : memref<48x32x32xf32, #tpu.memory_space<vmem>>, vector<1x32x32xf32>
    %370 = vector.shape_cast %369 : vector<1x32x32xf32> to vector<32x32xf32>
    %c0_325 = arith.constant 0 : index
    %c130_326 = arith.constant 130 : index
    %371 = vector.load %arg11[%c0_325, %c130_326] : memref<32x384xf32, #tpu.memory_space<vmem>>, vector<32x128xf32>
    %cst_327 = arith.constant dense<0.000000e+00> : vector<32x128xf32>
    %372 = tpu.matmul %370, %371, %cst_327 {dimension_numbers = #tpu.dot_dimension_numbers<[1], [0], [0], [1], [0, 0, 1, 1], [], []>} : vector<32x32xf32>, vector<32x128xf32>, vector<32x128xf32> -> vector<32x128xf32>
    %373 = arith.addf %368, %372 : vector<32x128xf32>
    %c0_328 = arith.constant 0 : index
    %c27_329 = arith.constant 27 : index
    %374 = vector.load %arg5[%c0_328, %c27_329] : memref<32x36xf32, #tpu.memory_space<vmem>>, vector<32x1xf32>
    %c0_330 = arith.constant 0 : index
    %c28_331 = arith.constant 28 : index
    %375 = vector.load %arg5[%c0_330, %c28_331] : memref<32x36xf32, #tpu.memory_space<vmem>>, vector<32x1xf32>
    %c0_332 = arith.constant 0 : index
    %c29_333 = arith.constant 29 : index
    %376 = vector.load %arg5[%c0_332, %c29_333] : memref<32x36xf32, #tpu.memory_space<vmem>>, vector<32x1xf32>
    %377 = vector.broadcast %374 : vector<32x1xf32> to vector<32x128xf32>
    %378 = arith.addf %373, %377 : vector<32x128xf32>
    %cst_334 = arith.constant 0.000000e+00 : f32
    %379 = vector.broadcast %cst_334 : f32 to vector<32x128xf32>
    %380 = arith.maximumf %378, %379 : vector<32x128xf32>
    %cst_335 = arith.constant 0.000000e+00 : f32
    %381 = vector.shape_cast %5 : vector<1x128xi1> to vector<1x128xi1>
    %382 = vector.broadcast %381 : vector<1x128xi1> to vector<32x128xi1>
    %383 = vector.broadcast %cst_335 : f32 to vector<32x128xf32>
    %384 = arith.select %382, %380, %383 : vector<32x128xi1>, vector<32x128xf32>
    %385 = vector.broadcast %375 : vector<32x1xf32> to vector<32x128xf32>
    %386 = arith.mulf %384, %385 : vector<32x128xf32>
    %387 = vector.broadcast %376 : vector<32x1xf32> to vector<32x128xf32>
    %388 = arith.addf %386, %387 : vector<32x128xf32>
    %c0_336 = arith.constant 0 : index
    %c0_337 = arith.constant 0 : index
    %389 = vector.load %arg12[%c0_336, %c0_337] : memref<32x128xf32, #tpu.memory_space<vmem>>, vector<32x128xf32>
    %390 = arith.addf %388, %389 : vector<32x128xf32>
    %c0_338 = arith.constant 0 : index
    %c128_339 = arith.constant 128 : index
    %391 = vector.load %arg11[%c0_338, %c128_339] : memref<32x384xf32, #tpu.memory_space<vmem>>, vector<32x128xf32>
    tpu.vector_store %arg11[%c0_338, %c128_339], %390 {strides = array<i32>} : memref<32x384xf32, #tpu.memory_space<vmem>>, vector<32x128xf32>,
    %c0_340 = arith.constant 0 : index
    %c128_341 = arith.constant 128 : index
    %392 = vector.load %arg11[%c0_340, %c128_341] : memref<32x384xf32, #tpu.memory_space<vmem>>, vector<32x128xf32>
    %c0_342 = arith.constant 0 : index
    %c0_343 = arith.constant 0 : index
    %393 = vector.load %arg6[%c0_342, %c0_343] : memref<32x32xf32, #tpu.memory_space<vmem>>, vector<32x32xf32>
    %cst_344 = arith.constant dense<0.000000e+00> : vector<32x128xf32>
    %394 = tpu.matmul %393, %392, %cst_344 {dimension_numbers = #tpu.dot_dimension_numbers<[1], [0], [0], [1], [0, 0, 1, 1], [], []>} : vector<32x32xf32>, vector<32x128xf32>, vector<32x128xf32> -> vector<32x128xf32>
    %c0_345 = arith.constant 0 : index
    %c0_346 = arith.constant 0 : index
    %395 = vector.load %arg7[%c0_345, %c0_346] : memref<32x1xf32, #tpu.memory_space<vmem>>, vector<32x1xf32>
    %396 = vector.broadcast %395 : vector<32x1xf32> to vector<32x128xf32>
    %397 = arith.addf %394, %396 : vector<32x128xf32>
    %398 = arith.addf %397, %18 : vector<32x128xf32>
    %c0_347 = arith.constant 0 : index
    %c128_348 = arith.constant 128 : index
    %399 = vector.load %arg11[%c0_347, %c128_348] : memref<32x384xf32, #tpu.memory_space<vmem>>, vector<32x128xf32>
    tpu.vector_store %arg11[%c0_347, %c128_348], %398 {strides = array<i32>} : memref<32x384xf32, #tpu.memory_space<vmem>>, vector<32x128xf32>,
    %c40 = arith.constant 40 : index
    %c0_349 = arith.constant 0 : index
    %c0_350 = arith.constant 0 : index
    %400 = vector.load %arg4[%c40, %c0_349, %c0_350] : memref<48x32x32xf32, #tpu.memory_space<vmem>>, vector<1x32x32xf32>
    %401 = vector.shape_cast %400 : vector<1x32x32xf32> to vector<32x32xf32>
    %c0_351 = arith.constant 0 : index
    %c127_352 = arith.constant 127 : index
    %402 = vector.load %arg11[%c0_351, %c127_352] : memref<32x384xf32, #tpu.memory_space<vmem>>, vector<32x128xf32>
    %cst_353 = arith.constant dense<0.000000e+00> : vector<32x128xf32>
    %403 = tpu.matmul %401, %402, %cst_353 {dimension_numbers = #tpu.dot_dimension_numbers<[1], [0], [0], [1], [0, 0, 1, 1], [], []>} : vector<32x32xf32>, vector<32x128xf32>, vector<32x128xf32> -> vector<32x128xf32>
    %c41 = arith.constant 41 : index
    %c0_354 = arith.constant 0 : index
    %c0_355 = arith.constant 0 : index
    %404 = vector.load %arg4[%c41, %c0_354, %c0_355] : memref<48x32x32xf32, #tpu.memory_space<vmem>>, vector<1x32x32xf32>
    %405 = vector.shape_cast %404 : vector<1x32x32xf32> to vector<32x32xf32>
    %c0_356 = arith.constant 0 : index
    %c128_357 = arith.constant 128 : index
    %406 = vector.load %arg11[%c0_356, %c128_357] : memref<32x384xf32, #tpu.memory_space<vmem>>, vector<32x128xf32>
    %cst_358 = arith.constant dense<0.000000e+00> : vector<32x128xf32>
    %407 = tpu.matmul %405, %406, %cst_358 {dimension_numbers = #tpu.dot_dimension_numbers<[1], [0], [0], [1], [0, 0, 1, 1], [], []>} : vector<32x32xf32>, vector<32x128xf32>, vector<32x128xf32> -> vector<32x128xf32>
    %408 = arith.addf %403, %407 : vector<32x128xf32>
    %c42 = arith.constant 42 : index
    %c0_359 = arith.constant 0 : index
    %c0_360 = arith.constant 0 : index
    %409 = vector.load %arg4[%c42, %c0_359, %c0_360] : memref<48x32x32xf32, #tpu.memory_space<vmem>>, vector<1x32x32xf32>
    %410 = vector.shape_cast %409 : vector<1x32x32xf32> to vector<32x32xf32>
    %c0_361 = arith.constant 0 : index
    %c129_362 = arith.constant 129 : index
    %411 = vector.load %arg11[%c0_361, %c129_362] : memref<32x384xf32, #tpu.memory_space<vmem>>, vector<32x128xf32>
    %cst_363 = arith.constant dense<0.000000e+00> : vector<32x128xf32>
    %412 = tpu.matmul %410, %411, %cst_363 {dimension_numbers = #tpu.dot_dimension_numbers<[1], [0], [0], [1], [0, 0, 1, 1], [], []>} : vector<32x32xf32>, vector<32x128xf32>, vector<32x128xf32> -> vector<32x128xf32>
    %413 = arith.addf %408, %412 : vector<32x128xf32>
    %c43 = arith.constant 43 : index
    %c0_364 = arith.constant 0 : index
    %c0_365 = arith.constant 0 : index
    %414 = vector.load %arg4[%c43, %c0_364, %c0_365] : memref<48x32x32xf32, #tpu.memory_space<vmem>>, vector<1x32x32xf32>
    %415 = vector.shape_cast %414 : vector<1x32x32xf32> to vector<32x32xf32>
    %c0_366 = arith.constant 0 : index
    %c130_367 = arith.constant 130 : index
    %416 = vector.load %arg11[%c0_366, %c130_367] : memref<32x384xf32, #tpu.memory_space<vmem>>, vector<32x128xf32>
    %cst_368 = arith.constant dense<0.000000e+00> : vector<32x128xf32>
    %417 = tpu.matmul %415, %416, %cst_368 {dimension_numbers = #tpu.dot_dimension_numbers<[1], [0], [0], [1], [0, 0, 1, 1], [], []>} : vector<32x32xf32>, vector<32x128xf32>, vector<32x128xf32> -> vector<32x128xf32>
    %418 = arith.addf %413, %417 : vector<32x128xf32>
    %c0_369 = arith.constant 0 : index
    %c30_370 = arith.constant 30 : index
    %419 = vector.load %arg5[%c0_369, %c30_370] : memref<32x36xf32, #tpu.memory_space<vmem>>, vector<32x1xf32>
    %c0_371 = arith.constant 0 : index
    %c31_372 = arith.constant 31 : index
    %420 = vector.load %arg5[%c0_371, %c31_372] : memref<32x36xf32, #tpu.memory_space<vmem>>, vector<32x1xf32>
    %c0_373 = arith.constant 0 : index
    %c32_374 = arith.constant 32 : index
    %421 = vector.load %arg5[%c0_373, %c32_374] : memref<32x36xf32, #tpu.memory_space<vmem>>, vector<32x1xf32>
    %422 = vector.broadcast %419 : vector<32x1xf32> to vector<32x128xf32>
    %423 = arith.addf %418, %422 : vector<32x128xf32>
    %cst_375 = arith.constant 0.000000e+00 : f32
    %424 = vector.broadcast %cst_375 : f32 to vector<32x128xf32>
    %425 = arith.maximumf %423, %424 : vector<32x128xf32>
    %cst_376 = arith.constant 0.000000e+00 : f32
    %426 = vector.shape_cast %5 : vector<1x128xi1> to vector<1x128xi1>
    %427 = vector.broadcast %426 : vector<1x128xi1> to vector<32x128xi1>
    %428 = vector.broadcast %cst_376 : f32 to vector<32x128xf32>
    %429 = arith.select %427, %425, %428 : vector<32x128xi1>, vector<32x128xf32>
    %430 = vector.broadcast %420 : vector<32x1xf32> to vector<32x128xf32>
    %431 = arith.mulf %429, %430 : vector<32x128xf32>
    %432 = vector.broadcast %421 : vector<32x1xf32> to vector<32x128xf32>
    %433 = arith.addf %431, %432 : vector<32x128xf32>
    %c0_377 = arith.constant 0 : index
    %c128_378 = arith.constant 128 : index
    %434 = vector.load %arg11[%c0_377, %c128_378] : memref<32x384xf32, #tpu.memory_space<vmem>>, vector<32x128xf32>
    tpu.vector_store %arg11[%c0_377, %c128_378], %433 {strides = array<i32>} : memref<32x384xf32, #tpu.memory_space<vmem>>, vector<32x128xf32>,
    %c44 = arith.constant 44 : index
    %c0_379 = arith.constant 0 : index
    %c0_380 = arith.constant 0 : index
    %435 = vector.load %arg4[%c44, %c0_379, %c0_380] : memref<48x32x32xf32, #tpu.memory_space<vmem>>, vector<1x32x32xf32>
    %436 = vector.shape_cast %435 : vector<1x32x32xf32> to vector<32x32xf32>
    %c0_381 = arith.constant 0 : index
    %c127_382 = arith.constant 127 : index
    %437 = vector.load %arg11[%c0_381, %c127_382] : memref<32x384xf32, #tpu.memory_space<vmem>>, vector<32x128xf32>
    %cst_383 = arith.constant dense<0.000000e+00> : vector<32x128xf32>
    %438 = tpu.matmul %436, %437, %cst_383 {dimension_numbers = #tpu.dot_dimension_numbers<[1], [0], [0], [1], [0, 0, 1, 1], [], []>} : vector<32x32xf32>, vector<32x128xf32>, vector<32x128xf32> -> vector<32x128xf32>
    %c45 = arith.constant 45 : index
    %c0_384 = arith.constant 0 : index
    %c0_385 = arith.constant 0 : index
    %439 = vector.load %arg4[%c45, %c0_384, %c0_385] : memref<48x32x32xf32, #tpu.memory_space<vmem>>, vector<1x32x32xf32>
    %440 = vector.shape_cast %439 : vector<1x32x32xf32> to vector<32x32xf32>
    %c0_386 = arith.constant 0 : index
    %c128_387 = arith.constant 128 : index
    %441 = vector.load %arg11[%c0_386, %c128_387] : memref<32x384xf32, #tpu.memory_space<vmem>>, vector<32x128xf32>
    %cst_388 = arith.constant dense<0.000000e+00> : vector<32x128xf32>
    %442 = tpu.matmul %440, %441, %cst_388 {dimension_numbers = #tpu.dot_dimension_numbers<[1], [0], [0], [1], [0, 0, 1, 1], [], []>} : vector<32x32xf32>, vector<32x128xf32>, vector<32x128xf32> -> vector<32x128xf32>
    %443 = arith.addf %438, %442 : vector<32x128xf32>
    %c46 = arith.constant 46 : index
    %c0_389 = arith.constant 0 : index
    %c0_390 = arith.constant 0 : index
    %444 = vector.load %arg4[%c46, %c0_389, %c0_390] : memref<48x32x32xf32, #tpu.memory_space<vmem>>, vector<1x32x32xf32>
    %445 = vector.shape_cast %444 : vector<1x32x32xf32> to vector<32x32xf32>
    %c0_391 = arith.constant 0 : index
    %c129_392 = arith.constant 129 : index
    %446 = vector.load %arg11[%c0_391, %c129_392] : memref<32x384xf32, #tpu.memory_space<vmem>>, vector<32x128xf32>
    %cst_393 = arith.constant dense<0.000000e+00> : vector<32x128xf32>
    %447 = tpu.matmul %445, %446, %cst_393 {dimension_numbers = #tpu.dot_dimension_numbers<[1], [0], [0], [1], [0, 0, 1, 1], [], []>} : vector<32x32xf32>, vector<32x128xf32>, vector<32x128xf32> -> vector<32x128xf32>
    %448 = arith.addf %443, %447 : vector<32x128xf32>
    %c47 = arith.constant 47 : index
    %c0_394 = arith.constant 0 : index
    %c0_395 = arith.constant 0 : index
    %449 = vector.load %arg4[%c47, %c0_394, %c0_395] : memref<48x32x32xf32, #tpu.memory_space<vmem>>, vector<1x32x32xf32>
    %450 = vector.shape_cast %449 : vector<1x32x32xf32> to vector<32x32xf32>
    %c0_396 = arith.constant 0 : index
    %c130_397 = arith.constant 130 : index
    %451 = vector.load %arg11[%c0_396, %c130_397] : memref<32x384xf32, #tpu.memory_space<vmem>>, vector<32x128xf32>
    %cst_398 = arith.constant dense<0.000000e+00> : vector<32x128xf32>
    %452 = tpu.matmul %450, %451, %cst_398 {dimension_numbers = #tpu.dot_dimension_numbers<[1], [0], [0], [1], [0, 0, 1, 1], [], []>} : vector<32x32xf32>, vector<32x128xf32>, vector<32x128xf32> -> vector<32x128xf32>
    %453 = arith.addf %448, %452 : vector<32x128xf32>
    %c0_399 = arith.constant 0 : index
    %c33_400 = arith.constant 33 : index
    %454 = vector.load %arg5[%c0_399, %c33_400] : memref<32x36xf32, #tpu.memory_space<vmem>>, vector<32x1xf32>
    %c0_401 = arith.constant 0 : index
    %c34_402 = arith.constant 34 : index
    %455 = vector.load %arg5[%c0_401, %c34_402] : memref<32x36xf32, #tpu.memory_space<vmem>>, vector<32x1xf32>
    %c0_403 = arith.constant 0 : index
    %c35_404 = arith.constant 35 : index
    %456 = vector.load %arg5[%c0_403, %c35_404] : memref<32x36xf32, #tpu.memory_space<vmem>>, vector<32x1xf32>
    %457 = vector.broadcast %454 : vector<32x1xf32> to vector<32x128xf32>
    %458 = arith.addf %453, %457 : vector<32x128xf32>
    %cst_405 = arith.constant 0.000000e+00 : f32
    %459 = vector.broadcast %cst_405 : f32 to vector<32x128xf32>
    %460 = arith.maximumf %458, %459 : vector<32x128xf32>
    %cst_406 = arith.constant 0.000000e+00 : f32
    %461 = vector.shape_cast %5 : vector<1x128xi1> to vector<1x128xi1>
    %462 = vector.broadcast %461 : vector<1x128xi1> to vector<32x128xi1>
    %463 = vector.broadcast %cst_406 : f32 to vector<32x128xf32>
    %464 = arith.select %462, %460, %463 : vector<32x128xi1>, vector<32x128xf32>
    %465 = vector.broadcast %455 : vector<32x1xf32> to vector<32x128xf32>
    %466 = arith.mulf %464, %465 : vector<32x128xf32>
    %467 = vector.broadcast %456 : vector<32x1xf32> to vector<32x128xf32>
    %468 = arith.addf %466, %467 : vector<32x128xf32>
    %c0_407 = arith.constant 0 : index
    %c128_408 = arith.constant 128 : index
    %469 = vector.load %arg11[%c0_407, %c128_408] : memref<32x384xf32, #tpu.memory_space<vmem>>, vector<32x128xf32>
    tpu.vector_store %arg11[%c0_407, %c128_408], %468 {strides = array<i32>} : memref<32x384xf32, #tpu.memory_space<vmem>>, vector<32x128xf32>,
    %c0_409 = arith.constant 0 : index
    %c128_410 = arith.constant 128 : index
    %470 = vector.load %arg11[%c0_409, %c128_410] : memref<32x384xf32, #tpu.memory_space<vmem>>, vector<32x128xf32>
    %c0_411 = arith.constant 0 : index
    %c0_412 = arith.constant 0 : index
    %471 = vector.load %arg8[%c0_411, %c0_412] : memref<16x32xf32, #tpu.memory_space<vmem>>, vector<16x32xf32>
    %cst_413 = arith.constant dense<0.000000e+00> : vector<16x128xf32>
    %472 = tpu.matmul %471, %470, %cst_413 {dimension_numbers = #tpu.dot_dimension_numbers<[1], [0], [0], [1], [0, 0, 1, 1], [], []>} : vector<16x32xf32>, vector<32x128xf32>, vector<16x128xf32> -> vector<16x128xf32>
    %c0_414 = arith.constant 0 : index
    %c0_415 = arith.constant 0 : index
    %473 = vector.load %arg9[%c0_414, %c0_415] : memref<16x1xf32, #tpu.memory_space<vmem>>, vector<16x1xf32>
    %474 = vector.broadcast %473 : vector<16x1xf32> to vector<16x128xf32>
    %475 = arith.addf %472, %474 : vector<16x128xf32>
    %476 = vector.broadcast %16 : vector<1x128xf32> to vector<16x128xf32>
    %477 = arith.mulf %475, %476 : vector<16x128xf32>
    %c0_416 = arith.constant 0 : index
    %c0_417 = arith.constant 0 : index
    %c0_418 = arith.constant 0 : index
    %478 = vector.load %arg10[%c0_416, %c0_417, %c0_418] : memref<1x16x128xf32, #tpu.memory_space<vmem>>, vector<1x16x128xf32>
    %479 = vector.shape_cast %478 : vector<1x16x128xf32> to vector<16x128xf32>
    %480 = vector.shape_cast %477 : vector<16x128xf32> to vector<1x16x128xf32>
    tpu.vector_store %arg10[%c0_416, %c0_417, %c0_418], %480 {strides = array<i32>} : memref<1x16x128xf32, #tpu.memory_space<vmem>>, vector<1x16x128xf32>,
    return
  }
  func.func @transform_0(%arg0: i32) -> (i32, i32, i32) {
    %c0_i32 = arith.constant 0 : i32
    %c0_i32_0 = arith.constant 0 : i32
    %c0_i32_1 = arith.constant 0 : i32
    return %arg0, %c0_i32, %c0_i32_0 : i32, i32, i32
  }
  func.func @transform_1(%arg0: i32) -> (i32, i32, i32) {
    %c0_i32 = arith.constant 0 : i32
    %c0_i32_0 = arith.constant 0 : i32
    %c0_i32_1 = arith.constant 0 : i32
    return %arg0, %c0_i32, %c0_i32_0 : i32, i32, i32
  }
  func.func @transform_2(%arg0: i32) -> (i32, i32) {
    %c0_i32 = arith.constant 0 : i32
    %c0_i32_0 = arith.constant 0 : i32
    %c0_i32_1 = arith.constant 0 : i32
    return %c0_i32, %c0_i32_0 : i32, i32
  }
  func.func @transform_3(%arg0: i32) -> (i32, i32, i32) {
    %c0_i32 = arith.constant 0 : i32
    %c0_i32_0 = arith.constant 0 : i32
    %c0_i32_1 = arith.constant 0 : i32
    %c0_i32_2 = arith.constant 0 : i32
    return %c0_i32, %c0_i32_0, %c0_i32_1 : i32, i32, i32
  }
  func.func @transform_4(%arg0: i32) -> (i32, i32) {
    %c0_i32 = arith.constant 0 : i32
    %c0_i32_0 = arith.constant 0 : i32
    %c0_i32_1 = arith.constant 0 : i32
    return %c0_i32, %c0_i32_0 : i32, i32
  }
  func.func @transform_5(%arg0: i32) -> (i32, i32) {
    %c0_i32 = arith.constant 0 : i32
    %c0_i32_0 = arith.constant 0 : i32
    %c0_i32_1 = arith.constant 0 : i32
    return %c0_i32, %c0_i32_0 : i32, i32
  }
  func.func @transform_6(%arg0: i32) -> (i32, i32) {
    %c0_i32 = arith.constant 0 : i32
    %c0_i32_0 = arith.constant 0 : i32
    %c0_i32_1 = arith.constant 0 : i32
    return %c0_i32, %c0_i32_0 : i32, i32
  }
  func.func @transform_7(%arg0: i32) -> (i32, i32) {
    %c0_i32 = arith.constant 0 : i32
    %c0_i32_0 = arith.constant 0 : i32
    %c0_i32_1 = arith.constant 0 : i32
    return %c0_i32, %c0_i32_0 : i32, i32
  }
  func.func @transform_8(%arg0: i32) -> (i32, i32) {
    %c0_i32 = arith.constant 0 : i32
    %c0_i32_0 = arith.constant 0 : i32
    %c0_i32_1 = arith.constant 0 : i32
    return %c0_i32, %c0_i32_0 : i32, i32
  }
  func.func @transform_9(%arg0: i32) -> (i32, i32, i32) {
    %c0_i32 = arith.constant 0 : i32
    %c0_i32_0 = arith.constant 0 : i32
    %c0_i32_1 = arith.constant 0 : i32
    return %arg0, %c0_i32, %c0_i32_0 : i32, i32, i32
  }
}

</mosaic_0001>

<bundles_post_ra>
// kernel: tpu_custom_call.1
= control target key start
LH: loop header
LB: loop body
LE: loop exit
PB: predicated region body
PF: predicated region fallthrough
CT: control target
= control target key end

     0   :  { %s13240_s0 = inlined_call_operand.vmem [shape: f32[2,32,128], index: 0, kind: input, shape index: {}]   ;;  %s13241_s1 = inlined_call_operand.vmem [shape: f32[2,1,128], index: 1, kind: input, shape index: {}]   ;;  %s13242_s2 = inlined_call_operand.vmem [shape: f32[4,128], index: 2, kind: input, shape index: {}]   ;;  %s13243_s3 = inlined_call_operand.vmem [shape: f32[48,32,32], index: 3, kind: input, shape index: {}]   ;;  %s13244_s4 = inlined_call_operand.vmem [shape: f32[32,36], index: 4, kind: input, shape index: {}]   ;;  %s13245_s5 = inlined_call_operand.vmem [shape: f32[32,32], index: 5, kind: input, shape index: {}]   ;;  %s13246_s6 = inlined_call_operand.vmem [shape: f32[32,1], index: 6, kind: input, shape index: {}]   ;;  %s13247_s7 = inlined_call_operand.vmem [shape: f32[16,32], index: 7, kind: input, shape index: {}]   ;;  %s13248_s8 = inlined_call_operand.vmem [shape: f32[16,1], index: 8, kind: input, shape index: {}]   ;;  %s13249_s9 = inlined_call_operand.hbm [shape: f32[2,16,128], index: 9, kind: output, shape index: {}]  }
   0x1   :  { %13268 = sst [smem:[#allocation7_spill]] %s13240_s0 }
   0x2   :  { %13269 = sst [smem:[#allocation8_spill]] %s13241_s1 }
   0x3   :  { %13270 = sst [smem:[#allocation9_spill]] %s13242_s2 }
   0x4   :  { %14 = vsyncpa [#allocation5], 0 }
   0x5   :  { %16 = vsyncpa [#allocation5 + $0x1], 0  ;;  %s11406_s30 = smov 0   ;;  %s11408_s10 = smov 0  }
   0x6   :  { %s11410_s11 = smov 0   ;;  %s11412_s12 = smov 0  }
   0x7 LB: > { %s11427_s13 = sadd.s32 4294967295, %s11302_s12   ;;  %s8165_s14 = sadd.s32 4294967294, %s11302_s12   ;;  %s11302_s12 = sphi %s11412_s12, %s13296_s12   ;;  %s11298_s11 = sphi %s11410_s11, %s13295_s11   ;;  %s11294_s10 = sphi %s11408_s10, %s13294_s10   ;;  %s11290_s30 = sphi %s11406_s30, %s13293_s30  }
   0x8   : > { %s11431_s15 = sadd.s32 1, %s11302_s12   ;;  %s228_s16 = sadd.s32 1, %s11298_s11 }
   0x9   : > { %s225_s17 = ssub.s32 %s11302_s12, %s11431_s15  ;;  %p238_p0 = scmp.ne.s32.totalorder %s11298_s11, %s11294_s10 }
   0xa   : > { %p226_p1 = scmp.eq.s32.totalorder %s225_s17, 0  ;;  %p239_p2 = scmp.eq.s32.totalorder %s11427_s13, 1 }
   0xb   : > { %p244_p3 = scmp.ne.s32.totalorder %s11294_s10, %s11290_s30  ;;  %p245_p4 = scmp.eq.s32.totalorder %s8165_s14, 1 }
   0xc   : > { %s11442_s18 = scalar_select %p226_p1, %s11298_s11, %s228_s16  }
   0xd   : > { %p11444_p5 = por %p239_p2, %p238_p0  ;;  %p11448_p6 = por %p245_p4, %p244_p3 }
   0xe   : > { %p8168_p7 = scmp.ge.s32.totalorder %s11302_s12, 1  ;;  %p298_p8 = scmp.lt.s32.totalorder %s11302_s12, 3 }
  0x10   : > { %p299_p9 = pnand %p8168_p7, %p298_p8 }
  0x11   : > { %p337_p10 = scmp.lt.s32.totalorder (!%p299_p9), %s11427_s13, 1  ;;  %v8173_v0 = vld [vmem:[%s13243_s3 + $0x20] sm:$0xff] (!%p299_p9)  ;;  %vm405_vm0 = vcmask (!%p299_p9), 261120   ;;  %s13273_s1 = sld [smem:[#allocation8_spill]] (!%p299_p9)  ;;  %v11304_v10 = vmov (!%p299_p9), 0.0   ;;  %v8174_v21 = vld [vmem:[%s13243_s3 + $0x28] sm:$0xff] (!%p299_p9) }
  0x12   : > { %302 = sbr.rel (%p299_p9) target bundleno = 4979 (0x1373), region = 56  ;;  %8972 = vmatprep.mubr.msk.f32.mxu0 (!%p299_p9), %vm405_vm0, %v8173_v0  ;;  %s13274_s0 = sld [smem:[#allocation7_spill]] (!%p299_p9)  ;;  %v8175_v22 = vld [vmem:[%s13243_s3 + $0x30] sm:$0xff] (!%p299_p9)  ;;  %v8176_v23 = vld [vmem:[%s13243_s3 + $0x38] sm:$0xff] (!%p299_p9)  ;;  %v388_v24 = vld [vmem:[%s13243_s3] sm:$0xff] (!%p299_p9)  ;;  %v11308_v26 = vmov (!%p299_p9), 0  }
  0x13   : > { %s13256_s16 = smov (!%p299_p9), 1   ;;  %s13254_s17 = smov (!%p299_p9), 127   ;;  %v11534_v25 = vld [vmem:[%s13244_s4 + $0x8] sm:$0xff] (!%p299_p9)  ;;  %10356 = vset.pattern.permute.xlu1 (!%p299_p9), %v11308_v26  ;;  %10355 = vset.pattern.permute.xlu0 (!%p299_p9), %v11308_v26  ;;  %v11541_v27 = vld [vmem:[%s13244_s4] sm:$0xff] (!%p299_p9)  ;;  %v11548_v28 = vld [vmem:[%s13244_s4 + $0x10] sm:$0xff] (!%p299_p9)  ;;  %v11309_v30 = vmov (!%p299_p9), 1  }
  0x14   : > { %v11553_v29 = vld [vmem:[%s13244_s4 + $0x18] sm:$0xff] (!%p299_p9)  ;;  %v11310_v31 = vmov (!%p299_p9), 2   ;;  %vm527_vm1 = vcmask (!%p299_p9), 7168   ;;  %vm670_vm2 = vcmask (!%p299_p9), 1039360   ;;  %vm801_vm3 = vcmask (!%p299_p9), 1031168   ;;  %s13275_s2 = sld [smem:[#allocation9_spill]] (!%p299_p9) }
  0x15   : > { %s13278_s26 = smov (!%p299_p9), 126   ;;  %s11314_s23 = smov (!%p299_p9), 3   ;;  %vm1776_vm6 = vcmask (!%p299_p9), 23552   ;;  %vm2049_vm7 = vcmask (!%p299_p9), 1022976   ;;  %vm2927_vm10 = vcmask (!%p299_p9), 15360   ;;  %vm3049_vm11 = vcmask (!%p299_p9), 48128  }
  0x16   : > { %s13282_s25 = smov (!%p299_p9), 125   ;;  %s11322_s22 = smov (!%p299_p9), 2   ;;  %vm3322_vm12 = vcmask (!%p299_p9), 998400   ;;  %vm4200_vm15 = vcmask (!%p299_p9), 31744  }
  0x17   : > { %s13285_s28 = smov (!%p299_p9), 6   ;;  %s13266_s29 = smov (!%p299_p9), 116  }
  0x19   : > { %s338_s21 = scalar_select %p337_p10, %s11427_s13, 1 }
  0x1b   : > { %s8564_s24 = sshll.u32 %s338_s21, 5  ;;  %s11463_s27 = scalar_lea.vmem %s13273_s1, %s338_s21 }
  0x1c   : > { %s11468_s14 = scalar_lea.vmem %s13274_s0, %s8564_s24  ;;  %v8172_v1 = vld [vmem:[%s11463_s27] ss:$0 sm:$0xff]  ;;  %s13250_s21 = smov 126  }
  0x1d   : > { %v364_v2 = vld [vmem:[%s11468_s14 + $0x10] sm:$0xff]  ;;  %v362_v3 = vld [vmem:[%s11468_s14] sm:$0xff]  ;;  %v365_v4 = vld [vmem:[%s11468_s14 + $0x18] sm:$0xff]  ;;  %s13252_s24 = smov 125  }
  0x1e   : > { %v11474_v5 = vmul.f32 %v8172_v1, %v364_v2  ;;  %v11476_v6 = vmul.f32 %v8172_v1, %v362_v3  ;;  %v11478_v7 = vmul.f32 %v8172_v1, %v365_v4  ;;  %v363_v8 = vld [vmem:[%s11468_s14 + $0x8] sm:$0xff] }
  0x1f   : > { %v11481_v9 = vmul.f32 %v8172_v1, %v363_v8  ;;  %v389_v1 = vld [vmem:[%s13243_s3 + $0x8] sm:$0xff] }
  0x20   : > { %v10305_v11 = vpack.i.bf16 %v11474_v5, %v11304_v10  ;;  %v10295_v12 = vpack.i.bf16 %v11476_v6, %v11304_v10  ;;  %v10310_v13 = vpack.i.bf16 %v11478_v7, %v11304_v10  ;;  %v9665_v16 = vpack.c.bf16 %v11478_v7, %v11474_v5 }
  0x21   : > { %v10300_v14 = vpack.i.bf16 %v11481_v9, %v11304_v10  ;;  %v9661_v15 = vpack.c.bf16 %v11481_v9, %v11476_v6  ;;  %v10320_v17 = vpack.i.bf16 %v11304_v10, %v11481_v9  ;;  %v10315_v18 = vpack.i.bf16 %v11304_v10, %v11476_v6 }
  0x22   : > { %10306 = vrot.lane.b32.xlu1 %v10305_v11, %s13256_s16  ;;  %10296 = vrot.lane.b32.xlu0 %v10295_v12, %s13256_s16  ;;  %v10330_v19 = vpack.i.bf16 %v11304_v10, %v11478_v7  ;;  %v10325_v20 = vpack.i.bf16 %v11304_v10, %v11474_v5  ;;  %v390_v11 = vld [vmem:[%s13243_s3 + $0x10] sm:$0xff] }
  0x23   : > { %9662 = vmatprep.subr.bf16.mxu0 %v9661_v15 }
  0x24   : > { %9664 = vmatpush3.bf16.msra.mxu0 %v9661_v15 }
  0x25   : > { %9666 = vmatprep.subr.bf16.mxu0 %v9665_v16 }
  0x26   : > { %10311 = vrot.lane.b32.xlu1 %v10310_v13, %s13256_s16  ;;  %10301 = vrot.lane.b32.xlu0 %v10300_v14, %s13256_s16 }
  0x28   : > { %9668 = vmatpush3.bf16.msra.mxu0 %v9665_v16 }
  0x2a   : > { %10321 = vrot.lane.b32.xlu1 %v10320_v17, %s13254_s17  ;;  %10316 = vrot.lane.b32.xlu0 %v10315_v18, %s13254_s17 }
  0x2b   : > { %8973 = vmatmul.mubr.msk.f32.vlgmr.msra.gmra.mrb[0].mxu0 %vm405_vm0, %v8174_v21 }
  0x2c   : > { %8975 = vmatprep.mubr.msk.f32.mxu0 %vm405_vm0, %v8175_v22  ;;  %v8185_v22 = vld [vmem:[%s13243_s3 + $0x40] sm:$0xff] }
  0x2e   : > { %10331 = vrot.lane.b32.xlu1 %v10330_v19, %s13254_s17  ;;  %10326 = vrot.lane.b32.xlu0 %v10325_v20, %s13254_s17 }
  0x2f   : > { %8976 = vmatmul.mubr.msk.f32.gmra.mrb[2].mxu0 %vm405_vm0, %v8176_v23 }
  0x30   : > { %8986 = vmatprep.mubr.msk.f32.mxu0 %vm405_vm0, %v388_v24 }
  0x32   : > { %10341 = vrot.lane.b32.xlu1 %v10320_v17, %s13250_s21  ;;  %10336 = vrot.lane.b32.xlu0 %v10315_v18, %s13250_s21  ;;  %v391_v17 = vld [vmem:[%s13243_s3 + $0x18] sm:$0xff] }
  0x36   : > { %10351 = vrot.lane.b32.xlu1 %v10330_v19, %s13250_s21  ;;  %10346 = vrot.lane.b32.xlu0 %v10325_v20, %s13250_s21  ;;  %s13281_s21 = smov 127  }
  0x3a   : > { %922 = vperm.xlu1 %10356, %v11534_v25   ;;  %917 = vperm.xlu0 %10355, %v11541_v27  }
  0x3e   : > { %927 = vperm.xlu1 %10356, %v11548_v28   ;;  %932 = vperm.xlu0 %10355, %v11553_v29  }
  0x42   : > { %10357 = vset.pattern.permute.xlu1 %v11309_v30  ;;  %10358 = vset.pattern.permute.xlu0 %v11309_v30 }
  0x43   : > { %954 = vperm.xlu1 %10357, %v11541_v27   ;;  %958 = vperm.xlu0 %10358, %v11534_v25  }
  0x47   : > { %10359 = vset.pattern.permute.xlu1 %v11310_v31  ;;  %962 = vperm.xlu0 %10358, %v11548_v28  }
  0x48   : > { %974 = vperm.xlu1 %10359, %v11541_v27  }
  0x4b   : > { %10361 = vset.pattern.permute.xlu0 %v11310_v31 }
  0x4c   : > { %978 = vperm.xlu1 %10359, %v11534_v25   ;;  %982 = vperm.xlu0 %10361, %v11548_v28  }
  0x50   : > { %10360 = vset.pattern.permute.xlu1 %v11309_v30 }
  0x51   : > { %966 = vperm.xlu1 %10360, %v11553_v29  }
  0x55   : > { %10362 = vset.pattern.permute.xlu1 %v11310_v31 }
  0x56   : > { %986 = vperm.xlu1 %10362, %v11553_v29  }
  0x94   : > { %v10307_v32 = vpop.permute.xlu1 %10306  ;;  %v10297_v33 = vpop.permute.xlu0 %10296 }
  0x95   : > { %v10309_v34 = vunpack.i.h.bf16 %v10307_v32  ;;  %v10308_v35 = vunpack.i.l.bf16 %v10307_v32  ;;  %v10299_v36 = vunpack.i.h.bf16 %v10297_v33  ;;  %v10298_v37 = vunpack.i.l.bf16 %v10297_v33  ;;  %v8186_v33 = vld [vmem:[%s13243_s3 + $0x48] sm:$0xff] }
  0x97   : > { %v528_v44 = vsel %vm527_vm1, %v10298_v37, %v10299_v36  ;;  %v530_v46 = vsel %vm527_vm1, %v10308_v35, %v10309_v34  ;;  %v8187_v36 = vld [vmem:[%s13243_s3 + $0x50] sm:$0xff] }
  0x98   : > { %v10312_v38 = vpop.permute.xlu1 %10311  ;;  %v10302_v39 = vpop.permute.xlu0 %10301 }
  0x99   : > { %v10314_v40 = vunpack.i.h.bf16 %v10312_v38  ;;  %v10313_v41 = vunpack.i.l.bf16 %v10312_v38  ;;  %v10304_v42 = vunpack.i.h.bf16 %v10302_v39  ;;  %v10303_v43 = vunpack.i.l.bf16 %v10302_v39  ;;  %v8188_v38 = vld [vmem:[%s13243_s3 + $0x58] sm:$0xff]  ;;  %v8193_v39 = vld [vmem:[%s13243_s3 + $0x60] sm:$0xff] }
  0x9b   : > { %v529_v45 = vsel %vm527_vm1, %v10303_v43, %v10304_v42  ;;  %v531_v47 = vsel %vm527_vm1, %v10313_v41, %v10314_v40  ;;  %v8194_v40 = vld [vmem:[%s13243_s3 + $0x68] sm:$0xff]  ;;  %v8195_v41 = vld [vmem:[%s13243_s3 + $0x70] sm:$0xff]  ;;  %v8196_v42 = vld [vmem:[%s13243_s3 + $0x78] sm:$0xff] }
  0x9c   : > { %v9669_v48 = vpack.c.bf16 %v529_v45, %v528_v44  ;;  %v10322_v49 = vpop.permute.xlu1 %10321  ;;  %v10317_v50 = vpop.permute.xlu0 %10316  ;;  %v9673_v55 = vpack.c.bf16 %v531_v47, %v530_v46  ;;  %v944_v45 = vlaneseq }
  0x9d   : > { %v10324_v51 = vunpack.i.h.bf16 %v10322_v49  ;;  %v10323_v52 = vunpack.i.l.bf16 %v10322_v49  ;;  %v10319_v53 = vunpack.i.h.bf16 %v10317_v50  ;;  %v10318_v54 = vunpack.i.l.bf16 %v10317_v50 }
  0x9e   : > { %9670 = vmatprep.subr.bf16.mxu0 %v9669_v48  ;;  %v945_v49 = vshrl.u32 %v944_v45, 7 }
  0x9f   : > { %9672 = vmatpush3.bf16.msra.mxu0 %v9669_v48  ;;  %v671_v56 = vsel %vm670_vm2, %v10318_v54, %v10319_v53  ;;  %v672_v57 = vsel %vm670_vm2, %v10323_v52, %v10324_v51  ;;  %v353_v48 = vld [vmem:[%s13275_s2] sm:$0x1] }
  0xa0   : > { %9674 = vmatprep.subr.bf16.mxu0 %v9673_v55  ;;  %v10332_v58 = vpop.permute.xlu1 %10331  ;;  %v10327_v59 = vpop.permute.xlu0 %10326  ;;  %v9677_v60 = vpack.c.bf16 %v672_v57, %v671_v56  ;;  %vm354_vm4 = vcmp.gt.f32.partialorder %v353_v48, 0.0  ;;  %v11624_v51 = vsub.s32 0, %v945_v49  ;;  %v11312_v48 = vmov 4  }
  0xa1   : > { %v10334_v61 = vunpack.i.h.bf16 %v10332_v58  ;;  %v10333_v62 = vunpack.i.l.bf16 %v10332_v58  ;;  %v10329_v63 = vunpack.i.h.bf16 %v10327_v59  ;;  %v10328_v0 = vunpack.i.l.bf16 %v10327_v59 }
  0xa2   : > { %v943_v53 = vsel %vm354_vm4, 1, %v11308_v26  ;;  %v11313_v49 = vmov 5   ;;  %vm4322_vm4 = vcmask 97280  }
  0xa3   : > { %9676 = vmatpush3.bf16.msra.mxu0 %v9673_v55  ;;  %v673_v2 = vsel %vm670_vm2, %v10328_v0, %v10329_v63  ;;  %v674_v3 = vsel %vm670_vm2, %v10333_v62, %v10334_v61  ;;  %v947_v54 = vrot.slane %v943_v53, %v11624_v51  ;;  %v8205_v0 = vld [vmem:[%s13243_s3 + $0xa0] sm:$0xff] }
  0xa4   : > { %9678 = vmatprep.subr.bf16.mxu0 %v9677_v60  ;;  %v10342_v4 = vpop.permute.xlu1 %10341  ;;  %v10337_v8 = vpop.permute.xlu0 %10336  ;;  %v9681_v12 = vpack.c.bf16 %v674_v3, %v673_v2  ;;  %9028 = vmatprep.mubr.msk.f32.mxu1 %vm405_vm0, %v8205_v0 }
  0xa5   : > { %v10344_v13 = vunpack.i.h.bf16 %v10342_v4  ;;  %v10343_v14 = vunpack.i.l.bf16 %v10342_v4  ;;  %v10339_v15 = vunpack.i.h.bf16 %v10337_v8  ;;  %v10338_v16 = vunpack.i.l.bf16 %v10337_v8 }
  0xa6   : > { %8987 = vmatmul.mubr.msk.f32.vlgmr.msra.gmra.mrb[0].mxu0 %vm405_vm0, %v389_v1  ;;  %vm11628_vm5 = vcmp.eq.s32.totalorder %v947_v54, 1 }
  0xa7   : > { %9680 = vmatpush3.bf16.msra.mxu0 %v9677_v60  ;;  %8989 = vmatprep.mubr.msk.f32.mxu0 %vm405_vm0, %v390_v11  ;;  %v802_v18 = vsel %vm801_vm3, %v10338_v16, %v10339_v15  ;;  %v803_v19 = vsel %vm801_vm3, %v10343_v14, %v10344_v13 }
  0xa8   : > { %9682 = vmatprep.subr.bf16.mxu0 %v9681_v12  ;;  %v10352_v20 = vpop.permute.xlu1 %10351  ;;  %v10347_v21 = vpop.permute.xlu0 %10346  ;;  %v9685_v23 = vpack.c.bf16 %v803_v19, %v802_v18 }
  0xa9   : > { %v10354_v24 = vunpack.i.h.bf16 %v10352_v20  ;;  %v10353_v30 = vunpack.i.l.bf16 %v10352_v20  ;;  %v10349_v31 = vunpack.i.h.bf16 %v10347_v21  ;;  %v10348_v32 = vunpack.i.l.bf16 %v10347_v21 }
  0xaa   : > { %8990 = vmatmul.mubr.msk.f32.gmra.mrb[2].mxu0 %vm405_vm0, %v391_v17 }
  0xab   : > { %9684 = vmatpush3.bf16.msra.mxu0 %v9681_v12  ;;  %9000 = vmatprep.mubr.msk.f32.mxu0 %vm405_vm0, %v8185_v22  ;;  %v804_v34 = vsel %vm801_vm3, %v10348_v32, %v10349_v31  ;;  %v805_v35 = vsel %vm801_vm3, %v10353_v30, %v10354_v24 }
  0xac   : > { %9686 = vmatprep.subr.bf16.mxu0 %v9685_v23  ;;  %v9689_v37 = vpack.c.bf16 %v805_v35, %v804_v34 }
  0xae   : > { %9001 = vmatmul.mubr.msk.f32.vlgmr.msra.gmra.mrb[0].mxu0 %vm405_vm0, %v8186_v33 }
  0xaf   : > { %9688 = vmatpush3.bf16.msra.mxu0 %v9685_v23  ;;  %9003 = vmatprep.mubr.msk.f32.mxu0 %vm405_vm0, %v8187_v36 }
  0xb0   : > { %9690 = vmatprep.subr.bf16.mxu0 %v9689_v37 }
  0xb2   : > { %9004 = vmatmul.mubr.msk.f32.gmra.mrb[2].mxu0 %vm405_vm0, %v8188_v38 }
  0xb3   : > { %9692 = vmatpush3.bf16.msra.mxu0 %v9689_v37  ;;  %9014 = vmatprep.mubr.msk.f32.mxu0 %vm405_vm0, %v8193_v39 }
  0xb6   : > { %9015 = vmatmul.mubr.msk.f32.vlgmr.msra.gmra.mrb[0].mxu0 %vm405_vm0, %v8194_v40  ;;  %v8206_v40 = vld [vmem:[%s13243_s3 + $0xa8] sm:$0xff] }
  0xb7   : > { %9017 = vmatprep.mubr.msk.f32.mxu0 %vm405_vm0, %v8195_v41 }
  0xb9   : > { %v923_v43 = vpop.permute.xlu1 %922  ;;  %v918_v47 = vpop.permute.xlu0 %917 }
  0xba   : > { %9018 = vmatmul.mubr.msk.f32.gmra.mrb[2].mxu0 %vm405_vm0, %v8196_v42  ;;  %v8207_v42 = vld [vmem:[%s13243_s3 + $0xb0] sm:$0xff] }
  0xbd   : > { %v928_v44 = vpop.permute.xlu1 %927  ;;  %v933_v52 = vpop.permute.xlu0 %932 }
  0xc2   : > { %v955_v46 = vpop.permute.xlu1 %954  ;;  %v959_v56 = vpop.permute.xlu0 %958 }
  0xc6   : > { %v963_v13 = vpop.permute.xlu0 %962 }
  0xc7   : > { %v975_v50 = vpop.permute.xlu1 %974 }
  0xcb   : > { %v979_v55 = vpop.permute.xlu1 %978  ;;  %v983_v24 = vpop.permute.xlu0 %982 }
  0xd0   : > { %v967_v63 = vpop.permute.xlu1 %966 }
  0xd5   : > { %v987_v21 = vpop.permute.xlu1 %986 }
 0x189   : > { %v9016_v57 = vpop.f32.mrb[0].mxu0 }
 0x18a   : > { %v936_v58 = vadd.f32 %v9016_v57, %v923_v43  ;;  %v888_v59 = vpop.f32.mrb[1].mxu0 }
 0x18b   : > { %v935_v61 = vadd.f32 %v918_v47, %v888_v59  ;;  %v11311_v47 = vmov 3  }
 0x18c   : > { %v940_v62 = vmax.f32 %v936_v58, 0.0  ;;  %10423 = vset.pattern.permute.xlu1 %v11311_v47  ;;  %10424 = vset.pattern.permute.xlu0 %v11311_v47 }
 0x18d   : > { %v939_v1 = vmax.f32 %v935_v61, 0.0  ;;  %v9019_v2 = vpop.f32.mrb[2].mxu0 }
 0x18e   : > { %v950_v3 = vsel %vm11628_vm5, %v940_v62, 0.0  ;;  %v938_v4 = vadd.f32 %v9019_v2, %v933_v52  ;;  %v898_v8 = vpop.f32.mrb[3].mxu0 }
 0x18f   : > { %v970_v11 = vmul.f32 %v959_v56, %v950_v3  ;;  %v949_v12 = vsel %vm11628_vm5, %v939_v1, 0.0  ;;  %v937_v14 = vadd.f32 %v928_v44, %v898_v8  ;;  %v8208_v44 = vld [vmem:[%s13243_s3 + $0xb8] sm:$0xff] }
 0x190   : > { %v969_v15 = vmul.f32 %v955_v46, %v949_v12  ;;  %v942_v16 = vmax.f32 %v938_v4, 0.0  ;;  %v8201_v46 = vld [vmem:[%s13243_s3 + $0x80] sm:$0xff] }
 0x191   : > { %v990_v17 = vadd.f32 %v979_v55, %v970_v11  ;;  %v941_v18 = vmax.f32 %v937_v14, 0.0 }
 0x192   : > { %v989_v19 = vadd.f32 %v975_v50, %v969_v15  ;;  %v952_v20 = vsel %vm11628_vm5, %v942_v16, 0.0 }
 0x193   : > { %v951_v22 = vsel %vm11628_vm5, %v941_v18, 0.0  ;;  %v972_v23 = vmul.f32 %v967_v63, %v952_v20  ;;  %v10363_v30 = vpack.i.bf16 %v990_v17, %v11304_v10  ;;  %v10388_v39 = vpack.i.bf16 %v11304_v10, %v990_v17 }
 0x194   : > { %v971_v31 = vmul.f32 %v963_v13, %v951_v22  ;;  %v10368_v32 = vpack.i.bf16 %v989_v19, %v11304_v10  ;;  %v9693_v33 = vpack.c.bf16 %v990_v17, %v989_v19  ;;  %v10383_v41 = vpack.i.bf16 %v11304_v10, %v989_v19  ;;  %v8202_v19 = vld [vmem:[%s13243_s3 + $0x88] sm:$0xff] }
 0x195   : > { %v992_v34 = vadd.f32 %v987_v21, %v972_v23  ;;  %10364 = vrot.lane.b32.xlu0 %v10363_v30, %s13256_s16  ;;  %v8203_v30 = vld [vmem:[%s13243_s3 + $0x90] sm:$0xff] }
 0x196   : > { %v991_v35 = vadd.f32 %v983_v24, %v971_v31  ;;  %10369 = vrot.lane.b32.xlu1 %v10368_v32, %s13256_s16  ;;  %9694 = vmatprep.subr.bf16.mxu1 %v9693_v33 }
 0x197   : > { %9696 = vmatpush3.bf16.msra.mxu1 %v9693_v33  ;;  %v10373_v36 = vpack.i.bf16 %v992_v34, %v11304_v10  ;;  %v10393_v43 = vpack.i.bf16 %v11304_v10, %v992_v34 }
 0x198   : > { %v10378_v37 = vpack.i.bf16 %v991_v35, %v11304_v10  ;;  %v9697_v38 = vpack.c.bf16 %v992_v34, %v991_v35  ;;  %v10398_v45 = vpack.i.bf16 %v11304_v10, %v991_v35  ;;  %v8204_v35 = vld [vmem:[%s13243_s3 + $0x98] sm:$0xff] }
 0x199   : > { %10374 = vrot.lane.b32.xlu0 %v10373_v36, %s13256_s16 }
 0x19a   : > { %10379 = vrot.lane.b32.xlu1 %v10378_v37, %s13256_s16  ;;  %9698 = vmatprep.subr.bf16.mxu1 %v9697_v38 }
 0x19b   : > { %9700 = vmatpush3.bf16.msra.mxu1 %v9697_v38 }
 0x19d   : > { %10389 = vrot.lane.b32.xlu0 %v10388_v39, %s13254_s17 }
 0x19e   : > { %10384 = vrot.lane.b32.xlu1 %v10383_v41, %s13254_s17  ;;  %9029 = vmatmul.mubr.msk.f32.vlgmr.msra.gmra.mrb[0].mxu1 %vm405_vm0, %v8206_v40 }
 0x19f   : > { %9031 = vmatprep.mubr.msk.f32.mxu1 %vm405_vm0, %v8207_v42 }
 0x1a1   : > { %10394 = vrot.lane.b32.xlu0 %v10393_v43, %s13254_s17 }
 0x1a2   : > { %10399 = vrot.lane.b32.xlu1 %v10398_v45, %s13254_s17  ;;  %9032 = vmatmul.mubr.msk.f32.gmra.mrb[2].mxu1 %vm405_vm0, %v8208_v44 }
 0x1a3   : > { %9042 = vmatprep.mubr.msk.f32.mxu1 %vm405_vm0, %v8201_v46  ;;  %v8218_v46 = vld [vmem:[%s13243_s3 + $0xc8] sm:$0xff] }
 0x1a5   : > { %10409 = vrot.lane.b32.xlu0 %v10388_v39, %s13278_s26 }
 0x1a6   : > { %10404 = vrot.lane.b32.xlu1 %v10383_v41, %s13278_s26  ;;  %v8217_v41 = vld [vmem:[%s13243_s3 + $0xc0] sm:$0xff] }
 0x1a9   : > { %10419 = vrot.lane.b32.xlu0 %v10393_v43, %s13278_s26 }
 0x1aa   : > { %10414 = vrot.lane.b32.xlu1 %v10398_v45, %s13278_s26 }
 0x1ad   : > { %1528 = vperm.xlu0 %10424, %v11534_v25  }
 0x1ae   : > { %1523 = vperm.xlu1 %10423, %v11541_v27  }
 0x1b1   : > { %10425 = vset.pattern.permute.xlu0 %v11312_v48 }
 0x1b2   : > { %1533 = vperm.xlu1 %10423, %v11548_v28   ;;  %1554 = vperm.xlu0 %10425, %v11541_v27  }
 0x1b6   : > { %1538 = vperm.xlu1 %10423, %v11553_v29   ;;  %10428 = vset.pattern.permute.xlu0 %v11313_v49 }
 0x1b7   : > { %1578 = vperm.xlu0 %10428, %v11534_v25  }
 0x1ba   : > { %10426 = vset.pattern.permute.xlu1 %v11312_v48 }
 0x1bb   : > { %1558 = vperm.xlu1 %10426, %v11534_v25   ;;  %1582 = vperm.xlu0 %10428, %v11548_v28  }
 0x1bf   : > { %10427 = vset.pattern.permute.xlu1 %v11313_v49 }
 0x1c0   : > { %1574 = vperm.xlu1 %10427, %v11541_v27  }
 0x1c4   : > { %10429 = vset.pattern.permute.xlu1 %v11312_v48 }
 0x1c5   : > { %1562 = vperm.xlu1 %10429, %v11548_v28  }
 0x1c9   : > { %1566 = vperm.xlu1 %10429, %v11553_v29  }
 0x1cd   : > { %10430 = vset.pattern.permute.xlu1 %v11313_v49 }
 0x1ce   : > { %1586 = vperm.xlu1 %10430, %v11553_v29  }
 0x207   : > { %v10365_v50 = vpop.permute.xlu0 %10364 }
 0x208   : > { %v10367_v52 = vunpack.i.h.bf16 %v10365_v50  ;;  %v10366_v53 = vunpack.i.l.bf16 %v10365_v50  ;;  %v10370_v54 = vpop.permute.xlu1 %10369 }
 0x209   : > { %v10372_v55 = vunpack.i.h.bf16 %v10370_v54  ;;  %v10371_v56 = vunpack.i.l.bf16 %v10370_v54 }
 0x20a   : > { %v1137_v57 = vsel %vm527_vm1, %v10366_v53, %v10367_v52  ;;  %v8219_v53 = vld [vmem:[%s13243_s3 + $0xd0] sm:$0xff] }
 0x20b   : > { %v10375_v58 = vpop.permute.xlu0 %10374  ;;  %v1136_v59 = vsel %vm527_vm1, %v10371_v56, %v10372_v55 }
 0x20c   : > { %v10377_v61 = vunpack.i.h.bf16 %v10375_v58  ;;  %v10376_v62 = vunpack.i.l.bf16 %v10375_v58  ;;  %v10380_v63 = vpop.permute.xlu1 %10379  ;;  %v9701_v0 = vpack.c.bf16 %v1137_v57, %v1136_v59  ;;  %v8220_v57 = vld [vmem:[%s13243_s3 + $0xd8] sm:$0xff] }
 0x20d   : > { %v10382_v1 = vunpack.i.h.bf16 %v10380_v63  ;;  %v10381_v2 = vunpack.i.l.bf16 %v10380_v63  ;;  %v8227_v63 = vld [vmem:[%s13243_s3 + $0xf0] sm:$0xff] }
 0x20e   : > { %9702 = vmatprep.subr.bf16.mxu1 %v9701_v0  ;;  %v1139_v3 = vsel %vm527_vm1, %v10376_v62, %v10377_v61  ;;  %v8225_v61 = vld [vmem:[%s13243_s3 + $0xe0] sm:$0xff]  ;;  %v8226_v62 = vld [vmem:[%s13243_s3 + $0xe8] sm:$0xff] }
 0x20f   : > { %v10390_v4 = vpop.permute.xlu0 %10389  ;;  %9704 = vmatpush3.bf16.msra.mxu1 %v9701_v0  ;;  %v1138_v8 = vsel %vm527_vm1, %v10381_v2, %v10382_v1  ;;  %v8228_v0 = vld [vmem:[%s13243_s3 + $0xf8] sm:$0xff] }
 0x210   : > { %v10392_v11 = vunpack.i.h.bf16 %v10390_v4  ;;  %v10391_v12 = vunpack.i.l.bf16 %v10390_v4  ;;  %v10385_v13 = vpop.permute.xlu1 %10384  ;;  %v9705_v14 = vpack.c.bf16 %v1139_v3, %v1138_v8 }
 0x211   : > { %v10387_v15 = vunpack.i.h.bf16 %v10385_v13  ;;  %v10386_v16 = vunpack.i.l.bf16 %v10385_v13 }
 0x212   : > { %9706 = vmatprep.subr.bf16.mxu1 %v9705_v14  ;;  %v1279_v17 = vsel %vm670_vm2, %v10391_v12, %v10392_v11 }
 0x213   : > { %v10395_v18 = vpop.permute.xlu0 %10394  ;;  %9708 = vmatpush3.bf16.msra.mxu1 %v9705_v14  ;;  %v1278_v20 = vsel %vm670_vm2, %v10386_v16, %v10387_v15 }
 0x214   : > { %v10397_v21 = vunpack.i.h.bf16 %v10395_v18  ;;  %v10396_v22 = vunpack.i.l.bf16 %v10395_v18  ;;  %v10400_v23 = vpop.permute.xlu1 %10399  ;;  %v9709_v24 = vpack.c.bf16 %v1279_v17, %v1278_v20 }
 0x215   : > { %v10402_v31 = vunpack.i.h.bf16 %v10400_v23  ;;  %v10401_v32 = vunpack.i.l.bf16 %v10400_v23 }
 0x216   : > { %9043 = vmatmul.mubr.msk.f32.vlgmr.msra.gmra.mrb[0].mxu1 %vm405_vm0, %v8202_v19  ;;  %9710 = vmatprep.subr.bf16.mxu1 %v9709_v24  ;;  %v1281_v33 = vsel %vm670_vm2, %v10396_v22, %v10397_v21 }
 0x217   : > { %v10410_v34 = vpop.permute.xlu0 %10409  ;;  %9712 = vmatpush3.bf16.msra.mxu1 %v9709_v24  ;;  %9045 = vmatprep.mubr.msk.f32.mxu1 %vm405_vm0, %v8203_v30  ;;  %v1280_v36 = vsel %vm670_vm2, %v10401_v32, %v10402_v31 }
 0x218   : > { %v10412_v37 = vunpack.i.h.bf16 %v10410_v34  ;;  %v10411_v38 = vunpack.i.l.bf16 %v10410_v34  ;;  %v10405_v39 = vpop.permute.xlu1 %10404  ;;  %v9713_v40 = vpack.c.bf16 %v1281_v33, %v1280_v36 }
 0x219   : > { %v10407_v42 = vunpack.i.h.bf16 %v10405_v39  ;;  %v10406_v43 = vunpack.i.l.bf16 %v10405_v39 }
 0x21a   : > { %9046 = vmatmul.mubr.msk.f32.gmra.mrb[2].mxu1 %vm405_vm0, %v8204_v35  ;;  %9714 = vmatprep.subr.bf16.mxu1 %v9713_v40  ;;  %v1409_v44 = vsel %vm801_vm3, %v10411_v38, %v10412_v37 }
 0x21b   : > { %v10420_v45 = vpop.permute.xlu0 %10419  ;;  %9716 = vmatpush3.bf16.msra.mxu1 %v9713_v40  ;;  %9056 = vmatprep.mubr.msk.f32.mxu1 %vm405_vm0, %v8217_v41  ;;  %v1408_v47 = vsel %vm801_vm3, %v10406_v43, %v10407_v42 }
 0x21c   : > { %v10422_v48 = vunpack.i.h.bf16 %v10420_v45  ;;  %v10421_v49 = vunpack.i.l.bf16 %v10420_v45  ;;  %v10415_v50 = vpop.permute.xlu1 %10414  ;;  %v9717_v52 = vpack.c.bf16 %v1409_v44, %v1408_v47 }
 0x21d   : > { %v10417_v54 = vunpack.i.h.bf16 %v10415_v50  ;;  %v10416_v55 = vunpack.i.l.bf16 %v10415_v50 }
 0x21e   : > { %9057 = vmatmul.mubr.msk.f32.vlgmr.msra.gmra.mrb[0].mxu1 %vm405_vm0, %v8218_v46  ;;  %9718 = vmatprep.subr.bf16.mxu1 %v9717_v52  ;;  %v1411_v56 = vsel %vm801_vm3, %v10421_v49, %v10422_v48 }
 0x21f   : > { %9720 = vmatpush3.bf16.msra.mxu1 %v9717_v52  ;;  %9059 = vmatprep.mubr.msk.f32.mxu1 %vm405_vm0, %v8219_v53  ;;  %v1410_v58 = vsel %vm801_vm3, %v10416_v55, %v10417_v54 }
 0x220   : > { %v9721_v59 = vpack.c.bf16 %v1411_v56, %v1410_v58  ;;  %v11317_v58 = vmov 7  }
 0x222   : > { %9060 = vmatmul.mubr.msk.f32.gmra.mrb[2].mxu1 %vm405_vm0, %v8220_v57  ;;  %9722 = vmatprep.subr.bf16.mxu1 %v9721_v59  ;;  %v11316_v57 = vmov 6  }
 0x223   : > { %9724 = vmatpush3.bf16.msra.mxu1 %v9721_v59  ;;  %9070 = vmatprep.mubr.msk.f32.mxu1 %vm405_vm0, %v8225_v61  ;;  %v11318_v59 = vmov 8  }
 0x224   : > { %10512 = vset.pattern.permute.xlu1 %v11316_v57  ;;  %10511 = vset.pattern.permute.xlu0 %v11316_v57 }
 0x226   : > { %9071 = vmatmul.mubr.msk.f32.vlgmr.msra.gmra.mrb[0].mxu1 %vm405_vm0, %v8226_v62 }
 0x227   : > { %9073 = vmatprep.mubr.msk.f32.mxu1 %vm405_vm0, %v8227_v63 }
 0x22a   : > { %9074 = vmatmul.mubr.msk.f32.gmra.mrb[2].mxu1 %vm405_vm0, %v8228_v0 }
 0x22c   : > { %v1529_v11 = vpop.permute.xlu0 %1528 }
 0x22d   : > { %v1524_v1 = vpop.permute.xlu1 %1523 }
 0x231   : > { %v1534_v2 = vpop.permute.xlu1 %1533  ;;  %v1555_v13 = vpop.permute.xlu0 %1554 }
 0x235   : > { %v1539_v3 = vpop.permute.xlu1 %1538 }
 0x236   : > { %v1579_v31 = vpop.permute.xlu0 %1578 }
 0x23a   : > { %v1559_v4 = vpop.permute.xlu1 %1558  ;;  %v1583_v46 = vpop.permute.xlu0 %1582 }
 0x23f   : > { %v1575_v8 = vpop.permute.xlu1 %1574 }
 0x244   : > { %v1563_v12 = vpop.permute.xlu1 %1562 }
 0x248   : > { %v1567_v22 = vpop.permute.xlu1 %1566 }
 0x24d   : > { %v1587_v40 = vpop.permute.xlu1 %1586 }
 0x2f9   : > { %v9072_v14 = vpop.f32.mrb[0].mxu1 }
 0x2fa   : > { %v1542_v15 = vadd.f32 %v9072_v14, %v1529_v11  ;;  %v1494_v16 = vpop.f32.mrb[1].mxu1 }
 0x2fb   : > { %v1541_v17 = vadd.f32 %v1524_v1, %v1494_v16 }
 0x2fc   : > { %v1546_v18 = vmax.f32 %v1542_v15, 0.0 }
 0x2fd   : > { %v1545_v19 = vmax.f32 %v1541_v17, 0.0  ;;  %v9075_v20 = vpop.f32.mrb[2].mxu1 }
 0x2fe   : > { %v1550_v21 = vsel %vm11628_vm5, %v1546_v18, 0.0  ;;  %v1544_v23 = vadd.f32 %v9075_v20, %v1539_v3  ;;  %v1504_v24 = vpop.f32.mrb[3].mxu1 }
 0x2ff   : > { %v1549_v30 = vsel %vm11628_vm5, %v1545_v19, 0.0  ;;  %v1570_v32 = vmul.f32 %v1559_v4, %v1550_v21  ;;  %v1543_v33 = vadd.f32 %v1534_v2, %v1504_v24  ;;  %v8238_v24 = vld [vmem:[%s13243_s3 + $0x128] sm:$0xff] }
 0x300   : > { %v1569_v34 = vmul.f32 %v1555_v13, %v1549_v30  ;;  %v1548_v35 = vmax.f32 %v1544_v23, 0.0 }
 0x301   : > { %v1590_v36 = vadd.f32 %v1579_v31, %v1570_v32  ;;  %v1547_v37 = vmax.f32 %v1543_v33, 0.0 }
 0x302   : > { %v1589_v38 = vadd.f32 %v1575_v8, %v1569_v34  ;;  %v1552_v39 = vsel %vm11628_vm5, %v1548_v35, 0.0  ;;  %v8239_v35 = vld [vmem:[%s13243_s3 + $0x130] sm:$0xff] }
 0x303   : > { %v11755_v41 = vadd.f32 %v1590_v36, %v11481_v9  ;;  %v1551_v42 = vsel %vm11628_vm5, %v1547_v37, 0.0  ;;  %v1572_v43 = vmul.f32 %v1567_v22, %v1552_v39  ;;  %v8237_v9 = vld [vmem:[%s13243_s3 + $0x120] sm:$0xff] }
 0x304   : > { %v11760_v44 = vadd.f32 %v1589_v38, %v11476_v6  ;;  %v1571_v45 = vmul.f32 %v1563_v12, %v1551_v42  ;;  %9084 = vmatprep.mubr.msk.f32.mxu0 %vm405_vm0, %v8237_v9 }
 0x305   : > { %v1592_v47 = vadd.f32 %v1587_v40, %v1572_v43  ;;  %v10431_v48 = vpack.i.bf16 %v11755_v41, %v11304_v10  ;;  %v8240_v40 = vld [vmem:[%s13243_s3 + $0x138] sm:$0xff] }
 0x306   : > { %v1591_v49 = vadd.f32 %v1583_v46, %v1571_v45  ;;  %v10436_v50 = vpack.i.bf16 %v11760_v44, %v11304_v10 }
 0x307   : > { %v11770_v52 = vadd.f32 %v1592_v47, %v11478_v7  ;;  %10432 = vrot.lane.b32.xlu1 %v10431_v48, %s13256_s16  ;;  %v10471_v7 = vpack.i.bf16 %v11304_v10, %v11760_v44 }
 0x308   : > { %v11775_v6 = vadd.f32 %v1591_v49, %v11474_v5  ;;  %10437 = vrot.lane.b32.xlu0 %v10436_v50, %s13256_s16  ;;  %v10476_v5 = vpack.i.bf16 %v11304_v10, %v11755_v41 }
 0x309   : > { %v10441_v53 = vpack.i.bf16 %v11770_v52, %v11304_v10  ;;  %v10481_v55 = vpack.i.bf16 %v11304_v10, %v11770_v52 }
 0x30a   : > { %v10446_v54 = vpack.i.bf16 %v11775_v6, %v11304_v10  ;;  %v10486_v56 = vpack.i.bf16 %v11304_v10, %v11775_v6 }
 0x30b   : > { %10442 = vrot.lane.b32.xlu1 %v10441_v53, %s13256_s16 }
 0x30c   : > { %10447 = vrot.lane.b32.xlu0 %v10446_v54, %s13256_s16 }
 0x30f   : > { %10457 = vrot.lane.b32.xlu1 %v10431_v48, %s11314_s23  ;;  %v8233_v48 = vld [vmem:[%s13243_s3 + $0x100] sm:$0xff] }
 0x310   : > { %10452 = vrot.lane.b32.xlu0 %v10436_v50, %s11314_s23 }
 0x313   : > { %10462 = vrot.lane.b32.xlu1 %v10441_v53, %s11314_s23 }
 0x314   : > { %10467 = vrot.lane.b32.xlu0 %v10446_v54, %s11314_s23  ;;  %v8234_v54 = vld [vmem:[%s13243_s3 + $0x108] sm:$0xff] }
 0x317   : > { %10477 = vrot.lane.b32.xlu1 %v10476_v5, %s13254_s17 }
 0x318   : > { %10472 = vrot.lane.b32.xlu0 %v10471_v7, %s13254_s17 }
 0x31b   : > { %10482 = vrot.lane.b32.xlu1 %v10481_v55, %s13254_s17 }
 0x31c   : > { %10487 = vrot.lane.b32.xlu0 %v10486_v56, %s13254_s17  ;;  %s334_s17 = sand.u32 1, %s11294_s10  }
 0x31f   : > { %10497 = vrot.lane.b32.xlu1 %v10476_v5, %s13252_s24 }
 0x320   : > { %10492 = vrot.lane.b32.xlu0 %v10471_v7, %s13252_s24 }
 0x323   : > { %10507 = vrot.lane.b32.xlu1 %v10481_v55, %s13252_s24 }
 0x324   : > { %10502 = vrot.lane.b32.xlu0 %v10486_v56, %s13252_s24  ;;  %s13264_s24 = smov 12  }
 0x327   : > { %2170 = vperm.xlu1 %10512, %v11534_v25  }
 0x328   : > { %2165 = vperm.xlu0 %10511, %v11541_v27  }
 0x32b   : > { %2175 = vperm.xlu1 %10512, %v11548_v28  }
 0x32c   : > { %2180 = vperm.xlu0 %10511, %v11553_v29  }
 0x32f   : > { %10513 = vset.pattern.permute.xlu1 %v11317_v58 }
 0x330   : > { %2202 = vperm.xlu1 %10513, %v11541_v27   ;;  %10514 = vset.pattern.permute.xlu0 %v11317_v58 }
 0x331   : > { %2206 = vperm.xlu0 %10514, %v11534_v25  }
 0x334   : > { %10515 = vset.pattern.permute.xlu1 %v11318_v59 }
 0x335   : > { %2222 = vperm.xlu1 %10515, %v11541_v27   ;;  %2210 = vperm.xlu0 %10514, %v11548_v28  }
 0x339   : > { %2226 = vperm.xlu1 %10515, %v11534_v25   ;;  %10517 = vset.pattern.permute.xlu0 %v11318_v59 }
 0x33a   : > { %2230 = vperm.xlu0 %10517, %v11548_v28  }
 0x33d   : > { %10516 = vset.pattern.permute.xlu1 %v11317_v58  ;;  %v8235_v58 = vld [vmem:[%s13243_s3 + $0x110] sm:$0xff] }
 0x33e   : > { %2214 = vperm.xlu1 %10516, %v11553_v29  }
 0x342   : > { %10518 = vset.pattern.permute.xlu1 %v11318_v59 }
 0x343   : > { %2234 = vperm.xlu1 %10518, %v11553_v29  }
 0x379   : > { %v10433_v61 = vpop.permute.xlu1 %10432 }
 0x37a   : > { %v10435_v62 = vunpack.i.h.bf16 %v10433_v61  ;;  %v10434_v63 = vunpack.i.l.bf16 %v10433_v61  ;;  %v10438_v0 = vpop.permute.xlu0 %10437 }
 0x37b   : > { %v10440_v1 = vunpack.i.h.bf16 %v10438_v0  ;;  %v10439_v2 = vunpack.i.l.bf16 %v10438_v0  ;;  %v8236_v0 = vld [vmem:[%s13243_s3 + $0x118] sm:$0xff] }
 0x37c   : > { %v1656_v27 = vsel %vm527_vm1, %v10434_v63, %v10435_v62 }
 0x37d   : > { %v10443_v3 = vpop.permute.xlu1 %10442  ;;  %v1655_v25 = vsel %vm527_vm1, %v10439_v2, %v10440_v1 }
 0x37e   : > { %v10445_v4 = vunpack.i.h.bf16 %v10443_v3  ;;  %v10444_v8 = vunpack.i.l.bf16 %v10443_v3  ;;  %v10448_v28 = vpop.permute.xlu0 %10447  ;;  %v9725_v11 = vpack.c.bf16 %v1656_v27, %v1655_v25 }
 0x37f   : > { %v10450_v12 = vunpack.i.h.bf16 %v10448_v28  ;;  %v10449_v13 = vunpack.i.l.bf16 %v10448_v28 }
 0x380   : > { %9726 = vmatprep.subr.bf16.mxu0 %v9725_v11  ;;  %v1658_v29 = vsel %vm527_vm1, %v10444_v8, %v10445_v4  ;;  %v8249_v4 = vld [vmem:[%s13243_s3 + $0x140] sm:$0xff] }
 0x381   : > { %9728 = vmatpush3.bf16.msra.mxu0 %v9725_v11  ;;  %v10458_v14 = vpop.permute.xlu1 %10457  ;;  %v1657_v15 = vsel %vm527_vm1, %v10449_v13, %v10450_v12  ;;  %v8250_v13 = vld [vmem:[%s13243_s3 + $0x148] sm:$0xff] }
 0x382   : > { %v10460_v16 = vunpack.i.h.bf16 %v10458_v14  ;;  %v10459_v17 = vunpack.i.l.bf16 %v10458_v14  ;;  %v10453_v18 = vpop.permute.xlu0 %10452  ;;  %v9729_v19 = vpack.c.bf16 %v1658_v29, %v1657_v15 }
 0x383   : > { %v10455_v20 = vunpack.i.h.bf16 %v10453_v18  ;;  %v10454_v21 = vunpack.i.l.bf16 %v10453_v18  ;;  %v8251_v18 = vld [vmem:[%s13243_s3 + $0x150] sm:$0xff] }
 0x384   : > { %9730 = vmatprep.subr.bf16.mxu0 %v9729_v19  ;;  %v1778_v22 = vsel %vm1776_vm6, %v10459_v17, %v10460_v16 }
 0x385   : > { %v10463_v23 = vpop.permute.xlu1 %10462  ;;  %9732 = vmatpush3.bf16.msra.mxu0 %v9729_v19  ;;  %v1777_v30 = vsel %vm1776_vm6, %v10454_v21, %v10455_v20 }
 0x386   : > { %v10465_v31 = vunpack.i.h.bf16 %v10463_v23  ;;  %v10464_v32 = vunpack.i.l.bf16 %v10463_v23  ;;  %v10468_v33 = vpop.permute.xlu0 %10467  ;;  %v9733_v34 = vpack.c.bf16 %v1778_v22, %v1777_v30  ;;  %v8252_v22 = vld [vmem:[%s13243_s3 + $0x158] sm:$0xff]  ;;  %v8257_v30 = vld [vmem:[%s13243_s3 + $0x160] sm:$0xff] }
 0x387   : > { %v10470_v36 = vunpack.i.h.bf16 %v10468_v33  ;;  %v10469_v37 = vunpack.i.l.bf16 %v10468_v33  ;;  %v8260_v33 = vld [vmem:[%s13243_s3 + $0x178] sm:$0xff] }
 0x388   : > { %9085 = vmatmul.mubr.msk.f32.vlgmr.msra.gmra.mrb[4].mxu0 %vm405_vm0, %v8238_v24  ;;  %9734 = vmatprep.subr.bf16.mxu0 %v9733_v34  ;;  %v1780_v38 = vsel %vm1776_vm6, %v10464_v32, %v10465_v31  ;;  %v8258_v31 = vld [vmem:[%s13243_s3 + $0x168] sm:$0xff]  ;;  %v8259_v32 = vld [vmem:[%s13243_s3 + $0x170] sm:$0xff] }
 0x389   : > { %v10478_v39 = vpop.permute.xlu1 %10477  ;;  %9736 = vmatpush3.bf16.msra.mxu0 %v9733_v34  ;;  %9087 = vmatprep.mubr.msk.f32.mxu0 %vm405_vm0, %v8239_v35  ;;  %v1779_v42 = vsel %vm1776_vm6, %v10469_v37, %v10470_v36 }
 0x38a   : > { %v10480_v43 = vunpack.i.h.bf16 %v10478_v39  ;;  %v10479_v45 = vunpack.i.l.bf16 %v10478_v39  ;;  %v10473_v46 = vpop.permute.xlu0 %10472  ;;  %v9737_v47 = vpack.c.bf16 %v1780_v38, %v1779_v42  ;;  %v355_v38 = vld [vmem:[%s13275_s2 + $0x1] sm:$0x1] }
 0x38b   : > { %v10475_v49 = vunpack.i.h.bf16 %v10473_v46  ;;  %v10474_v50 = vunpack.i.l.bf16 %v10473_v46  ;;  %vm356_vm8 = vcmp.gt.f32.partialorder %v355_v38, 0.0 }
 0x38c   : > { %9088 = vmatmul.mubr.msk.f32.gmra.mrb[6].mxu0 %vm405_vm0, %v8240_v40  ;;  %9738 = vmatprep.subr.bf16.mxu0 %v9737_v47  ;;  %v1920_v9 = vsel %vm670_vm2, %v10479_v45, %v10480_v43  ;;  %v2191_v42 = vsel %vm356_vm8, 1, %v11308_v26 }
 0x38d   : > { %v10483_v53 = vpop.permute.xlu1 %10482  ;;  %9740 = vmatpush3.bf16.msra.mxu0 %v9737_v47  ;;  %9098 = vmatprep.mubr.msk.f32.mxu0 %vm405_vm0, %v8233_v48  ;;  %v1919_v5 = vsel %vm670_vm2, %v10474_v50, %v10475_v49  ;;  %v2195_v43 = vrot.slane %v2191_v42, %v11624_v51 }
 0x38e   : > { %v10485_v7 = vunpack.i.h.bf16 %v10483_v53  ;;  %v10484_v55 = vunpack.i.l.bf16 %v10483_v53  ;;  %v10488_v56 = vpop.permute.xlu0 %10487  ;;  %v9741_v57 = vpack.c.bf16 %v1920_v9, %v1919_v5 }
 0x38f   : > { %v10490_v59 = vunpack.i.h.bf16 %v10488_v56  ;;  %v10489_v61 = vunpack.i.l.bf16 %v10488_v56  ;;  %vm11897_vm9 = vcmp.eq.s32.totalorder %v2195_v43, 1 }
 0x390   : > { %9099 = vmatmul.mubr.msk.f32.vlgmr.msra.gmra.mrb[4].mxu0 %vm405_vm0, %v8234_v54  ;;  %9742 = vmatprep.subr.bf16.mxu0 %v9741_v57  ;;  %v1922_v62 = vsel %vm670_vm2, %v10484_v55, %v10485_v7 }
 0x391   : > { %v10498_v63 = vpop.permute.xlu1 %10497  ;;  %9744 = vmatpush3.bf16.msra.mxu0 %v9741_v57  ;;  %9101 = vmatprep.mubr.msk.f32.mxu0 %vm405_vm0, %v8235_v58  ;;  %v1921_v1 = vsel %vm670_vm2, %v10489_v61, %v10490_v59 }
 0x392   : > { %v10500_v2 = vunpack.i.h.bf16 %v10498_v63  ;;  %v10499_v27 = vunpack.i.l.bf16 %v10498_v63  ;;  %v10493_v3 = vpop.permute.xlu0 %10492  ;;  %v9745_v25 = vpack.c.bf16 %v1922_v62, %v1921_v1 }
 0x393   : > { %v10495_v8 = vunpack.i.h.bf16 %v10493_v3  ;;  %v10494_v28 = vunpack.i.l.bf16 %v10493_v3 }
 0x394   : > { %9102 = vmatmul.mubr.msk.f32.gmra.mrb[6].mxu0 %vm405_vm0, %v8236_v0  ;;  %9746 = vmatprep.subr.bf16.mxu0 %v9745_v25  ;;  %v2051_v11 = vsel %vm2049_vm7, %v10499_v27, %v10500_v2 }
 0x395   : > { %v10508_v12 = vpop.permute.xlu1 %10507  ;;  %9748 = vmatpush3.bf16.msra.mxu0 %v9745_v25  ;;  %9112 = vmatprep.mubr.msk.f32.mxu0 %vm405_vm0, %v8249_v4  ;;  %v2050_v29 = vsel %vm2049_vm7, %v10494_v28, %v10495_v8 }
 0x396   : > { %v10510_v14 = vunpack.i.h.bf16 %v10508_v12  ;;  %v10509_v15 = vunpack.i.l.bf16 %v10508_v12  ;;  %v10503_v16 = vpop.permute.xlu0 %10502  ;;  %v9749_v17 = vpack.c.bf16 %v2051_v11, %v2050_v29  ;;  %v8269_v29 = vld [vmem:[%s13243_s3 + $0x1a0] sm:$0xff] }
 0x397   : > { %v10505_v19 = vunpack.i.h.bf16 %v10503_v16  ;;  %v10504_v20 = vunpack.i.l.bf16 %v10503_v16  ;;  %9140 = vmatprep.mubr.msk.f32.mxu1 %vm405_vm0, %v8269_v29 }
 0x398   : > { %9113 = vmatmul.mubr.msk.f32.vlgmr.msra.gmra.mrb[4].mxu0 %vm405_vm0, %v8250_v13  ;;  %9750 = vmatprep.subr.bf16.mxu0 %v9749_v17  ;;  %v2053_v21 = vsel %vm2049_vm7, %v10509_v15, %v10510_v14 }
 0x399   : > { %9752 = vmatpush3.bf16.msra.mxu0 %v9749_v17  ;;  %9115 = vmatprep.mubr.msk.f32.mxu0 %vm405_vm0, %v8251_v18  ;;  %v2052_v23 = vsel %vm2049_vm7, %v10504_v20, %v10505_v19 }
 0x39a   : > { %v9753_v24 = vpack.c.bf16 %v2053_v21, %v2052_v23  ;;  %v11940_v23 = vld [vmem:[%s13244_s4] sm:$0xff] }
 0x39c   : > { %9116 = vmatmul.mubr.msk.f32.gmra.mrb[6].mxu0 %vm405_vm0, %v8252_v22  ;;  %9754 = vmatprep.subr.bf16.mxu0 %v9753_v24  ;;  %v11319_v22 = vmov 9  }
 0x39d   : > { %9756 = vmatpush3.bf16.msra.mxu0 %v9753_v24  ;;  %9126 = vmatprep.mubr.msk.f32.mxu0 %vm405_vm0, %v8257_v30  ;;  %v11945_v24 = vld [vmem:[%s13244_s4 + $0x8] sm:$0xff]  ;;  %v11952_v30 = vld [vmem:[%s13244_s4 + $0x10] sm:$0xff] }
 0x39e   : > { %10599 = vset.pattern.permute.xlu1 %v11319_v22  ;;  %10600 = vset.pattern.permute.xlu0 %v11319_v22  ;;  %v8266_v22 = vld [vmem:[%s13243_s3 + $0x188] sm:$0xff] }
 0x3a0   : > { %9127 = vmatmul.mubr.msk.f32.vlgmr.msra.gmra.mrb[4].mxu0 %vm405_vm0, %v8258_v31  ;;  %v11320_v31 = vmov 10  }
 0x3a1   : > { %9129 = vmatprep.mubr.msk.f32.mxu0 %vm405_vm0, %v8259_v32  ;;  %v11959_v32 = vld [vmem:[%s13244_s4 + $0x18] sm:$0xff] }
 0x3a4   : > { %9130 = vmatmul.mubr.msk.f32.gmra.mrb[6].mxu0 %vm405_vm0, %v8260_v33  ;;  %v11321_v33 = vmov 11  }
 0x3a6   : > { %v2171_v34 = vpop.permute.xlu1 %2170 }
 0x3a7   : > { %v2166_v37 = vpop.permute.xlu0 %2165 }
 0x3aa   : > { %v2176_v35 = vpop.permute.xlu1 %2175 }
 0x3ab   : > { %v2181_v40 = vpop.permute.xlu0 %2180 }
 0x3af   : > { %v2203_v36 = vpop.permute.xlu1 %2202 }
 0x3b0   : > { %v2207_v46 = vpop.permute.xlu0 %2206 }
 0x3b4   : > { %v2223_v39 = vpop.permute.xlu1 %2222  ;;  %v2211_v61 = vpop.permute.xlu0 %2210 }
 0x3b8   : > { %v2227_v45 = vpop.permute.xlu1 %2226 }
 0x3b9   : > { %v2231_v28 = vpop.permute.xlu0 %2230 }
 0x3bd   : > { %v2215_v54 = vpop.permute.xlu1 %2214 }
 0x3c2   : > { %v2235_v25 = vpop.permute.xlu1 %2234 }
 0x473   : > { %v9128_v47 = vpop.f32.mrb[4].mxu0 }
 0x474   : > { %v2184_v48 = vadd.f32 %v9128_v47, %v2171_v34  ;;  %v2136_v49 = vpop.f32.mrb[5].mxu0 }
 0x475   : > { %v2183_v9 = vadd.f32 %v2166_v37, %v2136_v49 }
 0x476   : > { %v2188_v53 = vmax.f32 %v2184_v48, 0.0 }
 0x477   : > { %v2187_v5 = vmax.f32 %v2183_v9, 0.0  ;;  %v9131_v7 = vpop.f32.mrb[6].mxu0 }
 0x478   : > { %v2198_v55 = vsel %vm11897_vm9, %v2188_v53, 0.0  ;;  %v2186_v56 = vadd.f32 %v9131_v7, %v2181_v40  ;;  %v2146_v57 = vpop.f32.mrb[7].mxu0 }
 0x479   : > { %v2218_v58 = vmul.f32 %v2207_v46, %v2198_v55  ;;  %v2197_v59 = vsel %vm11897_vm9, %v2187_v5, 0.0  ;;  %v2185_v62 = vadd.f32 %v2176_v35, %v2146_v57 }
 0x47a   : > { %v2217_v63 = vmul.f32 %v2203_v36, %v2197_v59  ;;  %v2190_v0 = vmax.f32 %v2186_v56, 0.0 }
 0x47b   : > { %v2238_v1 = vadd.f32 %v2227_v45, %v2218_v58  ;;  %v2189_v2 = vmax.f32 %v2185_v62, 0.0 }
 0x47c   : > { %v2237_v27 = vadd.f32 %v2223_v39, %v2217_v63  ;;  %v2200_v3 = vsel %vm11897_vm9, %v2190_v0, 0.0  ;;  %v8270_v63 = vld [vmem:[%s13243_s3 + $0x1a8] sm:$0xff] }
 0x47d   : > { %v2199_v4 = vsel %vm11897_vm9, %v2189_v2, 0.0  ;;  %v2220_v8 = vmul.f32 %v2215_v54, %v2200_v3  ;;  %v10519_v11 = vpack.i.bf16 %v2238_v1, %v11304_v10  ;;  %v10564_v18 = vpack.i.bf16 %v11304_v10, %v2238_v1 }
 0x47e   : > { %v2219_v12 = vmul.f32 %v2211_v61, %v2199_v4  ;;  %v10524_v13 = vpack.i.bf16 %v2237_v27, %v11304_v10  ;;  %v10559_v19 = vpack.i.bf16 %v11304_v10, %v2237_v27 }
 0x47f   : > { %v2240_v14 = vadd.f32 %v2235_v25, %v2220_v8  ;;  %10520 = vrot.lane.b32.xlu0 %v10519_v11, %s13256_s16  ;;  %v8271_v25 = vld [vmem:[%s13243_s3 + $0x1b0] sm:$0xff] }
 0x480   : > { %v2239_v15 = vadd.f32 %v2231_v28, %v2219_v12  ;;  %10525 = vrot.lane.b32.xlu1 %v10524_v13, %s13256_s16  ;;  %v8272_v12 = vld [vmem:[%s13243_s3 + $0x1b8] sm:$0xff] }
 0x481   : > { %v10529_v16 = vpack.i.bf16 %v2240_v14, %v11304_v10  ;;  %v10569_v20 = vpack.i.bf16 %v11304_v10, %v2240_v14 }
 0x482   : > { %v10534_v17 = vpack.i.bf16 %v2239_v15, %v11304_v10  ;;  %v10574_v21 = vpack.i.bf16 %v11304_v10, %v2239_v15 }
 0x483   : > { %10530 = vrot.lane.b32.xlu0 %v10529_v16, %s13256_s16 }
 0x484   : > { %10535 = vrot.lane.b32.xlu1 %v10534_v17, %s13256_s16  ;;  %s11331_s16 = smov 4  }
 0x487   : > { %10545 = vrot.lane.b32.xlu0 %v10519_v11, %s11314_s23 }
 0x488   : > { %10540 = vrot.lane.b32.xlu1 %v10524_v13, %s11314_s23 }
 0x48b   : > { %10550 = vrot.lane.b32.xlu0 %v10529_v16, %s11314_s23 }
 0x48c   : > { %10555 = vrot.lane.b32.xlu1 %v10534_v17, %s11314_s23  ;;  %v8265_v17 = vld [vmem:[%s13243_s3 + $0x180] sm:$0xff]  ;;  %s13258_s23 = smov 122  }
 0x48f   : > { %10565 = vrot.lane.b32.xlu0 %v10564_v18, %s13281_s21 }
 0x490   : > { %10560 = vrot.lane.b32.xlu1 %v10559_v19, %s13281_s21 }
 0x493   : > { %10570 = vrot.lane.b32.xlu0 %v10569_v20, %s13281_s21 }
 0x494   : > { %10575 = vrot.lane.b32.xlu1 %v10574_v21, %s13281_s21 }
 0x497   : > { %10585 = vrot.lane.b32.xlu0 %v10564_v18, %s13282_s25 }
 0x498   : > { %10580 = vrot.lane.b32.xlu1 %v10559_v19, %s13282_s25 }
 0x49b   : > { %10595 = vrot.lane.b32.xlu0 %v10569_v20, %s13282_s25 }
 0x49c   : > { %10590 = vrot.lane.b32.xlu1 %v10574_v21, %s13282_s25  ;;  %s13260_s25 = smov 6  }
 0x49f   : > { %2800 = vperm.xlu0 %10600, %v11945_v24  }
 0x4a0   : > { %2795 = vperm.xlu1 %10599, %v11940_v23  }
 0x4a3   : > { %10601 = vset.pattern.permute.xlu0 %v11320_v31 }
 0x4a4   : > { %2805 = vperm.xlu1 %10599, %v11952_v30   ;;  %2826 = vperm.xlu0 %10601, %v11940_v23  }
 0x4a8   : > { %2810 = vperm.xlu1 %10599, %v11959_v32   ;;  %10604 = vset.pattern.permute.xlu0 %v11321_v33 }
 0x4a9   : > { %2850 = vperm.xlu0 %10604, %v11945_v24  }
 0x4ac   : > { %10602 = vset.pattern.permute.xlu1 %v11320_v31 }
 0x4ad   : > { %2830 = vperm.xlu1 %10602, %v11945_v24   ;;  %2854 = vperm.xlu0 %10604, %v11952_v30  }
 0x4b1   : > { %10603 = vset.pattern.permute.xlu1 %v11321_v33 }
 0x4b2   : > { %2846 = vperm.xlu1 %10603, %v11940_v23  }
 0x4b6   : > { %10605 = vset.pattern.permute.xlu1 %v11320_v31 }
 0x4b7   : > { %2834 = vperm.xlu1 %10605, %v11952_v30  }
 0x4bb   : > { %2838 = vperm.xlu1 %10605, %v11959_v32  }
 0x4bf   : > { %10606 = vset.pattern.permute.xlu1 %v11321_v33 }
 0x4c0   : > { %2858 = vperm.xlu1 %10606, %v11959_v32  }
 0x4f1   : > { %v10521_v34 = vpop.permute.xlu0 %10520 }
 0x4f2   : > { %v10523_v35 = vunpack.i.h.bf16 %v10521_v34  ;;  %v10522_v36 = vunpack.i.l.bf16 %v10521_v34  ;;  %v10526_v37 = vpop.permute.xlu1 %10525 }
 0x4f3   : > { %v10528_v38 = vunpack.i.h.bf16 %v10526_v37  ;;  %v10527_v39 = vunpack.i.l.bf16 %v10526_v37  ;;  %v8267_v37 = vld [vmem:[%s13243_s3 + $0x190] sm:$0xff] }
 0x4f4   : > { %v2288_v40 = vsel %vm527_vm1, %v10522_v36, %v10523_v35 }
 0x4f5   : > { %v10531_v42 = vpop.permute.xlu0 %10530  ;;  %v2287_v43 = vsel %vm527_vm1, %v10527_v39, %v10528_v38 }
 0x4f6   : > { %v10533_v45 = vunpack.i.h.bf16 %v10531_v42  ;;  %v10532_v46 = vunpack.i.l.bf16 %v10531_v42  ;;  %v10536_v47 = vpop.permute.xlu1 %10535  ;;  %v9757_v48 = vpack.c.bf16 %v2288_v40, %v2287_v43  ;;  %v8268_v43 = vld [vmem:[%s13243_s3 + $0x198] sm:$0xff] }
 0x4f7   : > { %v10538_v49 = vunpack.i.h.bf16 %v10536_v47  ;;  %v10537_v9 = vunpack.i.l.bf16 %v10536_v47 }
 0x4f8   : > { %9758 = vmatprep.subr.bf16.mxu1 %v9757_v48  ;;  %v2290_v53 = vsel %vm527_vm1, %v10532_v46, %v10533_v45 }
 0x4f9   : > { %9760 = vmatpush3.bf16.msra.mxu1 %v9757_v48  ;;  %v10546_v54 = vpop.permute.xlu0 %10545  ;;  %v2289_v5 = vsel %vm527_vm1, %v10537_v9, %v10538_v49  ;;  %v8281_v9 = vld [vmem:[%s13243_s3 + $0x1c0] sm:$0xff] }
 0x4fa   : > { %v10548_v7 = vunpack.i.h.bf16 %v10546_v54  ;;  %v10547_v55 = vunpack.i.l.bf16 %v10546_v54  ;;  %v10541_v56 = vpop.permute.xlu1 %10540  ;;  %v9761_v57 = vpack.c.bf16 %v2290_v53, %v2289_v5 }
 0x4fb   : > { %v10543_v58 = vunpack.i.h.bf16 %v10541_v56  ;;  %v10542_v59 = vunpack.i.l.bf16 %v10541_v56 }
 0x4fc   : > { %9762 = vmatprep.subr.bf16.mxu1 %v9761_v57  ;;  %v2409_v61 = vsel %vm1776_vm6, %v10547_v55, %v10548_v7  ;;  %v8282_v55 = vld [vmem:[%s13243_s3 + $0x1c8] sm:$0xff] }
 0x4fd   : > { %v10551_v62 = vpop.permute.xlu0 %10550  ;;  %9764 = vmatpush3.bf16.msra.mxu1 %v9761_v57  ;;  %v2408_v0 = vsel %vm1776_vm6, %v10542_v59, %v10543_v58 }
 0x4fe   : > { %v10553_v1 = vunpack.i.h.bf16 %v10551_v62  ;;  %v10552_v2 = vunpack.i.l.bf16 %v10551_v62  ;;  %v10556_v27 = vpop.permute.xlu1 %10555  ;;  %v9765_v3 = vpack.c.bf16 %v2409_v61, %v2408_v0  ;;  %v8283_v62 = vld [vmem:[%s13243_s3 + $0x1d0] sm:$0xff] }
 0x4ff   : > { %v10558_v4 = vunpack.i.h.bf16 %v10556_v27  ;;  %v10557_v8 = vunpack.i.l.bf16 %v10556_v27 }
 0x500   : > { %9141 = vmatmul.mubr.msk.f32.vlgmr.msra.gmra.mrb[4].mxu1 %vm405_vm0, %v8270_v63  ;;  %9766 = vmatprep.subr.bf16.mxu1 %v9765_v3  ;;  %v2411_v28 = vsel %vm1776_vm6, %v10552_v2, %v10553_v1  ;;  %v8284_v2 = vld [vmem:[%s13243_s3 + $0x1d8] sm:$0xff] }
 0x501   : > { %v10566_v11 = vpop.permute.xlu0 %10565  ;;  %9768 = vmatpush3.bf16.msra.mxu1 %v9765_v3  ;;  %9143 = vmatprep.mubr.msk.f32.mxu1 %vm405_vm0, %v8271_v25  ;;  %v2410_v13 = vsel %vm1776_vm6, %v10557_v8, %v10558_v4  ;;  %v8289_v25 = vld [vmem:[%s13243_s3 + $0x1e0] sm:$0xff]  ;;  %v8290_v4 = vld [vmem:[%s13243_s3 + $0x1e8] sm:$0xff]  ;;  %v8291_v8 = vld [vmem:[%s13243_s3 + $0x1f0] sm:$0xff]  ;;  %vm4465_vm6 = vcmask 1014784  }
 0x502   : > { %v10568_v29 = vunpack.i.h.bf16 %v10566_v11  ;;  %v10567_v14 = vunpack.i.l.bf16 %v10566_v11  ;;  %v10561_v15 = vpop.permute.xlu1 %10560  ;;  %v9769_v16 = vpack.c.bf16 %v2411_v28, %v2410_v13  ;;  %v8292_v28 = vld [vmem:[%s13243_s3 + $0x1f8] sm:$0xff] }
 0x503   : > { %v10563_v18 = vunpack.i.h.bf16 %v10561_v15  ;;  %v10562_v19 = vunpack.i.l.bf16 %v10561_v15 }
 0x504   : > { %9144 = vmatmul.mubr.msk.f32.gmra.mrb[6].mxu1 %vm405_vm0, %v8272_v12  ;;  %9770 = vmatprep.subr.bf16.mxu1 %v9769_v16  ;;  %v2551_v20 = vsel %vm670_vm2, %v10567_v14, %v10568_v29 }
 0x505   : > { %v10571_v21 = vpop.permute.xlu0 %10570  ;;  %9772 = vmatpush3.bf16.msra.mxu1 %v9769_v16  ;;  %9154 = vmatprep.mubr.msk.f32.mxu1 %vm405_vm0, %v8265_v17  ;;  %v2550_v31 = vsel %vm670_vm2, %v10562_v19, %v10563_v18 }
 0x506   : > { %v10573_v33 = vunpack.i.h.bf16 %v10571_v21  ;;  %v10572_v34 = vunpack.i.l.bf16 %v10571_v21  ;;  %v10576_v35 = vpop.permute.xlu1 %10575  ;;  %v9773_v36 = vpack.c.bf16 %v2551_v20, %v2550_v31 }
 0x507   : > { %v10578_v38 = vunpack.i.h.bf16 %v10576_v35  ;;  %v10577_v39 = vunpack.i.l.bf16 %v10576_v35 }
 0x508   : > { %9155 = vmatmul.mubr.msk.f32.vlgmr.msra.gmra.mrb[4].mxu1 %vm405_vm0, %v8266_v22  ;;  %9774 = vmatprep.subr.bf16.mxu1 %v9773_v36  ;;  %v2553_v40 = vsel %vm670_vm2, %v10572_v34, %v10573_v33 }
 0x509   : > { %v10586_v42 = vpop.permute.xlu0 %10585  ;;  %9776 = vmatpush3.bf16.msra.mxu1 %v9773_v36  ;;  %9157 = vmatprep.mubr.msk.f32.mxu1 %vm405_vm0, %v8267_v37  ;;  %v2552_v45 = vsel %vm670_vm2, %v10577_v39, %v10578_v38 }
 0x50a   : > { %v10588_v46 = vunpack.i.h.bf16 %v10586_v42  ;;  %v10587_v47 = vunpack.i.l.bf16 %v10586_v42  ;;  %v10581_v48 = vpop.permute.xlu1 %10580  ;;  %v9777_v49 = vpack.c.bf16 %v2553_v40, %v2552_v45 }
 0x50b   : > { %v10583_v53 = vunpack.i.h.bf16 %v10581_v48  ;;  %v10582_v54 = vunpack.i.l.bf16 %v10581_v48 }
 0x50c   : > { %9158 = vmatmul.mubr.msk.f32.gmra.mrb[6].mxu1 %vm405_vm0, %v8268_v43  ;;  %9778 = vmatprep.subr.bf16.mxu1 %v9777_v49  ;;  %v2681_v5 = vsel %vm2049_vm7, %v10587_v47, %v10588_v46 }
 0x50d   : > { %v10596_v7 = vpop.permute.xlu0 %10595  ;;  %9780 = vmatpush3.bf16.msra.mxu1 %v9777_v49  ;;  %9168 = vmatprep.mubr.msk.f32.mxu1 %vm405_vm0, %v8281_v9  ;;  %v2680_v56 = vsel %vm2049_vm7, %v10582_v54, %v10583_v53 }
 0x50e   : > { %v10598_v57 = vunpack.i.h.bf16 %v10596_v7  ;;  %v10597_v58 = vunpack.i.l.bf16 %v10596_v7  ;;  %v10591_v59 = vpop.permute.xlu1 %10590  ;;  %v9781_v61 = vpack.c.bf16 %v2681_v5, %v2680_v56 }
 0x50f   : > { %v10593_v63 = vunpack.i.h.bf16 %v10591_v59  ;;  %v10592_v0 = vunpack.i.l.bf16 %v10591_v59 }
 0x510   : > { %9169 = vmatmul.mubr.msk.f32.vlgmr.msra.gmra.mrb[4].mxu1 %vm405_vm0, %v8282_v55  ;;  %9782 = vmatprep.subr.bf16.mxu1 %v9781_v61  ;;  %v2683_v1 = vsel %vm2049_vm7, %v10597_v58, %v10598_v57 }
 0x511   : > { %9784 = vmatpush3.bf16.msra.mxu1 %v9781_v61  ;;  %9171 = vmatprep.mubr.msk.f32.mxu1 %vm405_vm0, %v8283_v62  ;;  %v2682_v27 = vsel %vm2049_vm7, %v10592_v0, %v10593_v63  ;;  %vm4596_vm7 = vcmask 949248  }
 0x512   : > { %v9785_v3 = vpack.c.bf16 %v2683_v1, %v2682_v27  ;;  %v11326_v27 = vmov 13  }
 0x514   : > { %9172 = vmatmul.mubr.msk.f32.gmra.mrb[6].mxu1 %vm405_vm0, %v8284_v2  ;;  %9786 = vmatprep.subr.bf16.mxu1 %v9785_v3  ;;  %v11325_v2 = vmov 12  }
 0x515   : > { %9788 = vmatpush3.bf16.msra.mxu1 %v9785_v3  ;;  %9182 = vmatprep.mubr.msk.f32.mxu1 %vm405_vm0, %v8289_v25  ;;  %v11327_v3 = vmov 14  }
 0x516   : > { %10688 = vset.pattern.permute.xlu1 %v11325_v2  ;;  %10687 = vset.pattern.permute.xlu0 %v11325_v2 }
 0x518   : > { %9183 = vmatmul.mubr.msk.f32.vlgmr.msra.gmra.mrb[4].mxu1 %vm405_vm0, %v8290_v4 }
 0x519   : > { %9185 = vmatprep.mubr.msk.f32.mxu1 %vm405_vm0, %v8291_v8 }
 0x51c   : > { %9186 = vmatmul.mubr.msk.f32.gmra.mrb[6].mxu1 %vm405_vm0, %v8292_v28 }
 0x51e   : > { %v2801_v15 = vpop.permute.xlu0 %2800 }
 0x51f   : > { %v2796_v11 = vpop.permute.xlu1 %2795 }
 0x523   : > { %v2806_v12 = vpop.permute.xlu1 %2805  ;;  %v2827_v17 = vpop.permute.xlu0 %2826 }
 0x527   : > { %v2811_v13 = vpop.permute.xlu1 %2810 }
 0x528   : > { %v2851_v39 = vpop.permute.xlu0 %2850 }
 0x52c   : > { %v2831_v29 = vpop.permute.xlu1 %2830  ;;  %v2855_v56 = vpop.permute.xlu0 %2854 }
 0x531   : > { %v2847_v14 = vpop.permute.xlu1 %2846 }
 0x536   : > { %v2835_v16 = vpop.permute.xlu1 %2834 }
 0x53a   : > { %v2839_v35 = vpop.permute.xlu1 %2838 }
 0x53f   : > { %v2859_v9 = vpop.permute.xlu1 %2858 }
 0x5eb   : > { %v9184_v18 = vpop.f32.mrb[4].mxu1 }
 0x5ec   : > { %v2814_v19 = vadd.f32 %v9184_v18, %v2801_v15  ;;  %v2766_v20 = vpop.f32.mrb[5].mxu1 }
 0x5ed   : > { %v2813_v21 = vadd.f32 %v2796_v11, %v2766_v20 }
 0x5ee   : > { %v2818_v22 = vmax.f32 %v2814_v19, 0.0 }
 0x5ef   : > { %v2817_v31 = vmax.f32 %v2813_v21, 0.0  ;;  %v9187_v33 = vpop.f32.mrb[6].mxu1 }
 0x5f0   : > { %v2822_v34 = vsel %vm11897_vm9, %v2818_v22, 0.0  ;;  %v2816_v36 = vadd.f32 %v9187_v33, %v2811_v13  ;;  %v2776_v37 = vpop.f32.mrb[7].mxu1 }
 0x5f1   : > { %v2821_v38 = vsel %vm11897_vm9, %v2817_v31, 0.0  ;;  %v2842_v40 = vmul.f32 %v2831_v29, %v2822_v34  ;;  %v2815_v42 = vadd.f32 %v2806_v12, %v2776_v37 }
 0x5f2   : > { %v2841_v43 = vmul.f32 %v2827_v17, %v2821_v38  ;;  %v2820_v45 = vmax.f32 %v2816_v36, 0.0 }
 0x5f3   : > { %v2862_v46 = vadd.f32 %v2851_v39, %v2842_v40  ;;  %v2819_v47 = vmax.f32 %v2815_v42, 0.0  ;;  %v8302_v42 = vld [vmem:[%s13243_s3 + $0x228] sm:$0xff] }
 0x5f4   : > { %v2861_v48 = vadd.f32 %v2847_v14, %v2841_v43  ;;  %v2824_v49 = vsel %vm11897_vm9, %v2820_v45, 0.0 }
 0x5f5   : > { %v12052_v53 = vadd.f32 %v2862_v46, %v11755_v41  ;;  %v2823_v54 = vsel %vm11897_vm9, %v2819_v47, 0.0  ;;  %v2844_v5 = vmul.f32 %v2839_v35, %v2824_v49  ;;  %v8301_v41 = vld [vmem:[%s13243_s3 + $0x220] sm:$0xff]  ;;  %v8303_v49 = vld [vmem:[%s13243_s3 + $0x230] sm:$0xff] }
 0x5f6   : > { %v12057_v7 = vadd.f32 %v2861_v48, %v11760_v44  ;;  %v2843_v55 = vmul.f32 %v2835_v16, %v2823_v54  ;;  %9196 = vmatprep.mubr.msk.f32.mxu0 %vm405_vm0, %v8301_v41 }
 0x5f7   : > { %v2864_v57 = vadd.f32 %v2859_v9, %v2844_v5  ;;  %v10607_v58 = vpack.i.bf16 %v12052_v53, %v11304_v10 }
 0x5f8   : > { %v2863_v59 = vadd.f32 %v2855_v56, %v2843_v55  ;;  %v10612_v61 = vpack.i.bf16 %v12057_v7, %v11304_v10  ;;  %v8304_v56 = vld [vmem:[%s13243_s3 + $0x238] sm:$0xff] }
 0x5f9   : > { %v12067_v50 = vadd.f32 %v2864_v57, %v11770_v52  ;;  %10608 = vrot.lane.b32.xlu1 %v10607_v58, %s11322_s22  ;;  %v10652_v52 = vpack.i.bf16 %v11304_v10, %v12052_v53 }
 0x5fa   : > { %v12072_v44 = vadd.f32 %v2863_v59, %v11775_v6  ;;  %10613 = vrot.lane.b32.xlu0 %v10612_v61, %s11322_s22  ;;  %v10647_v6 = vpack.i.bf16 %v11304_v10, %v12057_v7 }
 0x5fb   : > { %v10617_v62 = vpack.i.bf16 %v12067_v50, %v11304_v10  ;;  %v10657_v0 = vpack.i.bf16 %v11304_v10, %v12067_v50 }
 0x5fc   : > { %v10622_v63 = vpack.i.bf16 %v12072_v44, %v11304_v10  ;;  %v10662_v1 = vpack.i.bf16 %v11304_v10, %v12072_v44 }
 0x5fd   : > { %10618 = vrot.lane.b32.xlu1 %v10617_v62, %s11322_s22 }
 0x5fe   : > { %10623 = vrot.lane.b32.xlu0 %v10622_v63, %s11322_s22 }
 0x601   : > { %10633 = vrot.lane.b32.xlu1 %v10607_v58, %s13260_s25 }
 0x602   : > { %10628 = vrot.lane.b32.xlu0 %v10612_v61, %s13260_s25 }
 0x605   : > { %10638 = vrot.lane.b32.xlu1 %v10617_v62, %s13260_s25  ;;  %v8297_v62 = vld [vmem:[%s13243_s3 + $0x200] sm:$0xff] }
 0x606   : > { %10643 = vrot.lane.b32.xlu0 %v10622_v63, %s13260_s25  ;;  %s13292_s25 = smov 1  }
 0x609   : > { %10653 = vrot.lane.b32.xlu1 %v10652_v52, %s13278_s26 }
 0x60a   : > { %10648 = vrot.lane.b32.xlu0 %v10647_v6, %s13278_s26 }
 0x60d   : > { %10658 = vrot.lane.b32.xlu1 %v10657_v0, %s13278_s26 }
 0x60e   : > { %10663 = vrot.lane.b32.xlu0 %v10662_v1, %s13278_s26 }
 0x611   : > { %10673 = vrot.lane.b32.xlu1 %v10652_v52, %s13258_s23 }
 0x612   : > { %10668 = vrot.lane.b32.xlu0 %v10647_v6, %s13258_s23 }
 0x615   : > { %10683 = vrot.lane.b32.xlu1 %v10657_v0, %s13258_s23 }
 0x616   : > { %10678 = vrot.lane.b32.xlu0 %v10662_v1, %s13258_s23  ;;  %v8298_v1 = vld [vmem:[%s13243_s3 + $0x208] sm:$0xff]  ;;  %s13262_s23 = smov 124  }
 0x619   : > { %3443 = vperm.xlu1 %10688, %v11945_v24  }
 0x61a   : > { %3438 = vperm.xlu0 %10687, %v11940_v23  }
 0x61d   : > { %3448 = vperm.xlu1 %10688, %v11952_v30  }
 0x61e   : > { %3453 = vperm.xlu0 %10687, %v11959_v32  }
 0x621   : > { %10689 = vset.pattern.permute.xlu1 %v11326_v27 }
 0x622   : > { %3475 = vperm.xlu1 %10689, %v11940_v23   ;;  %10690 = vset.pattern.permute.xlu0 %v11326_v27 }
 0x623   : > { %3479 = vperm.xlu0 %10690, %v11945_v24  }
 0x626   : > { %10691 = vset.pattern.permute.xlu1 %v11327_v3 }
 0x627   : > { %3495 = vperm.xlu1 %10691, %v11940_v23   ;;  %3483 = vperm.xlu0 %10690, %v11952_v30  }
 0x62b   : > { %3499 = vperm.xlu1 %10691, %v11945_v24   ;;  %10693 = vset.pattern.permute.xlu0 %v11327_v3 }
 0x62c   : > { %3503 = vperm.xlu0 %10693, %v11952_v30  }
 0x62f   : > { %10692 = vset.pattern.permute.xlu1 %v11326_v27 }
 0x630   : > { %3487 = vperm.xlu1 %10692, %v11959_v32  }
 0x634   : > { %10694 = vset.pattern.permute.xlu1 %v11327_v3 }
 0x635   : > { %3507 = vperm.xlu1 %10694, %v11959_v32  }
 0x66b   : > { %v10609_v25 = vpop.permute.xlu1 %10608 }
 0x66c   : > { %v10611_v4 = vunpack.i.h.bf16 %v10609_v25  ;;  %v10610_v8 = vunpack.i.l.bf16 %v10609_v25  ;;  %v10614_v28 = vpop.permute.xlu0 %10613 }
 0x66d   : > { %v10616_v11 = vunpack.i.h.bf16 %v10614_v28  ;;  %v10615_v12 = vunpack.i.l.bf16 %v10614_v28 }
 0x66e   : > { %v2929_v13 = vsel %vm2927_vm10, %v10610_v8, %v10611_v4  ;;  %v8299_v8 = vld [vmem:[%s13243_s3 + $0x210] sm:$0xff] }
 0x66f   : > { %v10619_v29 = vpop.permute.xlu1 %10618  ;;  %v2928_v14 = vsel %vm2927_vm10, %v10615_v12, %v10616_v11 }
 0x670   : > { %v10621_v15 = vunpack.i.h.bf16 %v10619_v29  ;;  %v10620_v16 = vunpack.i.l.bf16 %v10619_v29  ;;  %v10624_v17 = vpop.permute.xlu0 %10623  ;;  %v9789_v18 = vpack.c.bf16 %v2929_v13, %v2928_v14  ;;  %v8300_v29 = vld [vmem:[%s13243_s3 + $0x218] sm:$0xff] }
 0x671   : > { %v10626_v19 = vunpack.i.h.bf16 %v10624_v17  ;;  %v10625_v20 = vunpack.i.l.bf16 %v10624_v17 }
 0x672   : > { %9790 = vmatprep.subr.bf16.mxu0 %v9789_v18  ;;  %v2931_v21 = vsel %vm2927_vm10, %v10620_v16, %v10621_v15 }
 0x673   : > { %9792 = vmatpush3.bf16.msra.mxu0 %v9789_v18  ;;  %v10634_v22 = vpop.permute.xlu1 %10633  ;;  %v2930_v31 = vsel %vm2927_vm10, %v10625_v20, %v10626_v19  ;;  %v8313_v19 = vld [vmem:[%s13243_s3 + $0x240] sm:$0xff] }
 0x674   : > { %v10636_v33 = vunpack.i.h.bf16 %v10634_v22  ;;  %v10635_v34 = vunpack.i.l.bf16 %v10634_v22  ;;  %v10629_v35 = vpop.permute.xlu0 %10628  ;;  %v9793_v36 = vpack.c.bf16 %v2931_v21, %v2930_v31 }
 0x675   : > { %v10631_v37 = vunpack.i.h.bf16 %v10629_v35  ;;  %v10630_v38 = vunpack.i.l.bf16 %v10629_v35 }
 0x676   : > { %9794 = vmatprep.subr.bf16.mxu0 %v9793_v36  ;;  %v3051_v39 = vsel %vm3049_vm11, %v10635_v34, %v10636_v33  ;;  %v8314_v33 = vld [vmem:[%s13243_s3 + $0x248] sm:$0xff] }
 0x677   : > { %v10639_v40 = vpop.permute.xlu1 %10638  ;;  %9796 = vmatpush3.bf16.msra.mxu0 %v9793_v36  ;;  %v3050_v43 = vsel %vm3049_vm11, %v10630_v38, %v10631_v37 }
 0x678   : > { %v10641_v45 = vunpack.i.h.bf16 %v10639_v40  ;;  %v10640_v46 = vunpack.i.l.bf16 %v10639_v40  ;;  %v10644_v47 = vpop.permute.xlu0 %10643  ;;  %v9797_v48 = vpack.c.bf16 %v3051_v39, %v3050_v43  ;;  %v8315_v39 = vld [vmem:[%s13243_s3 + $0x250] sm:$0xff] }
 0x679   : > { %v10646_v9 = vunpack.i.h.bf16 %v10644_v47  ;;  %v10645_v54 = vunpack.i.l.bf16 %v10644_v47 }
 0x67a   : > { %9197 = vmatmul.mubr.msk.f32.vlgmr.msra.gmra.mrb[8].mxu0 %vm405_vm0, %v8302_v42  ;;  %9798 = vmatprep.subr.bf16.mxu0 %v9797_v48  ;;  %v3053_v5 = vsel %vm3049_vm11, %v10640_v46, %v10641_v45  ;;  %v8316_v45 = vld [vmem:[%s13243_s3 + $0x258] sm:$0xff] }
 0x67b   : > { %v10654_v55 = vpop.permute.xlu1 %10653  ;;  %9800 = vmatpush3.bf16.msra.mxu0 %v9797_v48  ;;  %9199 = vmatprep.mubr.msk.f32.mxu0 %vm405_vm0, %v8303_v49  ;;  %v3052_v57 = vsel %vm3049_vm11, %v10645_v54, %v10646_v9  ;;  %v8321_v48 = vld [vmem:[%s13243_s3 + $0x260] sm:$0xff]  ;;  %v8322_v49 = vld [vmem:[%s13243_s3 + $0x268] sm:$0xff]  ;;  %v8323_v9 = vld [vmem:[%s13243_s3 + $0x270] sm:$0xff] }
 0x67c   : > { %v10656_v58 = vunpack.i.h.bf16 %v10654_v55  ;;  %v10655_v59 = vunpack.i.l.bf16 %v10654_v55  ;;  %v10649_v61 = vpop.permute.xlu0 %10648  ;;  %v9801_v41 = vpack.c.bf16 %v3053_v5, %v3052_v57  ;;  %v8324_v54 = vld [vmem:[%s13243_s3 + $0x278] sm:$0xff] }
 0x67d   : > { %v10651_v63 = vunpack.i.h.bf16 %v10649_v61  ;;  %v10650_v52 = vunpack.i.l.bf16 %v10649_v61 }
 0x67e   : > { %9200 = vmatmul.mubr.msk.f32.gmra.mrb[10].mxu0 %vm405_vm0, %v8304_v56  ;;  %9802 = vmatprep.subr.bf16.mxu0 %v9801_v41  ;;  %v3193_v6 = vsel %vm801_vm3, %v10655_v59, %v10656_v58  ;;  %v357_v58 = vld [vmem:[%s13275_s2 + $0x2] sm:$0x1] }
 0x67f   : > { %v10659_v0 = vpop.permute.xlu1 %10658  ;;  %9804 = vmatpush3.bf16.msra.mxu0 %v9801_v41  ;;  %9210 = vmatprep.mubr.msk.f32.mxu0 %vm405_vm0, %v8297_v62  ;;  %v3192_v2 = vsel %vm801_vm3, %v10650_v52, %v10651_v63  ;;  %vm358_vm13 = vcmp.gt.f32.partialorder %v357_v58, 0.0 }
 0x680   : > { %v10661_v27 = vunpack.i.h.bf16 %v10659_v0  ;;  %v10660_v3 = vunpack.i.l.bf16 %v10659_v0  ;;  %v10664_v25 = vpop.permute.xlu0 %10663  ;;  %v9805_v4 = vpack.c.bf16 %v3193_v6, %v3192_v2  ;;  %v3464_v41 = vsel %vm358_vm13, 1, %v11308_v26 }
 0x681   : > { %v10666_v28 = vunpack.i.h.bf16 %v10664_v25  ;;  %v10665_v11 = vunpack.i.l.bf16 %v10664_v25  ;;  %v3468_v62 = vrot.slane %v3464_v41, %v11624_v51 }
 0x682   : > { %9211 = vmatmul.mubr.msk.f32.vlgmr.msra.gmra.mrb[8].mxu0 %vm405_vm0, %v8298_v1  ;;  %9806 = vmatprep.subr.bf16.mxu0 %v9805_v4  ;;  %v3195_v12 = vsel %vm801_vm3, %v10660_v3, %v10661_v27 }
 0x683   : > { %v10674_v13 = vpop.permute.xlu1 %10673  ;;  %9808 = vmatpush3.bf16.msra.mxu0 %v9805_v4  ;;  %9213 = vmatprep.mubr.msk.f32.mxu0 %vm405_vm0, %v8299_v8  ;;  %v3194_v14 = vsel %vm801_vm3, %v10665_v11, %v10666_v28  ;;  %vm12194_vm14 = vcmp.eq.s32.totalorder %v3468_v62, 1 }
 0x684   : > { %v10676_v15 = vunpack.i.h.bf16 %v10674_v13  ;;  %v10675_v16 = vunpack.i.l.bf16 %v10674_v13  ;;  %v10669_v17 = vpop.permute.xlu0 %10668  ;;  %v9809_v18 = vpack.c.bf16 %v3195_v12, %v3194_v14 }
 0x685   : > { %v10671_v20 = vunpack.i.h.bf16 %v10669_v17  ;;  %v10670_v21 = vunpack.i.l.bf16 %v10669_v17 }
 0x686   : > { %9214 = vmatmul.mubr.msk.f32.gmra.mrb[10].mxu0 %vm405_vm0, %v8300_v29  ;;  %9810 = vmatprep.subr.bf16.mxu0 %v9809_v18  ;;  %v3324_v22 = vsel %vm3322_vm12, %v10675_v16, %v10676_v15 }
 0x687   : > { %v10684_v31 = vpop.permute.xlu1 %10683  ;;  %9812 = vmatpush3.bf16.msra.mxu0 %v9809_v18  ;;  %9224 = vmatprep.mubr.msk.f32.mxu0 %vm405_vm0, %v8313_v19  ;;  %v3323_v34 = vsel %vm3322_vm12, %v10670_v21, %v10671_v20 }
 0x688   : > { %v10686_v35 = vunpack.i.h.bf16 %v10684_v31  ;;  %v10685_v36 = vunpack.i.l.bf16 %v10684_v31  ;;  %v10679_v37 = vpop.permute.xlu0 %10678  ;;  %v9813_v38 = vpack.c.bf16 %v3324_v22, %v3323_v34 }
 0x689   : > { %v10681_v40 = vunpack.i.h.bf16 %v10679_v37  ;;  %v10680_v42 = vunpack.i.l.bf16 %v10679_v37 }
 0x68a   : > { %9225 = vmatmul.mubr.msk.f32.vlgmr.msra.gmra.mrb[8].mxu0 %vm405_vm0, %v8314_v33  ;;  %9814 = vmatprep.subr.bf16.mxu0 %v9813_v38  ;;  %v3326_v43 = vsel %vm3322_vm12, %v10685_v36, %v10686_v35 }
 0x68b   : > { %9816 = vmatpush3.bf16.msra.mxu0 %v9813_v38  ;;  %9227 = vmatprep.mubr.msk.f32.mxu0 %vm405_vm0, %v8315_v39  ;;  %v3325_v46 = vsel %vm3322_vm12, %v10680_v42, %v10681_v40  ;;  %v8333_v38 = vld [vmem:[%s13243_s3 + $0x2a0] sm:$0xff] }
 0x68c   : > { %v9817_v47 = vpack.c.bf16 %v3326_v43, %v3325_v46  ;;  %9252 = vmatprep.mubr.msk.f32.mxu1 %vm405_vm0, %v8333_v38  ;;  %v8329_v38 = vld [vmem:[%s13243_s3 + $0x280] sm:$0xff] }
 0x68e   : > { %9228 = vmatmul.mubr.msk.f32.gmra.mrb[10].mxu0 %vm405_vm0, %v8316_v45  ;;  %9818 = vmatprep.subr.bf16.mxu0 %v9817_v47 }
 0x68f   : > { %9820 = vmatpush3.bf16.msra.mxu0 %v9817_v47  ;;  %9238 = vmatprep.mubr.msk.f32.mxu0 %vm405_vm0, %v8321_v48 }
 0x692   : > { %9239 = vmatmul.mubr.msk.f32.vlgmr.msra.gmra.mrb[8].mxu0 %vm405_vm0, %v8322_v49  ;;  %v11328_v49 = vmov 15  }
 0x693   : > { %9241 = vmatprep.mubr.msk.f32.mxu0 %vm405_vm0, %v8323_v9  ;;  %10775 = vset.pattern.permute.xlu1 %v11328_v49  ;;  %v11329_v9 = vmov 16  }
 0x694   : > { %10776 = vset.pattern.permute.xlu0 %v11328_v49 }
 0x696   : > { %9242 = vmatmul.mubr.msk.f32.gmra.mrb[10].mxu0 %vm405_vm0, %v8324_v54  ;;  %v11330_v54 = vmov 17  }
 0x698   : > { %v3444_v5 = vpop.permute.xlu1 %3443 }
 0x699   : > { %v3439_v57 = vpop.permute.xlu0 %3438 }
 0x69c   : > { %v3449_v55 = vpop.permute.xlu1 %3448 }
 0x69d   : > { %v3454_v61 = vpop.permute.xlu0 %3453 }
 0x6a1   : > { %v3476_v56 = vpop.permute.xlu1 %3475 }
 0x6a2   : > { %v3480_v52 = vpop.permute.xlu0 %3479 }
 0x6a6   : > { %v3496_v59 = vpop.permute.xlu1 %3495  ;;  %v3484_v14 = vpop.permute.xlu0 %3483 }
 0x6aa   : > { %v3500_v63 = vpop.permute.xlu1 %3499 }
 0x6ab   : > { %v3504_v34 = vpop.permute.xlu0 %3503 }
 0x6af   : > { %v3488_v25 = vpop.permute.xlu1 %3487 }
 0x6b4   : > { %v3508_v22 = vpop.permute.xlu1 %3507 }
 0x765   : > { %v9240_v6 = vpop.f32.mrb[8].mxu0 }
 0x766   : > { %v3457_v0 = vadd.f32 %v9240_v6, %v3444_v5  ;;  %v3409_v1 = vpop.f32.mrb[9].mxu0 }
 0x767   : > { %v3456_v27 = vadd.f32 %v3439_v57, %v3409_v1 }
 0x768   : > { %v3461_v3 = vmax.f32 %v3457_v0, 0.0 }
 0x769   : > { %v3460_v4 = vmax.f32 %v3456_v27, 0.0  ;;  %v9243_v8 = vpop.f32.mrb[10].mxu0 }
 0x76a   : > { %v3471_v28 = vsel %vm12194_vm14, %v3461_v3, 0.0  ;;  %v3459_v11 = vadd.f32 %v9243_v8, %v3454_v61  ;;  %v3419_v12 = vpop.f32.mrb[11].mxu0 }
 0x76b   : > { %v3491_v13 = vmul.f32 %v3480_v52, %v3471_v28  ;;  %v3470_v29 = vsel %vm12194_vm14, %v3460_v4, 0.0  ;;  %v3458_v15 = vadd.f32 %v3449_v55, %v3419_v12 }
 0x76c   : > { %v3490_v16 = vmul.f32 %v3476_v56, %v3470_v29  ;;  %v3463_v17 = vmax.f32 %v3459_v11, 0.0 }
 0x76d   : > { %v3511_v18 = vadd.f32 %v3500_v63, %v3491_v13  ;;  %v3462_v19 = vmax.f32 %v3458_v15, 0.0  ;;  %v8334_v13 = vld [vmem:[%s13243_s3 + $0x2a8] sm:$0xff] }
 0x76e   : > { %v3510_v20 = vadd.f32 %v3496_v59, %v3490_v16  ;;  %v3473_v21 = vsel %vm12194_vm14, %v3463_v17, 0.0 }
 0x76f   : > { %v3472_v31 = vsel %vm12194_vm14, %v3462_v19, 0.0  ;;  %v3493_v33 = vmul.f32 %v3488_v25, %v3473_v21  ;;  %v10695_v35 = vpack.i.bf16 %v3511_v18, %v11304_v10  ;;  %v10740_v45 = vpack.i.bf16 %v11304_v10, %v3511_v18  ;;  %v8335_v18 = vld [vmem:[%s13243_s3 + $0x2b0] sm:$0xff] }
 0x770   : > { %v3492_v36 = vmul.f32 %v3484_v14, %v3472_v31  ;;  %v10700_v37 = vpack.i.bf16 %v3510_v20, %v11304_v10  ;;  %v10735_v46 = vpack.i.bf16 %v11304_v10, %v3510_v20  ;;  %v8336_v31 = vld [vmem:[%s13243_s3 + $0x2b8] sm:$0xff] }
 0x771   : > { %v3513_v39 = vadd.f32 %v3508_v22, %v3493_v33  ;;  %10696 = vrot.lane.b32.xlu0 %v10695_v35, %s11322_s22 }
 0x772   : > { %v3512_v40 = vadd.f32 %v3504_v34, %v3492_v36  ;;  %10701 = vrot.lane.b32.xlu1 %v10700_v37, %s11322_s22 }
 0x773   : > { %v10705_v42 = vpack.i.bf16 %v3513_v39, %v11304_v10  ;;  %v10745_v47 = vpack.i.bf16 %v11304_v10, %v3513_v39 }
 0x774   : > { %v10710_v43 = vpack.i.bf16 %v3512_v40, %v11304_v10  ;;  %v10750_v48 = vpack.i.bf16 %v11304_v10, %v3512_v40 }
 0x775   : > { %10706 = vrot.lane.b32.xlu0 %v10705_v42, %s11322_s22 }
 0x776   : > { %10711 = vrot.lane.b32.xlu1 %v10710_v43, %s11322_s22  ;;  %s13286_s22 = smov 122  }
 0x779   : > { %10721 = vrot.lane.b32.xlu0 %v10695_v35, %s13285_s28 }
 0x77a   : > { %10716 = vrot.lane.b32.xlu1 %v10700_v37, %s13285_s28 }
 0x77d   : > { %10726 = vrot.lane.b32.xlu0 %v10705_v42, %s13285_s28 }
 0x77e   : > { %10731 = vrot.lane.b32.xlu1 %v10710_v43, %s13285_s28  ;;  %s13289_s28 = smov 12  }
 0x781   : > { %10741 = vrot.lane.b32.xlu0 %v10740_v45, %s13278_s26 }
 0x782   : > { %10736 = vrot.lane.b32.xlu1 %v10735_v46, %s13278_s26 }
 0x785   : > { %10746 = vrot.lane.b32.xlu0 %v10745_v47, %s13278_s26 }
 0x786   : > { %10751 = vrot.lane.b32.xlu1 %v10750_v48, %s13278_s26 }
 0x789   : > { %10761 = vrot.lane.b32.xlu0 %v10740_v45, %s13286_s22  ;;  %v8330_v45 = vld [vmem:[%s13243_s3 + $0x288] sm:$0xff] }
 0x78a   : > { %10756 = vrot.lane.b32.xlu1 %v10735_v46, %s13286_s22 }
 0x78d   : > { %10771 = vrot.lane.b32.xlu0 %v10745_v47, %s13286_s22 }
 0x78e   : > { %10766 = vrot.lane.b32.xlu1 %v10750_v48, %s13286_s22  ;;  %s13290_s22 = smov 124  }
 0x791   : > { %4073 = vperm.xlu0 %10776, %v11945_v24  }
 0x792   : > { %4068 = vperm.xlu1 %10775, %v11940_v23  }
 0x795   : > { %10777 = vset.pattern.permute.xlu0 %v11329_v9 }
 0x796   : > { %4078 = vperm.xlu1 %10775, %v11952_v30   ;;  %4099 = vperm.xlu0 %10777, %v11940_v23  }
 0x79a   : > { %4083 = vperm.xlu1 %10775, %v11959_v32   ;;  %10780 = vset.pattern.permute.xlu0 %v11330_v54 }
 0x79b   : > { %4123 = vperm.xlu0 %10780, %v11945_v24  }
 0x79e   : > { %10778 = vset.pattern.permute.xlu1 %v11329_v9 }
 0x79f   : > { %4103 = vperm.xlu1 %10778, %v11945_v24   ;;  %4127 = vperm.xlu0 %10780, %v11952_v30  }
 0x7a3   : > { %10779 = vset.pattern.permute.xlu1 %v11330_v54 }
 0x7a4   : > { %4119 = vperm.xlu1 %10779, %v11940_v23  }
 0x7a8   : > { %10781 = vset.pattern.permute.xlu1 %v11329_v9 }
 0x7a9   : > { %4107 = vperm.xlu1 %10781, %v11952_v30  }
 0x7ad   : > { %4111 = vperm.xlu1 %10781, %v11959_v32  }
 0x7b1   : > { %10782 = vset.pattern.permute.xlu1 %v11330_v54  ;;  %v8331_v54 = vld [vmem:[%s13243_s3 + $0x290] sm:$0xff] }
 0x7b2   : > { %4131 = vperm.xlu1 %10782, %v11959_v32  }
 0x7e3   : > { %v10697_v5 = vpop.permute.xlu0 %10696 }
 0x7e4   : > { %v10699_v55 = vunpack.i.h.bf16 %v10697_v5  ;;  %v10698_v56 = vunpack.i.l.bf16 %v10697_v5  ;;  %v10702_v57 = vpop.permute.xlu1 %10701 }
 0x7e5   : > { %v10704_v58 = vunpack.i.h.bf16 %v10702_v57  ;;  %v10703_v59 = vunpack.i.l.bf16 %v10702_v57 }
 0x7e6   : > { %v3561_v24 = vsel %vm2927_vm10, %v10698_v56, %v10699_v55 }
 0x7e7   : > { %v10707_v61 = vpop.permute.xlu0 %10706  ;;  %v3560_v41 = vsel %vm2927_vm10, %v10703_v59, %v10704_v58  ;;  %v8332_v58 = vld [vmem:[%s13243_s3 + $0x298] sm:$0xff] }
 0x7e8   : > { %v10709_v23 = vunpack.i.h.bf16 %v10707_v61  ;;  %v10708_v62 = vunpack.i.l.bf16 %v10707_v61  ;;  %v10712_v63 = vpop.permute.xlu1 %10711  ;;  %v9821_v30 = vpack.c.bf16 %v3561_v24, %v3560_v41 }
 0x7e9   : > { %v10714_v52 = vunpack.i.h.bf16 %v10712_v63  ;;  %v10713_v6 = vunpack.i.l.bf16 %v10712_v63 }
 0x7ea   : > { %9822 = vmatprep.subr.bf16.mxu1 %v9821_v30  ;;  %v3563_v32 = vsel %vm2927_vm10, %v10708_v62, %v10709_v23  ;;  %v8345_v62 = vld [vmem:[%s13243_s3 + $0x2c0] sm:$0xff] }
 0x7eb   : > { %9824 = vmatpush3.bf16.msra.mxu1 %v9821_v30  ;;  %v10722_v0 = vpop.permute.xlu0 %10721  ;;  %v3562_v1 = vsel %vm2927_vm10, %v10713_v6, %v10714_v52 }
 0x7ec   : > { %v10724_v27 = vunpack.i.h.bf16 %v10722_v0  ;;  %v10723_v3 = vunpack.i.l.bf16 %v10722_v0  ;;  %v10717_v25 = vpop.permute.xlu1 %10716  ;;  %v9825_v4 = vpack.c.bf16 %v3563_v32, %v3562_v1  ;;  %v8346_v32 = vld [vmem:[%s13243_s3 + $0x2c8] sm:$0xff] }
 0x7ed   : > { %v10719_v8 = vunpack.i.h.bf16 %v10717_v25  ;;  %v10718_v28 = vunpack.i.l.bf16 %v10717_v25 }
 0x7ee   : > { %9826 = vmatprep.subr.bf16.mxu1 %v9825_v4  ;;  %v3682_v11 = vsel %vm3049_vm11, %v10723_v3, %v10724_v27 }
 0x7ef   : > { %v10727_v12 = vpop.permute.xlu0 %10726  ;;  %9828 = vmatpush3.bf16.msra.mxu1 %v9825_v4  ;;  %v3681_v29 = vsel %vm3049_vm11, %v10718_v28, %v10719_v8  ;;  %v8347_v4 = vld [vmem:[%s13243_s3 + $0x2d0] sm:$0xff] }
 0x7f0   : > { %v10729_v14 = vunpack.i.h.bf16 %v10727_v12  ;;  %v10728_v15 = vunpack.i.l.bf16 %v10727_v12  ;;  %v10732_v16 = vpop.permute.xlu1 %10731  ;;  %v9829_v17 = vpack.c.bf16 %v3682_v11, %v3681_v29  ;;  %v8348_v12 = vld [vmem:[%s13243_s3 + $0x2d8] sm:$0xff] }
 0x7f1   : > { %v10734_v19 = vunpack.i.h.bf16 %v10732_v16  ;;  %v10733_v20 = vunpack.i.l.bf16 %v10732_v16  ;;  %v8355_v16 = vld [vmem:[%s13243_s3 + $0x2f0] sm:$0xff] }
 0x7f2   : > { %9253 = vmatmul.mubr.msk.f32.vlgmr.msra.gmra.mrb[8].mxu1 %vm405_vm0, %v8334_v13  ;;  %9830 = vmatprep.subr.bf16.mxu1 %v9829_v17  ;;  %v3684_v21 = vsel %vm3049_vm11, %v10728_v15, %v10729_v14  ;;  %v8353_v14 = vld [vmem:[%s13243_s3 + $0x2e0] sm:$0xff]  ;;  %v8354_v15 = vld [vmem:[%s13243_s3 + $0x2e8] sm:$0xff] }
 0x7f3   : > { %v10742_v22 = vpop.permute.xlu0 %10741  ;;  %9832 = vmatpush3.bf16.msra.mxu1 %v9829_v17  ;;  %9255 = vmatprep.mubr.msk.f32.mxu1 %vm405_vm0, %v8335_v18  ;;  %v3683_v33 = vsel %vm3049_vm11, %v10733_v20, %v10734_v19  ;;  %v8356_v17 = vld [vmem:[%s13243_s3 + $0x2f8] sm:$0xff] }
 0x7f4   : > { %v10744_v34 = vunpack.i.h.bf16 %v10742_v22  ;;  %v10743_v35 = vunpack.i.l.bf16 %v10742_v22  ;;  %v10737_v36 = vpop.permute.xlu1 %10736  ;;  %v9833_v37 = vpack.c.bf16 %v3684_v21, %v3683_v33 }
 0x7f5   : > { %v10739_v39 = vunpack.i.h.bf16 %v10737_v36  ;;  %v10738_v40 = vunpack.i.l.bf16 %v10737_v36 }
 0x7f6   : > { %9256 = vmatmul.mubr.msk.f32.gmra.mrb[10].mxu1 %vm405_vm0, %v8336_v31  ;;  %9834 = vmatprep.subr.bf16.mxu1 %v9833_v37  ;;  %v3824_v42 = vsel %vm801_vm3, %v10743_v35, %v10744_v34 }
 0x7f7   : > { %v10747_v43 = vpop.permute.xlu0 %10746  ;;  %9836 = vmatpush3.bf16.msra.mxu1 %v9833_v37  ;;  %9266 = vmatprep.mubr.msk.f32.mxu1 %vm405_vm0, %v8329_v38  ;;  %v3823_v46 = vsel %vm801_vm3, %v10738_v40, %v10739_v39 }
 0x7f8   : > { %v10749_v47 = vunpack.i.h.bf16 %v10747_v43  ;;  %v10748_v48 = vunpack.i.l.bf16 %v10747_v43  ;;  %v10752_v49 = vpop.permute.xlu1 %10751  ;;  %v9837_v9 = vpack.c.bf16 %v3824_v42, %v3823_v46 }
 0x7f9   : > { %v10754_v5 = vunpack.i.h.bf16 %v10752_v49  ;;  %v10753_v55 = vunpack.i.l.bf16 %v10752_v49 }
 0x7fa   : > { %9267 = vmatmul.mubr.msk.f32.vlgmr.msra.gmra.mrb[8].mxu1 %vm405_vm0, %v8330_v45  ;;  %9838 = vmatprep.subr.bf16.mxu1 %v9837_v9  ;;  %v3826_v56 = vsel %vm801_vm3, %v10748_v48, %v10749_v47 }
 0x7fb   : > { %v10762_v57 = vpop.permute.xlu0 %10761  ;;  %9840 = vmatpush3.bf16.msra.mxu1 %v9837_v9  ;;  %9269 = vmatprep.mubr.msk.f32.mxu1 %vm405_vm0, %v8331_v54  ;;  %v3825_v59 = vsel %vm801_vm3, %v10753_v55, %v10754_v5 }
 0x7fc   : > { %v10764_v24 = vunpack.i.h.bf16 %v10762_v57  ;;  %v10763_v61 = vunpack.i.l.bf16 %v10762_v57  ;;  %v10757_v41 = vpop.permute.xlu1 %10756  ;;  %v9841_v23 = vpack.c.bf16 %v3826_v56, %v3825_v59 }
 0x7fd   : > { %v10759_v63 = vunpack.i.h.bf16 %v10757_v41  ;;  %v10758_v30 = vunpack.i.l.bf16 %v10757_v41 }
 0x7fe   : > { %9270 = vmatmul.mubr.msk.f32.gmra.mrb[10].mxu1 %vm405_vm0, %v8332_v58  ;;  %9842 = vmatprep.subr.bf16.mxu1 %v9841_v23  ;;  %v3954_v52 = vsel %vm3322_vm12, %v10763_v61, %v10764_v24 }
 0x7ff   : > { %v10772_v6 = vpop.permute.xlu0 %10771  ;;  %9844 = vmatpush3.bf16.msra.mxu1 %v9841_v23  ;;  %9280 = vmatprep.mubr.msk.f32.mxu1 %vm405_vm0, %v8345_v62  ;;  %v3953_v0 = vsel %vm3322_vm12, %v10758_v30, %v10759_v63 }
 0x800   : > { %v10774_v1 = vunpack.i.h.bf16 %v10772_v6  ;;  %v10773_v27 = vunpack.i.l.bf16 %v10772_v6  ;;  %v10767_v3 = vpop.permute.xlu1 %10766  ;;  %v9845_v25 = vpack.c.bf16 %v3954_v52, %v3953_v0 }
 0x801   : > { %v10769_v8 = vunpack.i.h.bf16 %v10767_v3  ;;  %v10768_v28 = vunpack.i.l.bf16 %v10767_v3 }
 0x802   : > { %9281 = vmatmul.mubr.msk.f32.vlgmr.msra.gmra.mrb[8].mxu1 %vm405_vm0, %v8346_v32  ;;  %9846 = vmatprep.subr.bf16.mxu1 %v9845_v25  ;;  %v3956_v11 = vsel %vm3322_vm12, %v10773_v27, %v10774_v1 }
 0x803   : > { %9848 = vmatpush3.bf16.msra.mxu1 %v9845_v25  ;;  %9283 = vmatprep.mubr.msk.f32.mxu1 %vm405_vm0, %v8347_v4  ;;  %v3955_v13 = vsel %vm3322_vm12, %v10768_v28, %v10769_v8  ;;  %v12381_v4 = vld [vmem:[%s13244_s4 + $0x8] sm:$0xff]  ;;  %v11335_v8 = vmov 18   ;;  %v12386_v28 = vld [vmem:[%s13244_s4] sm:$0xff] }
 0x804   : > { %v9849_v29 = vpack.c.bf16 %v3956_v11, %v3955_v13  ;;  %10864 = vset.pattern.permute.xlu1 %v11335_v8  ;;  %10863 = vset.pattern.permute.xlu0 %v11335_v8  ;;  %v12392_v11 = vld [vmem:[%s13244_s4 + $0x10] sm:$0xff]  ;;  %v11336_v13 = vmov 19  }
 0x806   : > { %9284 = vmatmul.mubr.msk.f32.gmra.mrb[10].mxu1 %vm405_vm0, %v8348_v12  ;;  %9850 = vmatprep.subr.bf16.mxu1 %v9849_v29  ;;  %v12398_v12 = vld [vmem:[%s13244_s4 + $0x18] sm:$0xff] }
 0x807   : > { %9852 = vmatpush3.bf16.msra.mxu1 %v9849_v29  ;;  %9294 = vmatprep.mubr.msk.f32.mxu1 %vm405_vm0, %v8353_v14  ;;  %v11337_v29 = vmov 20  }
 0x80a   : > { %9295 = vmatmul.mubr.msk.f32.vlgmr.msra.gmra.mrb[8].mxu1 %vm405_vm0, %v8354_v15 }
 0x80b   : > { %9297 = vmatprep.mubr.msk.f32.mxu1 %vm405_vm0, %v8355_v16 }
 0x80e   : > { %9298 = vmatmul.mubr.msk.f32.gmra.mrb[10].mxu1 %vm405_vm0, %v8356_v17 }
 0x810   : > { %v4074_v31 = vpop.permute.xlu0 %4073 }
 0x811   : > { %v4069_v18 = vpop.permute.xlu1 %4068 }
 0x815   : > { %v4079_v19 = vpop.permute.xlu1 %4078  ;;  %v4100_v34 = vpop.permute.xlu0 %4099 }
 0x819   : > { %v4084_v20 = vpop.permute.xlu1 %4083 }
 0x81a   : > { %v4124_v49 = vpop.permute.xlu0 %4123 }
 0x81e   : > { %v4104_v21 = vpop.permute.xlu1 %4103  ;;  %v4128_v30 = vpop.permute.xlu0 %4127 }
 0x823   : > { %v4120_v22 = vpop.permute.xlu1 %4119 }
 0x828   : > { %v4108_v33 = vpop.permute.xlu1 %4107 }
 0x82c   : > { %v4112_v45 = vpop.permute.xlu1 %4111 }
 0x831   : > { %v4132_v24 = vpop.permute.xlu1 %4131 }
 0x8dd   : > { %v9296_v35 = vpop.f32.mrb[8].mxu1 }
 0x8de   : > { %v4087_v36 = vadd.f32 %v9296_v35, %v4074_v31  ;;  %v4039_v37 = vpop.f32.mrb[9].mxu1 }
 0x8df   : > { %v4086_v38 = vadd.f32 %v4069_v18, %v4039_v37 }
 0x8e0   : > { %v4091_v39 = vmax.f32 %v4087_v36, 0.0 }
 0x8e1   : > { %v4090_v40 = vmax.f32 %v4086_v38, 0.0  ;;  %v9299_v42 = vpop.f32.mrb[10].mxu1 }
 0x8e2   : > { %v4095_v43 = vsel %vm12194_vm14, %v4091_v39, 0.0  ;;  %v4089_v46 = vadd.f32 %v9299_v42, %v4084_v20  ;;  %v4049_v47 = vpop.f32.mrb[11].mxu1 }
 0x8e3   : > { %v4094_v48 = vsel %vm12194_vm14, %v4090_v40, 0.0  ;;  %v4115_v9 = vmul.f32 %v4104_v21, %v4095_v43  ;;  %v4088_v54 = vadd.f32 %v4079_v19, %v4049_v47 }
 0x8e4   : > { %v4114_v5 = vmul.f32 %v4100_v34, %v4094_v48  ;;  %v4093_v55 = vmax.f32 %v4089_v46, 0.0 }
 0x8e5   : > { %v4135_v56 = vadd.f32 %v4124_v49, %v4115_v9  ;;  %v4092_v57 = vmax.f32 %v4088_v54, 0.0  ;;  %v8366_v54 = vld [vmem:[%s13243_s3 + $0x328] sm:$0xff] }
 0x8e6   : > { %v4134_v58 = vadd.f32 %v4120_v22, %v4114_v5  ;;  %v4097_v59 = vsel %vm12194_vm14, %v4093_v55, 0.0 }
 0x8e7   : > { %v12329_v61 = vadd.f32 %v4135_v56, %v12052_v53  ;;  %v4096_v41 = vsel %vm12194_vm14, %v4092_v57, 0.0  ;;  %v4117_v23 = vmul.f32 %v4112_v45, %v4097_v59  ;;  %v8365_v53 = vld [vmem:[%s13243_s3 + $0x320] sm:$0xff]  ;;  %v8367_v59 = vld [vmem:[%s13243_s3 + $0x330] sm:$0xff] }
 0x8e8   : > { %v12334_v62 = vadd.f32 %v4134_v58, %v12057_v7  ;;  %v4116_v63 = vmul.f32 %v4108_v33, %v4096_v41  ;;  %9308 = vmatprep.mubr.msk.f32.mxu0 %vm405_vm0, %v8365_v53 }
 0x8e9   : > { %v4137_v52 = vadd.f32 %v4132_v24, %v4117_v23  ;;  %v10783_v6 = vpack.i.bf16 %v12329_v61, %v11304_v10 }
 0x8ea   : > { %v4136_v32 = vadd.f32 %v4128_v30, %v4116_v63  ;;  %v10788_v0 = vpack.i.bf16 %v12334_v62, %v11304_v10  ;;  %v8368_v30 = vld [vmem:[%s13243_s3 + $0x338] sm:$0xff] }
 0x8eb   : > { %v12344_v2 = vadd.f32 %v4137_v52, %v12067_v50  ;;  %10784 = vrot.lane.b32.xlu1 %v10783_v6, %s11331_s16  ;;  %v10828_v50 = vpack.i.bf16 %v11304_v10, %v12329_v61 }
 0x8ec   : > { %v12349_v7 = vadd.f32 %v4136_v32, %v12072_v44  ;;  %10789 = vrot.lane.b32.xlu0 %v10788_v0, %s11331_s16  ;;  %v10823_v44 = vpack.i.bf16 %v11304_v10, %v12334_v62 }
 0x8ed   : > { %v10793_v1 = vpack.i.bf16 %v12344_v2, %v11304_v10  ;;  %v10833_v3 = vpack.i.bf16 %v11304_v10, %v12344_v2 }
 0x8ee   : > { %v10798_v27 = vpack.i.bf16 %v12349_v7, %v11304_v10  ;;  %v10838_v25 = vpack.i.bf16 %v11304_v10, %v12349_v7 }
 0x8ef   : > { %10794 = vrot.lane.b32.xlu1 %v10793_v1, %s11331_s16 }
 0x8f0   : > { %10799 = vrot.lane.b32.xlu0 %v10798_v27, %s11331_s16 }
 0x8f3   : > { %10809 = vrot.lane.b32.xlu1 %v10783_v6, %s13264_s24 }
 0x8f4   : > { %10804 = vrot.lane.b32.xlu0 %v10788_v0, %s13264_s24 }
 0x8f7   : > { %10814 = vrot.lane.b32.xlu1 %v10793_v1, %s13264_s24  ;;  %v8361_v1 = vld [vmem:[%s13243_s3 + $0x300] sm:$0xff] }
 0x8f8   : > { %10819 = vrot.lane.b32.xlu0 %v10798_v27, %s13264_s24  ;;  %s8169_s24 = sshll.u32 %s334_s17, 4 }
 0x8fb   : > { %10829 = vrot.lane.b32.xlu1 %v10828_v50, %s13262_s23 }
 0x8fc   : > { %10824 = vrot.lane.b32.xlu0 %v10823_v44, %s13262_s23 }
 0x8ff   : > { %10834 = vrot.lane.b32.xlu1 %v10833_v3, %s13262_s23 }
 0x900   : > { %10839 = vrot.lane.b32.xlu0 %v10838_v25, %s13262_s23 }
 0x903   : > { %10849 = vrot.lane.b32.xlu1 %v10828_v50, %s13266_s29 }
 0x904   : > { %10844 = vrot.lane.b32.xlu0 %v10823_v44, %s13266_s29 }
 0x907   : > { %10859 = vrot.lane.b32.xlu1 %v10833_v3, %s13266_s29 }
 0x908   : > { %10854 = vrot.lane.b32.xlu0 %v10838_v25, %s13266_s29  ;;  %v8362_v25 = vld [vmem:[%s13243_s3 + $0x308] sm:$0xff]  ;;  %s336_s29 = scalar_lea.vmem [#allocation4], %s8169_s24 }
 0x909   : > { %s8094_s23 = sshll.u32 %s336_s29, 4  ;;  %s13192_s23 = int_to_ptr.vmem [resolvable:$true] %s8094_s23 }
 0x90b   : > { %4717 = vperm.xlu1 %10864, %v12381_v4  }
 0x90c   : > { %4712 = vperm.xlu0 %10863, %v12386_v28  }
 0x90f   : > { %4722 = vperm.xlu1 %10864, %v12392_v11  }
 0x910   : > { %4727 = vperm.xlu0 %10863, %v12398_v12  }
 0x913   : > { %10865 = vset.pattern.permute.xlu1 %v11336_v13 }
 0x914   : > { %4749 = vperm.xlu1 %10865, %v12386_v28   ;;  %10866 = vset.pattern.permute.xlu0 %v11336_v13 }
 0x915   : > { %4753 = vperm.xlu0 %10866, %v12381_v4  }
 0x918   : > { %10867 = vset.pattern.permute.xlu1 %v11337_v29 }
 0x919   : > { %4769 = vperm.xlu1 %10867, %v12386_v28   ;;  %4757 = vperm.xlu0 %10866, %v12392_v11  }
 0x91d   : > { %4773 = vperm.xlu1 %10867, %v12381_v4   ;;  %10869 = vset.pattern.permute.xlu0 %v11337_v29 }
 0x91e   : > { %4777 = vperm.xlu0 %10869, %v12392_v11  }
 0x921   : > { %10868 = vset.pattern.permute.xlu1 %v11336_v13 }
 0x922   : > { %4761 = vperm.xlu1 %10868, %v12398_v12  }
 0x926   : > { %10870 = vset.pattern.permute.xlu1 %v11337_v29 }
 0x927   : > { %4781 = vperm.xlu1 %10870, %v12398_v12  }
 0x95d   : > { %v10785_v14 = vpop.permute.xlu1 %10784 }
 0x95e   : > { %v10787_v15 = vunpack.i.h.bf16 %v10785_v14  ;;  %v10786_v16 = vunpack.i.l.bf16 %v10785_v14  ;;  %v10790_v17 = vpop.permute.xlu0 %10789 }
 0x95f   : > { %v10792_v18 = vunpack.i.h.bf16 %v10790_v17  ;;  %v10791_v19 = vunpack.i.l.bf16 %v10790_v17 }
 0x960   : > { %v4202_v20 = vsel %vm4200_vm15, %v10786_v16, %v10787_v15  ;;  %v8363_v16 = vld [vmem:[%s13243_s3 + $0x310] sm:$0xff] }
 0x961   : > { %v10795_v21 = vpop.permute.xlu1 %10794  ;;  %v4201_v22 = vsel %vm4200_vm15, %v10791_v19, %v10792_v18 }
 0x962   : > { %v10797_v31 = vunpack.i.h.bf16 %v10795_v21  ;;  %v10796_v33 = vunpack.i.l.bf16 %v10795_v21  ;;  %v10800_v34 = vpop.permute.xlu0 %10799  ;;  %v9853_v35 = vpack.c.bf16 %v4202_v20, %v4201_v22  ;;  %v8364_v21 = vld [vmem:[%s13243_s3 + $0x318] sm:$0xff] }
 0x963   : > { %v10802_v36 = vunpack.i.h.bf16 %v10800_v34  ;;  %v10801_v37 = vunpack.i.l.bf16 %v10800_v34 }
 0x964   : > { %9854 = vmatprep.subr.bf16.mxu0 %v9853_v35  ;;  %v4204_v38 = vsel %vm4200_vm15, %v10796_v33, %v10797_v31 }
 0x965   : > { %9856 = vmatpush3.bf16.msra.mxu0 %v9853_v35  ;;  %v10810_v39 = vpop.permute.xlu1 %10809  ;;  %v4203_v40 = vsel %vm4200_vm15, %v10801_v37, %v10802_v36  ;;  %v8377_v36 = vld [vmem:[%s13243_s3 + $0x340] sm:$0xff] }
 0x966   : > { %v10812_v42 = vunpack.i.h.bf16 %v10810_v39  ;;  %v10811_v43 = vunpack.i.l.bf16 %v10810_v39  ;;  %v10805_v45 = vpop.permute.xlu0 %10804  ;;  %v9857_v46 = vpack.c.bf16 %v4204_v38, %v4203_v40 }
 0x967   : > { %v10807_v47 = vunpack.i.h.bf16 %v10805_v45  ;;  %v10806_v48 = vunpack.i.l.bf16 %v10805_v45 }
 0x968   : > { %9858 = vmatprep.subr.bf16.mxu0 %v9857_v46  ;;  %v4324_v49 = vsel %vm4322_vm4, %v10811_v43, %v10812_v42  ;;  %v8378_v42 = vld [vmem:[%s13243_s3 + $0x348] sm:$0xff] }
 0x969   : > { %v10815_v9 = vpop.permute.xlu1 %10814  ;;  %9860 = vmatpush3.bf16.msra.mxu0 %v9857_v46  ;;  %v4323_v5 = vsel %vm4322_vm4, %v10806_v48, %v10807_v47 }
 0x96a   : > { %v10817_v55 = vunpack.i.h.bf16 %v10815_v9  ;;  %v10816_v56 = vunpack.i.l.bf16 %v10815_v9  ;;  %v10820_v57 = vpop.permute.xlu0 %10819  ;;  %v9861_v58 = vpack.c.bf16 %v4324_v49, %v4323_v5  ;;  %v8379_v49 = vld [vmem:[%s13243_s3 + $0x350] sm:$0xff] }
 0x96b   : > { %v10822_v24 = vunpack.i.h.bf16 %v10820_v57  ;;  %v10821_v41 = vunpack.i.l.bf16 %v10820_v57 }
 0x96c   : > { %9309 = vmatmul.mubr.msk.f32.vlgmr.msra.gmra.mrb[12].mxu0 %vm405_vm0, %v8366_v54  ;;  %9862 = vmatprep.subr.bf16.mxu0 %v9861_v58  ;;  %v4326_v23 = vsel %vm4322_vm4, %v10816_v56, %v10817_v55  ;;  %v8380_v55 = vld [vmem:[%s13243_s3 + $0x358] sm:$0xff] }
 0x96d   : > { %v10830_v63 = vpop.permute.xlu1 %10829  ;;  %9864 = vmatpush3.bf16.msra.mxu0 %v9861_v58  ;;  %9311 = vmatprep.mubr.msk.f32.mxu0 %vm405_vm0, %v8367_v59  ;;  %v4325_v52 = vsel %vm4322_vm4, %v10821_v41, %v10822_v24  ;;  %v8385_v58 = vld [vmem:[%s13243_s3 + $0x360] sm:$0xff]  ;;  %v8386_v59 = vld [vmem:[%s13243_s3 + $0x368] sm:$0xff]  ;;  %v8387_v24 = vld [vmem:[%s13243_s3 + $0x370] sm:$0xff] }
 0x96e   : > { %v10832_v6 = vunpack.i.h.bf16 %v10830_v63  ;;  %v10831_v32 = vunpack.i.l.bf16 %v10830_v63  ;;  %v10825_v0 = vpop.permute.xlu0 %10824  ;;  %v9865_v53 = vpack.c.bf16 %v4326_v23, %v4325_v52  ;;  %v8388_v41 = vld [vmem:[%s13243_s3 + $0x378] sm:$0xff] }
 0x96f   : > { %v10827_v27 = vunpack.i.h.bf16 %v10825_v0  ;;  %v10826_v50 = vunpack.i.l.bf16 %v10825_v0 }
 0x970   : > { %9312 = vmatmul.mubr.msk.f32.gmra.mrb[14].mxu0 %vm405_vm0, %v8368_v30  ;;  %9866 = vmatprep.subr.bf16.mxu0 %v9865_v53  ;;  %v4467_v44 = vsel %vm4465_vm6, %v10831_v32, %v10832_v6  ;;  %v359_v6 = vld [vmem:[%s13275_s2 + $0x3] sm:$0x1] }
 0x971   : > { %v10835_v3 = vpop.permute.xlu1 %10834  ;;  %9868 = vmatpush3.bf16.msra.mxu0 %v9865_v53  ;;  %9322 = vmatprep.mubr.msk.f32.mxu0 %vm405_vm0, %v8361_v1  ;;  %v4466_v8 = vsel %vm4465_vm6, %v10826_v50, %v10827_v27  ;;  %vm360_vm8 = vcmp.gt.f32.partialorder %v359_v6, 0.0 }
 0x972   : > { %v10837_v13 = vunpack.i.h.bf16 %v10835_v3  ;;  %v10836_v29 = vunpack.i.l.bf16 %v10835_v3  ;;  %v10840_v14 = vpop.permute.xlu0 %10839  ;;  %v9869_v15 = vpack.c.bf16 %v4467_v44, %v4466_v8  ;;  %v4738_v53 = vsel %vm360_vm8, 1, %v11308_v26 }
 0x973   : > { %v10842_v17 = vunpack.i.h.bf16 %v10840_v14  ;;  %v10841_v18 = vunpack.i.l.bf16 %v10840_v14  ;;  %v4742_v1 = vrot.slane %v4738_v53, %v11624_v51 }
 0x974   : > { %9323 = vmatmul.mubr.msk.f32.vlgmr.msra.gmra.mrb[12].mxu0 %vm405_vm0, %v8362_v25  ;;  %9870 = vmatprep.subr.bf16.mxu0 %v9869_v15  ;;  %v4469_v19 = vsel %vm4465_vm6, %v10836_v29, %v10837_v13 }
 0x975   : > { %v10850_v20 = vpop.permute.xlu1 %10849  ;;  %9872 = vmatpush3.bf16.msra.mxu0 %v9869_v15  ;;  %9325 = vmatprep.mubr.msk.f32.mxu0 %vm405_vm0, %v8363_v16  ;;  %v4468_v22 = vsel %vm4465_vm6, %v10841_v18, %v10842_v17  ;;  %vm12491_vm9 = vcmp.eq.s32.totalorder %v4742_v1, 1 }
 0x976   : > { %v10852_v31 = vunpack.i.h.bf16 %v10850_v20  ;;  %v10851_v33 = vunpack.i.l.bf16 %v10850_v20  ;;  %v10845_v34 = vpop.permute.xlu0 %10844  ;;  %v9873_v35 = vpack.c.bf16 %v4469_v19, %v4468_v22 }
 0x977   : > { %v10847_v37 = vunpack.i.h.bf16 %v10845_v34  ;;  %v10846_v38 = vunpack.i.l.bf16 %v10845_v34 }
 0x978   : > { %9326 = vmatmul.mubr.msk.f32.gmra.mrb[14].mxu0 %vm405_vm0, %v8364_v21  ;;  %9874 = vmatprep.subr.bf16.mxu0 %v9873_v35  ;;  %v4598_v39 = vsel %vm4596_vm7, %v10851_v33, %v10852_v31 }
 0x979   : > { %v10860_v40 = vpop.permute.xlu1 %10859  ;;  %9876 = vmatpush3.bf16.msra.mxu0 %v9873_v35  ;;  %9336 = vmatprep.mubr.msk.f32.mxu0 %vm405_vm0, %v8377_v36  ;;  %v4597_v43 = vsel %vm4596_vm7, %v10846_v38, %v10847_v37 }
 0x97a   : > { %v10862_v45 = vunpack.i.h.bf16 %v10860_v40  ;;  %v10861_v46 = vunpack.i.l.bf16 %v10860_v40  ;;  %v10855_v47 = vpop.permute.xlu0 %10854  ;;  %v9877_v48 = vpack.c.bf16 %v4598_v39, %v4597_v43 }
 0x97b   : > { %v10857_v9 = vunpack.i.h.bf16 %v10855_v47  ;;  %v10856_v54 = vunpack.i.l.bf16 %v10855_v47  ;;  %v8397_v47 = vld [vmem:[%s13243_s3 + $0x3a0] sm:$0xff] }
 0x97c   : > { %9337 = vmatmul.mubr.msk.f32.vlgmr.msra.gmra.mrb[12].mxu0 %vm405_vm0, %v8378_v42  ;;  %9878 = vmatprep.subr.bf16.mxu0 %v9877_v48  ;;  %v4600_v5 = vsel %vm4596_vm7, %v10861_v46, %v10862_v45 }
 0x97d   : > { %9880 = vmatpush3.bf16.msra.mxu0 %v9877_v48  ;;  %9339 = vmatprep.mubr.msk.f32.mxu0 %vm405_vm0, %v8379_v49  ;;  %v4599_v56 = vsel %vm4596_vm7, %v10856_v54, %v10857_v9 }
 0x97e   : > { %v9881_v57 = vpack.c.bf16 %v4600_v5, %v4599_v56  ;;  %9364 = vmatprep.mubr.msk.f32.mxu1 %vm405_vm0, %v8397_v47 }
 0x980   : > { %9340 = vmatmul.mubr.msk.f32.gmra.mrb[14].mxu0 %vm405_vm0, %v8380_v55  ;;  %9882 = vmatprep.subr.bf16.mxu0 %v9881_v57 }
 0x981   : > { %9884 = vmatpush3.bf16.msra.mxu0 %v9881_v57  ;;  %9350 = vmatprep.mubr.msk.f32.mxu0 %vm405_vm0, %v8385_v58  ;;  %v11338_v58 = vmov 21  }
 0x982   : > { %10951 = vset.pattern.permute.xlu1 %v11338_v58  ;;  %10952 = vset.pattern.permute.xlu0 %v11338_v58 }
 0x984   : > { %9351 = vmatmul.mubr.msk.f32.vlgmr.msra.gmra.mrb[12].mxu0 %vm405_vm0, %v8386_v59  ;;  %v11339_v59 = vmov 22  }
 0x985   : > { %9353 = vmatprep.mubr.msk.f32.mxu0 %vm405_vm0, %v8387_v24  ;;  %v11340_v24 = vmov 23  }
 0x988   : > { %9354 = vmatmul.mubr.msk.f32.gmra.mrb[14].mxu0 %vm405_vm0, %v8388_v41 }
 0x98a   : > { %v4718_v23 = vpop.permute.xlu1 %4717 }
 0x98b   : > { %v4713_v52 = vpop.permute.xlu0 %4712 }
 0x98e   : > { %v4723_v63 = vpop.permute.xlu1 %4722 }
 0x98f   : > { %v4728_v0 = vpop.permute.xlu0 %4727 }
 0x993   : > { %v4750_v30 = vpop.permute.xlu1 %4749 }
 0x994   : > { %v4754_v50 = vpop.permute.xlu0 %4753 }
 0x998   : > { %v4770_v32 = vpop.permute.xlu1 %4769  ;;  %v4758_v21 = vpop.permute.xlu0 %4757 }
 0x99c   : > { %v4774_v27 = vpop.permute.xlu1 %4773 }
 0x99d   : > { %v4778_v42 = vpop.permute.xlu0 %4777 }
 0x9a1   : > { %v4762_v14 = vpop.permute.xlu1 %4761 }
 0x9a6   : > { %v4782_v38 = vpop.permute.xlu1 %4781 }
 0xa57   : > { %v9352_v44 = vpop.f32.mrb[12].mxu0 }
 0xa58   : > { %v4731_v3 = vadd.f32 %v9352_v44, %v4718_v23  ;;  %v4683_v25 = vpop.f32.mrb[13].mxu0 }
 0xa59   : > { %v4730_v13 = vadd.f32 %v4713_v52, %v4683_v25 }
 0xa5a   : > { %v4735_v29 = vmax.f32 %v4731_v3, 0.0 }
 0xa5b   : > { %v4734_v15 = vmax.f32 %v4730_v13, 0.0  ;;  %v9355_v16 = vpop.f32.mrb[14].mxu0 }
 0xa5c   : > { %v4745_v17 = vsel %vm12491_vm9, %v4735_v29, 0.0  ;;  %v4733_v18 = vadd.f32 %v9355_v16, %v4728_v0  ;;  %v4693_v19 = vpop.f32.mrb[15].mxu0 }
 0xa5d   : > { %v4765_v51 = vmul.f32 %v4754_v50, %v4745_v17  ;;  %v4744_v20 = vsel %vm12491_vm9, %v4734_v15, 0.0  ;;  %v4732_v22 = vadd.f32 %v4723_v63, %v4693_v19 }
 0xa5e   : > { %v4764_v31 = vmul.f32 %v4750_v30, %v4744_v20  ;;  %v4737_v33 = vmax.f32 %v4733_v18, 0.0 }
 0xa5f   : > { %v4785_v34 = vadd.f32 %v4774_v27, %v4765_v51  ;;  %v4736_v35 = vmax.f32 %v4732_v22, 0.0  ;;  %v8398_v22 = vld [vmem:[%s13243_s3 + $0x3a8] sm:$0xff] }
 0xa60   : > { %v4784_v36 = vadd.f32 %v4770_v32, %v4764_v31  ;;  %v4747_v37 = vsel %vm12491_vm9, %v4737_v33, 0.0 }
 0xa61   : > { %v4746_v39 = vsel %vm12491_vm9, %v4736_v35, 0.0  ;;  %v4767_v40 = vmul.f32 %v4762_v14, %v4747_v37  ;;  %v10871_v43 = vpack.i.bf16 %v4785_v34, %v11304_v10  ;;  %v10916_v5 = vpack.i.bf16 %v11304_v10, %v4785_v34  ;;  %v8399_v37 = vld [vmem:[%s13243_s3 + $0x3b0] sm:$0xff] }
 0xa62   : > { %v4766_v45 = vmul.f32 %v4758_v21, %v4746_v39  ;;  %v10876_v46 = vpack.i.bf16 %v4784_v36, %v11304_v10  ;;  %v10911_v55 = vpack.i.bf16 %v11304_v10, %v4784_v36 }
 0xa63   : > { %v4787_v48 = vadd.f32 %v4782_v38, %v4767_v40  ;;  %10872 = vrot.lane.b32.xlu0 %v10871_v43, %s11331_s16 }
 0xa64   : > { %v4786_v49 = vadd.f32 %v4778_v42, %v4766_v45  ;;  %10877 = vrot.lane.b32.xlu1 %v10876_v46, %s11331_s16 }
 0xa65   : > { %v10881_v9 = vpack.i.bf16 %v4787_v48, %v11304_v10  ;;  %v10921_v56 = vpack.i.bf16 %v11304_v10, %v4787_v48 }
 0xa66   : > { %v10886_v54 = vpack.i.bf16 %v4786_v49, %v11304_v10  ;;  %v10926_v57 = vpack.i.bf16 %v11304_v10, %v4786_v49 }
 0xa67   : > { %10882 = vrot.lane.b32.xlu0 %v10881_v9, %s11331_s16 }
 0xa68   : > { %10887 = vrot.lane.b32.xlu1 %v10886_v54, %s11331_s16  ;;  %s13291_s16 = smov 116  }
 0xa6b   : > { %10897 = vrot.lane.b32.xlu0 %v10871_v43, %s13289_s28  ;;  %v8400_v43 = vld [vmem:[%s13243_s3 + $0x3b8] sm:$0xff] }
 0xa6c   : > { %10892 = vrot.lane.b32.xlu1 %v10876_v46, %s13289_s28 }
 0xa6f   : > { %10902 = vrot.lane.b32.xlu0 %v10881_v9, %s13289_s28  ;;  %v8393_v9 = vld [vmem:[%s13243_s3 + $0x380] sm:$0xff] }
 0xa70   : > { %10907 = vrot.lane.b32.xlu1 %v10886_v54, %s13289_s28  ;;  %s8565_s28 = sshll.u32 %s11427_s13, 8  ;;  %s11240_s13 = scalar_lea.vmem %s13192_s23, 256 }
 0xa71   : > { %p11241_p11 = scmp.ne.s32.totalorder %s13192_s23, %s11240_s13 }
 0xa73   : > { %10917 = vrot.lane.b32.xlu0 %v10916_v5, %s13290_s22  ;;  %p11242_p12 = pnand %p11241_p11, %p11444_p5 }
 0xa74   : > { %10912 = vrot.lane.b32.xlu1 %v10911_v55, %s13290_s22 }
 0xa75   : > { %p11243_p13 = pneg %p11242_p12 }
 0xa77   : > { %10922 = vrot.lane.b32.xlu0 %v10921_v56, %s13290_s22 }
 0xa78   : > { %10927 = vrot.lane.b32.xlu1 %v10926_v57, %s13290_s22 }
 0xa7b   : > { %10937 = vrot.lane.b32.xlu0 %v10916_v5, %s13291_s16 }
 0xa7c   : > { %10932 = vrot.lane.b32.xlu1 %v10911_v55, %s13291_s16 }
 0xa7f   : > { %10947 = vrot.lane.b32.xlu0 %v10921_v56, %s13291_s16 }
 0xa80   : > { %10942 = vrot.lane.b32.xlu1 %v10926_v57, %s13291_s16  ;;  %v8394_v57 = vld [vmem:[%s13243_s3 + $0x388] sm:$0xff]  ;;  %s13197_s16 = scalar_lea.hbm %s13249_s9, %s8565_s28 }
 0xa83   : > { %5347 = vperm.xlu0 %10952, %v12381_v4  }
 0xa84   : > { %5342 = vperm.xlu1 %10951, %v12386_v28  }
 0xa87   : > { %10953 = vset.pattern.permute.xlu0 %v11339_v59 }
 0xa88   : > { %5352 = vperm.xlu1 %10951, %v12392_v11   ;;  %5373 = vperm.xlu0 %10953, %v12386_v28  }
 0xa8c   : > { %5357 = vperm.xlu1 %10951, %v12398_v12   ;;  %10956 = vset.pattern.permute.xlu0 %v11340_v24 }
 0xa8d   : > { %5397 = vperm.xlu0 %10956, %v12381_v4  }
 0xa90   : > { %10954 = vset.pattern.permute.xlu1 %v11339_v59 }
 0xa91   : > { %5377 = vperm.xlu1 %10954, %v12381_v4   ;;  %5401 = vperm.xlu0 %10956, %v12392_v11  }
 0xa95   : > { %10955 = vset.pattern.permute.xlu1 %v11340_v24 }
 0xa96   : > { %5393 = vperm.xlu1 %10955, %v12386_v28  }
 0xa9a   : > { %10957 = vset.pattern.permute.xlu1 %v11339_v59 }
 0xa9b   : > { %5381 = vperm.xlu1 %10957, %v12392_v11  }
 0xa9f   : > { %5385 = vperm.xlu1 %10957, %v12398_v12  }
 0xaa3   : > { %10958 = vset.pattern.permute.xlu1 %v11340_v24 }
 0xaa4   : > { %5405 = vperm.xlu1 %10958, %v12398_v12  }
 0xad5   : > { %v10873_v41 = vpop.permute.xlu0 %10872 }
 0xad6   : > { %v10875_v23 = vunpack.i.h.bf16 %v10873_v41  ;;  %v10874_v63 = vunpack.i.l.bf16 %v10873_v41  ;;  %v10878_v30 = vpop.permute.xlu1 %10877 }
 0xad7   : > { %v10880_v52 = vunpack.i.h.bf16 %v10878_v30  ;;  %v10879_v6 = vunpack.i.l.bf16 %v10878_v30 }
 0xad8   : > { %v4835_v32 = vsel %vm4200_vm15, %v10874_v63, %v10875_v23  ;;  %v8395_v63 = vld [vmem:[%s13243_s3 + $0x390] sm:$0xff] }
 0xad9   : > { %v10883_v0 = vpop.permute.xlu0 %10882  ;;  %v4834_v53 = vsel %vm4200_vm15, %v10879_v6, %v10880_v52 }
 0xada   : > { %v10885_v1 = vunpack.i.h.bf16 %v10883_v0  ;;  %v10884_v27 = vunpack.i.l.bf16 %v10883_v0  ;;  %v10888_v50 = vpop.permute.xlu1 %10887  ;;  %v9885_v44 = vpack.c.bf16 %v4835_v32, %v4834_v53  ;;  %v8396_v0 = vld [vmem:[%s13243_s3 + $0x398] sm:$0xff] }
 0xadb   : > { %v10890_v3 = vunpack.i.h.bf16 %v10888_v50  ;;  %v10889_v25 = vunpack.i.l.bf16 %v10888_v50 }
 0xadc   : > { %9886 = vmatprep.subr.bf16.mxu1 %v9885_v44  ;;  %v4837_v13 = vsel %vm4200_vm15, %v10884_v27, %v10885_v1 }
 0xadd   : > { %9888 = vmatpush3.bf16.msra.mxu1 %v9885_v44  ;;  %v10898_v29 = vpop.permute.xlu0 %10897  ;;  %v4836_v14 = vsel %vm4200_vm15, %v10889_v25, %v10890_v3  ;;  %v8409_v3 = vld [vmem:[%s13243_s3 + $0x3c0] sm:$0xff] }
 0xade   : > { %v10900_v15 = vunpack.i.h.bf16 %v10898_v29  ;;  %v10899_v16 = vunpack.i.l.bf16 %v10898_v29  ;;  %v10893_v17 = vpop.permute.xlu1 %10892  ;;  %v9889_v18 = vpack.c.bf16 %v4837_v13, %v4836_v14 }
 0xadf   : > { %v10895_v19 = vunpack.i.h.bf16 %v10893_v17  ;;  %v10894_v51 = vunpack.i.l.bf16 %v10893_v17 }
 0xae0   : > { %9890 = vmatprep.subr.bf16.mxu1 %v9889_v18  ;;  %v4956_v20 = vsel %vm4322_vm4, %v10899_v16, %v10900_v15  ;;  %v8410_v15 = vld [vmem:[%s13243_s3 + $0x3c8] sm:$0xff] }
 0xae1   : > { %v10903_v21 = vpop.permute.xlu0 %10902  ;;  %9892 = vmatpush3.bf16.msra.mxu1 %v9889_v18  ;;  %v4955_v31 = vsel %vm4322_vm4, %v10894_v51, %v10895_v19 }
 0xae2   : > { %v10905_v33 = vunpack.i.h.bf16 %v10903_v21  ;;  %v10904_v34 = vunpack.i.l.bf16 %v10903_v21  ;;  %v10908_v35 = vpop.permute.xlu1 %10907  ;;  %v9893_v36 = vpack.c.bf16 %v4956_v20, %v4955_v31  ;;  %v8411_v20 = vld [vmem:[%s13243_s3 + $0x3d0] sm:$0xff] }
 0xae3   : > { %v10910_v38 = vunpack.i.h.bf16 %v10908_v35  ;;  %v10909_v39 = vunpack.i.l.bf16 %v10908_v35 }
 0xae4   : > { %9365 = vmatmul.mubr.msk.f32.vlgmr.msra.gmra.mrb[12].mxu1 %vm405_vm0, %v8398_v22  ;;  %9894 = vmatprep.subr.bf16.mxu1 %v9893_v36  ;;  %v4958_v40 = vsel %vm4322_vm4, %v10904_v34, %v10905_v33  ;;  %v8412_v33 = vld [vmem:[%s13243_s3 + $0x3d8] sm:$0xff] }
 0xae5   : > { %v10918_v42 = vpop.permute.xlu0 %10917  ;;  %9896 = vmatpush3.bf16.msra.mxu1 %v9893_v36  ;;  %9367 = vmatprep.mubr.msk.f32.mxu1 %vm405_vm0, %v8399_v37  ;;  %v4957_v45 = vsel %vm4322_vm4, %v10909_v39, %v10910_v38  ;;  %v8417_v36 = vld [vmem:[%s13243_s3 + $0x3e0] sm:$0xff]  ;;  %v8418_v37 = vld [vmem:[%s13243_s3 + $0x3e8] sm:$0xff]  ;;  %v8419_v38 = vld [vmem:[%s13243_s3 + $0x3f0] sm:$0xff] }
 0xae6   : > { %v10920_v46 = vunpack.i.h.bf16 %v10918_v42  ;;  %v10919_v47 = vunpack.i.l.bf16 %v10918_v42  ;;  %v10913_v48 = vpop.permute.xlu1 %10912  ;;  %v9897_v49 = vpack.c.bf16 %v4958_v40, %v4957_v45  ;;  %v8420_v39 = vld [vmem:[%s13243_s3 + $0x3f8] sm:$0xff] }
 0xae7   : > { %v10915_v54 = vunpack.i.h.bf16 %v10913_v48  ;;  %v10914_v5 = vunpack.i.l.bf16 %v10913_v48 }
 0xae8   : > { %9368 = vmatmul.mubr.msk.f32.gmra.mrb[14].mxu1 %vm405_vm0, %v8400_v43  ;;  %9898 = vmatprep.subr.bf16.mxu1 %v9897_v49  ;;  %v5098_v55 = vsel %vm4465_vm6, %v10919_v47, %v10920_v46 }
 0xae9   : > { %v10923_v56 = vpop.permute.xlu0 %10922  ;;  %9900 = vmatpush3.bf16.msra.mxu1 %v9897_v49  ;;  %9378 = vmatprep.mubr.msk.f32.mxu1 %vm405_vm0, %v8393_v9  ;;  %v5097_v58 = vsel %vm4465_vm6, %v10914_v5, %v10915_v54 }
 0xaea   : > { %v10925_v59 = vunpack.i.h.bf16 %v10923_v56  ;;  %v10924_v24 = vunpack.i.l.bf16 %v10923_v56  ;;  %v10928_v41 = vpop.permute.xlu1 %10927  ;;  %v9901_v23 = vpack.c.bf16 %v5098_v55, %v5097_v58 }
 0xaeb   : > { %v10930_v30 = vunpack.i.h.bf16 %v10928_v41  ;;  %v10929_v52 = vunpack.i.l.bf16 %v10928_v41 }
 0xaec   : > { %9379 = vmatmul.mubr.msk.f32.vlgmr.msra.gmra.mrb[12].mxu1 %vm405_vm0, %v8394_v57  ;;  %9902 = vmatprep.subr.bf16.mxu1 %v9901_v23  ;;  %v5100_v6 = vsel %vm4465_vm6, %v10924_v24, %v10925_v59 }
 0xaed   : > { %v10938_v32 = vpop.permute.xlu0 %10937  ;;  %9904 = vmatpush3.bf16.msra.mxu1 %v9901_v23  ;;  %9381 = vmatprep.mubr.msk.f32.mxu1 %vm405_vm0, %v8395_v63  ;;  %v5099_v53 = vsel %vm4465_vm6, %v10929_v52, %v10930_v30  ;;  %v8429_v63 = vld [vmem:[%s13243_s3 + $0x420] sm:$0xff] }
 0xaee   : > { %v10940_v1 = vunpack.i.h.bf16 %v10938_v32  ;;  %v10939_v27 = vunpack.i.l.bf16 %v10938_v32  ;;  %v10933_v50 = vpop.permute.xlu1 %10932  ;;  %v9905_v44 = vpack.c.bf16 %v5100_v6, %v5099_v53  ;;  %9420 = vmatprep.mubr.msk.f32.mxu0 %vm405_vm0, %v8429_v63 }
 0xaef   : > { %v10935_v25 = vunpack.i.h.bf16 %v10933_v50  ;;  %v10934_v13 = vunpack.i.l.bf16 %v10933_v50 }
 0xaf0   : > { %9382 = vmatmul.mubr.msk.f32.gmra.mrb[14].mxu1 %vm405_vm0, %v8396_v0  ;;  %9906 = vmatprep.subr.bf16.mxu1 %v9905_v44  ;;  %v5228_v29 = vsel %vm4596_vm7, %v10939_v27, %v10940_v1 }
 0xaf1   : > { %v10948_v14 = vpop.permute.xlu0 %10947  ;;  %9908 = vmatpush3.bf16.msra.mxu1 %v9905_v44  ;;  %9392 = vmatprep.mubr.msk.f32.mxu1 %vm405_vm0, %v8409_v3  ;;  %v5227_v16 = vsel %vm4596_vm7, %v10934_v13, %v10935_v25 }
 0xaf2   : > { %v10950_v17 = vunpack.i.h.bf16 %v10948_v14  ;;  %v10949_v18 = vunpack.i.l.bf16 %v10948_v14  ;;  %v10943_v19 = vpop.permute.xlu1 %10942  ;;  %v9909_v51 = vpack.c.bf16 %v5228_v29, %v5227_v16 }
 0xaf3   : > { %v10945_v21 = vunpack.i.h.bf16 %v10943_v19  ;;  %v10944_v22 = vunpack.i.l.bf16 %v10943_v19 }
 0xaf4   : > { %9393 = vmatmul.mubr.msk.f32.vlgmr.msra.gmra.mrb[12].mxu1 %vm405_vm0, %v8410_v15  ;;  %9910 = vmatprep.subr.bf16.mxu1 %v9909_v51  ;;  %v5230_v31 = vsel %vm4596_vm7, %v10949_v18, %v10950_v17 }
 0xaf5   : > { %9912 = vmatpush3.bf16.msra.mxu1 %v9909_v51  ;;  %9395 = vmatprep.mubr.msk.f32.mxu1 %vm405_vm0, %v8411_v20  ;;  %v5229_v34 = vsel %vm4596_vm7, %v10944_v22, %v10945_v21 }
 0xaf6   : > { %v9913_v35 = vpack.c.bf16 %v5230_v31, %v5229_v34 }
 0xaf8   : > { %9396 = vmatmul.mubr.msk.f32.gmra.mrb[14].mxu1 %vm405_vm0, %v8412_v33  ;;  %9914 = vmatprep.subr.bf16.mxu1 %v9913_v35  ;;  %v8431_v33 = vld [vmem:[%s13243_s3 + $0x430] sm:$0xff] }
 0xaf9   : > { %9916 = vmatpush3.bf16.msra.mxu1 %v9913_v35  ;;  %9406 = vmatprep.mubr.msk.f32.mxu1 %vm405_vm0, %v8417_v36  ;;  %v8432_v35 = vld [vmem:[%s13243_s3 + $0x438] sm:$0xff] }
 0xafc   : > { %9407 = vmatmul.mubr.msk.f32.vlgmr.msra.gmra.mrb[12].mxu1 %vm405_vm0, %v8418_v37  ;;  %v8425_v37 = vld [vmem:[%s13243_s3 + $0x400] sm:$0xff] }
 0xafd   : > { %9409 = vmatprep.mubr.msk.f32.mxu1 %vm405_vm0, %v8419_v38  ;;  %v11341_v38 = vmov 24  }
 0xafe   : > { %11020 = vset.pattern.permute.xlu1 %v11341_v38  ;;  %11019 = vset.pattern.permute.xlu0 %v11341_v38  ;;  %v8443_v38 = vld [vmem:[%s13243_s3 + $0x450] sm:$0xff] }
 0xb00   : > { %9410 = vmatmul.mubr.msk.f32.gmra.mrb[14].mxu1 %vm405_vm0, %v8420_v39  ;;  %v11342_v39 = vmov 25  }
 0xb02   : > { %v5348_v47 = vpop.permute.xlu0 %5347 }
 0xb03   : > { %v5343_v40 = vpop.permute.xlu1 %5342 }
 0xb07   : > { %v5353_v42 = vpop.permute.xlu1 %5352  ;;  %v5374_v49 = vpop.permute.xlu0 %5373 }
 0xb0b   : > { %v5358_v43 = vpop.permute.xlu1 %5357 }
 0xb0c   : > { %v5398_v52 = vpop.permute.xlu0 %5397 }
 0xb10   : > { %v5378_v45 = vpop.permute.xlu1 %5377  ;;  %v5402_v16 = vpop.permute.xlu0 %5401 }
 0xb15   : > { %v5394_v46 = vpop.permute.xlu1 %5393 }
 0xb1a   : > { %v5382_v48 = vpop.permute.xlu1 %5381 }
 0xb1e   : > { %v5386_v24 = vpop.permute.xlu1 %5385 }
 0xb23   : > { %v5406_v3 = vpop.permute.xlu1 %5405 }
 0xbcf   : > { %v9408_v9 = vpop.f32.mrb[12].mxu1 }
 0xbd0   : > { %v5361_v54 = vadd.f32 %v9408_v9, %v5348_v47  ;;  %v5313_v5 = vpop.f32.mrb[13].mxu1 }
 0xbd1   : > { %v5360_v55 = vadd.f32 %v5343_v40, %v5313_v5  ;;  %v11343_v40 = vmov 26  }
 0xbd2   : > { %v5365_v56 = vmax.f32 %v5361_v54, 0.0 }
 0xbd3   : > { %v5364_v57 = vmax.f32 %v5360_v55, 0.0  ;;  %v9411_v58 = vpop.f32.mrb[14].mxu1 }
 0xbd4   : > { %v5369_v59 = vsel %vm12491_vm9, %v5365_v56, 0.0  ;;  %v5363_v41 = vadd.f32 %v9411_v58, %v5358_v43  ;;  %v5323_v23 = vpop.f32.mrb[15].mxu1 }
 0xbd5   : > { %v5368_v30 = vsel %vm12491_vm9, %v5364_v57, 0.0  ;;  %v5389_v6 = vmul.f32 %v5378_v45, %v5369_v59  ;;  %v5362_v32 = vadd.f32 %v5353_v42, %v5323_v23 }
 0xbd6   : > { %v5388_v0 = vmul.f32 %v5374_v49, %v5368_v30  ;;  %v5367_v53 = vmax.f32 %v5363_v41, 0.0 }
 0xbd7   : > { %v5409_v1 = vadd.f32 %v5398_v52, %v5389_v6  ;;  %v5366_v27 = vmax.f32 %v5362_v32, 0.0  ;;  %v8426_v32 = vld [vmem:[%s13243_s3 + $0x408] sm:$0xff] }
 0xbd8   : > { %v5408_v50 = vadd.f32 %v5394_v46, %v5388_v0  ;;  %v5371_v44 = vsel %vm12491_vm9, %v5367_v53, 0.0 }
 0xbd9   : > { %v12630_v25 = vadd.f32 %v5409_v1, %v12329_v61  ;;  %v5370_v13 = vsel %vm12491_vm9, %v5366_v27, 0.0  ;;  %v5391_v29 = vmul.f32 %v5386_v24, %v5371_v44  ;;  %v8427_v44 = vld [vmem:[%s13243_s3 + $0x410] sm:$0xff] }
 0xbda   : > { %v12635_v14 = vadd.f32 %v5408_v50, %v12334_v62  ;;  %v5390_v15 = vmul.f32 %v5382_v48, %v5370_v13 }
 0xbdb   : > { %v5411_v17 = vadd.f32 %v5406_v3, %v5391_v29  ;;  %v10959_v18 = vpack.i.bf16 %v12630_v25, %v11304_v10 }
 0xbdc   : > { %v5410_v19 = vadd.f32 %v5402_v16, %v5390_v15  ;;  %v10964_v51 = vpack.i.bf16 %v12635_v14, %v11304_v10  ;;  %v9917_v61 = vpack.c.bf16 %v12630_v25, %v12635_v14  ;;  %v10979_v31 = vpack.i.bf16 %v11304_v10, %v12635_v14  ;;  %v8428_v16 = vld [vmem:[%s13243_s3 + $0x418] sm:$0xff] }
 0xbdd   : > { %v12644_v8 = vadd.f32 %v5411_v17, %v12344_v2  ;;  %10960 = vrot.lane.b32.xlu1 %v10959_v18, %s13292_s25  ;;  %v10984_v2 = vpack.i.bf16 %v11304_v10, %v12630_v25 }
 0xbde   : > { %v12648_v62 = vadd.f32 %v5410_v19, %v12349_v7  ;;  %10965 = vrot.lane.b32.xlu0 %v10964_v51, %s13292_s25  ;;  %9918 = vmatprep.subr.bf16.mxu0 %v9917_v61  ;;  %v8430_v7 = vld [vmem:[%s13243_s3 + $0x428] sm:$0xff] }
 0xbdf   : > { %9920 = vmatpush3.bf16.msra.mxu0 %v9917_v61  ;;  %v10969_v20 = vpack.i.bf16 %v12644_v8, %v11304_v10  ;;  %v10989_v34 = vpack.i.bf16 %v11304_v10, %v12644_v8 }
 0xbe0   : > { %v10974_v21 = vpack.i.bf16 %v12648_v62, %v11304_v10  ;;  %v9921_v22 = vpack.c.bf16 %v12644_v8, %v12648_v62  ;;  %v10994_v36 = vpack.i.bf16 %v11304_v10, %v12648_v62 }
 0xbe1   : > { %10970 = vrot.lane.b32.xlu1 %v10969_v20, %s13292_s25  ;;  %v8441_v20 = vld [vmem:[%s13243_s3 + $0x440] sm:$0xff] }
 0xbe2   : > { %10975 = vrot.lane.b32.xlu0 %v10974_v21, %s13292_s25  ;;  %9922 = vmatprep.subr.bf16.mxu0 %v9921_v22 }
 0xbe3   : > { %9924 = vmatpush3.bf16.msra.mxu0 %v9921_v22 }
 0xbe5   : > { %10985 = vrot.lane.b32.xlu1 %v10984_v2, %s13281_s21 }
 0xbe6   : > { %10980 = vrot.lane.b32.xlu0 %v10979_v31, %s13281_s21  ;;  %9421 = vmatmul.mubr.msk.f32.vlgmr.msra.gmra.mrb[16].mxu0 %vm405_vm0, %v8430_v7 }
 0xbe7   : > { %9423 = vmatprep.mubr.msk.f32.mxu0 %vm405_vm0, %v8431_v33 }
 0xbe9   : > { %10990 = vrot.lane.b32.xlu1 %v10989_v34, %s13281_s21 }
 0xbea   : > { %10995 = vrot.lane.b32.xlu0 %v10994_v36, %s13281_s21  ;;  %9424 = vmatmul.mubr.msk.f32.gmra.mrb[18].mxu0 %vm405_vm0, %v8432_v35 }
 0xbeb   : > { %9434 = vmatprep.mubr.msk.f32.mxu0 %vm405_vm0, %v8425_v37 }
 0xbed   : > { %11005 = vrot.lane.b32.xlu1 %v10984_v2, %s13278_s26 }
 0xbee   : > { %11000 = vrot.lane.b32.xlu0 %v10979_v31, %s13278_s26  ;;  %v8442_v31 = vld [vmem:[%s13243_s3 + $0x448] sm:$0xff] }
 0xbf1   : > { %11015 = vrot.lane.b32.xlu1 %v10989_v34, %s13278_s26 }
 0xbf2   : > { %11010 = vrot.lane.b32.xlu0 %v10994_v36, %s13278_s26 }
 0xbf5   : > { %5963 = vperm.xlu1 %11020, %v12381_v4  }
 0xbf6   : > { %5958 = vperm.xlu0 %11019, %v12386_v28  }
 0xbf9   : > { %5968 = vperm.xlu1 %11020, %v12392_v11  }
 0xbfa   : > { %5973 = vperm.xlu0 %11019, %v12398_v12  }
 0xbfd   : > { %11021 = vset.pattern.permute.xlu1 %v11342_v39 }
 0xbfe   : > { %5989 = vperm.xlu1 %11021, %v12386_v28   ;;  %11022 = vset.pattern.permute.xlu0 %v11342_v39 }
 0xbff   : > { %5993 = vperm.xlu0 %11022, %v12381_v4  }
 0xc02   : > { %11023 = vset.pattern.permute.xlu1 %v11343_v40 }
 0xc03   : > { %6009 = vperm.xlu1 %11023, %v12386_v28   ;;  %5997 = vperm.xlu0 %11022, %v12392_v11  }
 0xc07   : > { %6013 = vperm.xlu1 %11023, %v12381_v4   ;;  %11025 = vset.pattern.permute.xlu0 %v11343_v40 }
 0xc08   : > { %6017 = vperm.xlu0 %11025, %v12392_v11  }
 0xc0b   : > { %11024 = vset.pattern.permute.xlu1 %v11342_v39 }
 0xc0c   : > { %6001 = vperm.xlu1 %11024, %v12398_v12  }
 0xc10   : > { %11026 = vset.pattern.permute.xlu1 %v11343_v40 }
 0xc11   : > { %6021 = vperm.xlu1 %11026, %v12398_v12  }
 0xc4f   : > { %v10961_v42 = vpop.permute.xlu1 %10960 }
 0xc50   : > { %v10963_v43 = vunpack.i.h.bf16 %v10961_v42  ;;  %v10962_v45 = vunpack.i.l.bf16 %v10961_v42  ;;  %v10966_v46 = vpop.permute.xlu0 %10965 }
 0xc51   : > { %v10968_v47 = vunpack.i.h.bf16 %v10966_v46  ;;  %v10967_v48 = vunpack.i.l.bf16 %v10966_v46 }
 0xc52   : > { %v5572_v28 = vsel %vm527_vm1, %v10962_v45, %v10963_v43  ;;  %v8444_v43 = vld [vmem:[%s13243_s3 + $0x458] sm:$0xff] }
 0xc53   : > { %v10971_v49 = vpop.permute.xlu1 %10970  ;;  %v5571_v4 = vsel %vm527_vm1, %v10967_v48, %v10968_v47  ;;  %v8449_v47 = vld [vmem:[%s13243_s3 + $0x460] sm:$0xff]  ;;  %v8450_v48 = vld [vmem:[%s13243_s3 + $0x468] sm:$0xff] }
 0xc54   : > { %v10973_v9 = vunpack.i.h.bf16 %v10971_v49  ;;  %v10972_v54 = vunpack.i.l.bf16 %v10971_v49  ;;  %v10976_v11 = vpop.permute.xlu0 %10975  ;;  %v9925_v5 = vpack.c.bf16 %v5572_v28, %v5571_v4  ;;  %v8451_v28 = vld [vmem:[%s13243_s3 + $0x470] sm:$0xff]  ;;  %v8452_v49 = vld [vmem:[%s13243_s3 + $0x478] sm:$0xff] }
 0xc55   : > { %v10978_v55 = vunpack.i.h.bf16 %v10976_v11  ;;  %v10977_v56 = vunpack.i.l.bf16 %v10976_v11 }
 0xc56   : > { %9926 = vmatprep.subr.bf16.mxu0 %v9925_v5  ;;  %v5574_v12 = vsel %vm527_vm1, %v10972_v54, %v10973_v9 }
 0xc57   : > { %v10986_v57 = vpop.permute.xlu1 %10985  ;;  %9928 = vmatpush3.bf16.msra.mxu0 %v9925_v5  ;;  %v5573_v58 = vsel %vm527_vm1, %v10977_v56, %v10978_v55 }
 0xc58   : > { %v10988_v59 = vunpack.i.h.bf16 %v10986_v57  ;;  %v10987_v24 = vunpack.i.l.bf16 %v10986_v57  ;;  %v10981_v41 = vpop.permute.xlu0 %10980  ;;  %v9929_v23 = vpack.c.bf16 %v5574_v12, %v5573_v58 }
 0xc59   : > { %v10983_v63 = vunpack.i.h.bf16 %v10981_v41  ;;  %v10982_v30 = vunpack.i.l.bf16 %v10981_v41 }
 0xc5a   : > { %9930 = vmatprep.subr.bf16.mxu0 %v9929_v23  ;;  %v5714_v52 = vsel %vm670_vm2, %v10987_v24, %v10988_v59 }
 0xc5b   : > { %v10991_v6 = vpop.permute.xlu1 %10990  ;;  %9932 = vmatpush3.bf16.msra.mxu0 %v9929_v23  ;;  %v5713_v0 = vsel %vm670_vm2, %v10982_v30, %v10983_v63  ;;  %v8461_v63 = vld [vmem:[%s13243_s3 + $0x4a0] sm:$0xff] }
 0xc5c   : > { %v10993_v53 = vunpack.i.h.bf16 %v10991_v6  ;;  %v10992_v1 = vunpack.i.l.bf16 %v10991_v6  ;;  %v10996_v27 = vpop.permute.xlu0 %10995  ;;  %v9933_v50 = vpack.c.bf16 %v5714_v52, %v5713_v0  ;;  %9476 = vmatprep.mubr.msk.f32.mxu1 %vm405_vm0, %v8461_v63 }
 0xc5d   : > { %v10998_v3 = vunpack.i.h.bf16 %v10996_v27  ;;  %v10997_v13 = vunpack.i.l.bf16 %v10996_v27 }
 0xc5e   : > { %9435 = vmatmul.mubr.msk.f32.vlgmr.msra.gmra.mrb[16].mxu0 %vm405_vm0, %v8426_v32  ;;  %9934 = vmatprep.subr.bf16.mxu0 %v9933_v50  ;;  %v5716_v29 = vsel %vm670_vm2, %v10992_v1, %v10993_v53 }
 0xc5f   : > { %v11006_v15 = vpop.permute.xlu1 %11005  ;;  %9936 = vmatpush3.bf16.msra.mxu0 %v9933_v50  ;;  %9437 = vmatprep.mubr.msk.f32.mxu0 %vm405_vm0, %v8427_v44  ;;  %v5715_v17 = vsel %vm670_vm2, %v10997_v13, %v10998_v3 }
 0xc60   : > { %v11008_v18 = vunpack.i.h.bf16 %v11006_v15  ;;  %v11007_v19 = vunpack.i.l.bf16 %v11006_v15  ;;  %v11001_v51 = vpop.permute.xlu0 %11000  ;;  %v9937_v61 = vpack.c.bf16 %v5716_v29, %v5715_v17 }
 0xc61   : > { %v11003_v21 = vunpack.i.h.bf16 %v11001_v51  ;;  %v11002_v22 = vunpack.i.l.bf16 %v11001_v51 }
 0xc62   : > { %9438 = vmatmul.mubr.msk.f32.gmra.mrb[18].mxu0 %vm405_vm0, %v8428_v16  ;;  %9938 = vmatprep.subr.bf16.mxu0 %v9937_v61  ;;  %v5844_v2 = vsel %vm801_vm3, %v11007_v19, %v11008_v18 }
 0xc63   : > { %v11016_v7 = vpop.permute.xlu1 %11015  ;;  %9940 = vmatpush3.bf16.msra.mxu0 %v9937_v61  ;;  %9448 = vmatprep.mubr.msk.f32.mxu0 %vm405_vm0, %v8441_v20  ;;  %v5843_v33 = vsel %vm801_vm3, %v11002_v22, %v11003_v21 }
 0xc64   : > { %v11018_v34 = vunpack.i.h.bf16 %v11016_v7  ;;  %v11017_v35 = vunpack.i.l.bf16 %v11016_v7  ;;  %v11011_v36 = vpop.permute.xlu0 %11010  ;;  %v9941_v37 = vpack.c.bf16 %v5844_v2, %v5843_v33 }
 0xc65   : > { %v11013_v39 = vunpack.i.h.bf16 %v11011_v36  ;;  %v11012_v40 = vunpack.i.l.bf16 %v11011_v36  ;;  %v8462_v36 = vld [vmem:[%s13243_s3 + $0x4a8] sm:$0xff] }
 0xc66   : > { %9449 = vmatmul.mubr.msk.f32.vlgmr.msra.gmra.mrb[16].mxu0 %vm405_vm0, %v8442_v31  ;;  %9942 = vmatprep.subr.bf16.mxu0 %v9941_v37  ;;  %v5846_v42 = vsel %vm801_vm3, %v11017_v35, %v11018_v34 }
 0xc67   : > { %9944 = vmatpush3.bf16.msra.mxu0 %v9941_v37  ;;  %9451 = vmatprep.mubr.msk.f32.mxu0 %vm405_vm0, %v8443_v38  ;;  %v5845_v45 = vsel %vm801_vm3, %v11012_v40, %v11013_v39  ;;  %v8463_v38 = vld [vmem:[%s13243_s3 + $0x4b0] sm:$0xff]  ;;  %v8464_v40 = vld [vmem:[%s13243_s3 + $0x4b8] sm:$0xff] }
 0xc68   : > { %v9945_v46 = vpack.c.bf16 %v5846_v42, %v5845_v45  ;;  %v11344_v45 = vmov 27  }
 0xc69   : > { %11087 = vset.pattern.permute.xlu1 %v11344_v45  ;;  %11088 = vset.pattern.permute.xlu0 %v11344_v45 }
 0xc6a   : > { %9452 = vmatmul.mubr.msk.f32.gmra.mrb[18].mxu0 %vm405_vm0, %v8444_v43  ;;  %9946 = vmatprep.subr.bf16.mxu0 %v9945_v46  ;;  %v8457_v43 = vld [vmem:[%s13243_s3 + $0x480] sm:$0xff] }
 0xc6b   : > { %9948 = vmatpush3.bf16.msra.mxu0 %v9945_v46  ;;  %9462 = vmatprep.mubr.msk.f32.mxu0 %vm405_vm0, %v8449_v47  ;;  %v12810_v46 = vld [vmem:[%s13244_s4] sm:$0xff]  ;;  %v12815_v47 = vld [vmem:[%s13244_s4 + $0x8] sm:$0xff] }
 0xc6e   : > { %9463 = vmatmul.mubr.msk.f32.vlgmr.msra.gmra.mrb[16].mxu0 %vm405_vm0, %v8450_v48  ;;  %v12822_v48 = vld [vmem:[%s13244_s4 + $0x10] sm:$0xff] }
 0xc6f   : > { %9465 = vmatprep.mubr.msk.f32.mxu0 %vm405_vm0, %v8451_v28  ;;  %v11345_v28 = vmov 28  }
 0xc72   : > { %9466 = vmatmul.mubr.msk.f32.gmra.mrb[18].mxu0 %vm405_vm0, %v8452_v49  ;;  %v12829_v49 = vld [vmem:[%s13244_s4 + $0x18] sm:$0xff] }
 0xc74   : > { %v5964_v4 = vpop.permute.xlu1 %5963 }
 0xc75   : > { %v5959_v11 = vpop.permute.xlu0 %5958 }
 0xc78   : > { %v5969_v9 = vpop.permute.xlu1 %5968 }
 0xc79   : > { %v5974_v55 = vpop.permute.xlu0 %5973 }
 0xc7d   : > { %v5990_v54 = vpop.permute.xlu1 %5989 }
 0xc7e   : > { %v5994_v12 = vpop.permute.xlu0 %5993 }
 0xc82   : > { %v6010_v5 = vpop.permute.xlu1 %6009  ;;  %v5998_v27 = vpop.permute.xlu0 %5997 }
 0xc86   : > { %v6014_v56 = vpop.permute.xlu1 %6013 }
 0xc87   : > { %v6018_v51 = vpop.permute.xlu0 %6017 }
 0xc8b   : > { %v6002_v23 = vpop.permute.xlu1 %6001 }
 0xc90   : > { %v6022_v17 = vpop.permute.xlu1 %6021 }
 0xd41   : > { %v9464_v57 = vpop.f32.mrb[16].mxu0 }
 0xd42   : > { %v5977_v58 = vadd.f32 %v9464_v57, %v5964_v4  ;;  %v5929_v59 = vpop.f32.mrb[17].mxu0  ;;  %v11346_v4 = vmov 29  }
 0xd43   : > { %v5976_v24 = vadd.f32 %v5959_v11, %v5929_v59 }
 0xd44   : > { %v5981_v41 = vmax.f32 %v5977_v58, 0.0 }
 0xd45   : > { %v5980_v30 = vmax.f32 %v5976_v24, 0.0  ;;  %v9467_v52 = vpop.f32.mrb[18].mxu0 }
 0xd46   : > { %v5985_v6 = vsel %vm11628_vm5, %v5981_v41, 0.0  ;;  %v5979_v32 = vadd.f32 %v9467_v52, %v5974_v55  ;;  %v5939_v0 = vpop.f32.mrb[19].mxu0 }
 0xd47   : > { %v6005_v53 = vmul.f32 %v5994_v12, %v5985_v6  ;;  %v5984_v1 = vsel %vm11628_vm5, %v5980_v30, 0.0  ;;  %v5978_v50 = vadd.f32 %v5969_v9, %v5939_v0 }
 0xd48   : > { %v6004_v44 = vmul.f32 %v5990_v54, %v5984_v1  ;;  %v5983_v3 = vmax.f32 %v5979_v32, 0.0 }
 0xd49   : > { %v6025_v13 = vadd.f32 %v6014_v56, %v6005_v53  ;;  %v5982_v29 = vmax.f32 %v5978_v50, 0.0 }
 0xd4a   : > { %v6024_v15 = vadd.f32 %v6010_v5, %v6004_v44  ;;  %v5987_v16 = vsel %vm11628_vm5, %v5983_v3, 0.0 }
 0xd4b   : > { %v5986_v18 = vsel %vm11628_vm5, %v5982_v29, 0.0  ;;  %v6007_v19 = vmul.f32 %v6002_v23, %v5987_v16  ;;  %v11027_v61 = vpack.i.bf16 %v6025_v13, %v11304_v10  ;;  %v11052_v35 = vpack.i.bf16 %v11304_v10, %v6025_v13  ;;  %v8458_v29 = vld [vmem:[%s13243_s3 + $0x488] sm:$0xff] }
 0xd4c   : > { %v6006_v20 = vmul.f32 %v5998_v27, %v5986_v18  ;;  %v11032_v21 = vpack.i.bf16 %v6024_v15, %v11304_v10  ;;  %v9949_v22 = vpack.c.bf16 %v6025_v13, %v6024_v15  ;;  %v11047_v37 = vpack.i.bf16 %v11304_v10, %v6024_v15 }
 0xd4d   : > { %v6027_v2 = vadd.f32 %v6022_v17, %v6007_v19  ;;  %11028 = vrot.lane.b32.xlu0 %v11027_v61, %s13292_s25 }
 0xd4e   : > { %v6026_v7 = vadd.f32 %v6018_v51, %v6006_v20  ;;  %11033 = vrot.lane.b32.xlu1 %v11032_v21, %s13292_s25  ;;  %9950 = vmatprep.subr.bf16.mxu1 %v9949_v22  ;;  %v8459_v51 = vld [vmem:[%s13243_s3 + $0x490] sm:$0xff] }
 0xd4f   : > { %9952 = vmatpush3.bf16.msra.mxu1 %v9949_v22  ;;  %v11037_v31 = vpack.i.bf16 %v6027_v2, %v11304_v10  ;;  %v11057_v39 = vpack.i.bf16 %v11304_v10, %v6027_v2 }
 0xd50   : > { %v11042_v33 = vpack.i.bf16 %v6026_v7, %v11304_v10  ;;  %v9953_v34 = vpack.c.bf16 %v6027_v2, %v6026_v7  ;;  %v11062_v42 = vpack.i.bf16 %v11304_v10, %v6026_v7  ;;  %v8460_v2 = vld [vmem:[%s13243_s3 + $0x498] sm:$0xff] }
 0xd51   : > { %11038 = vrot.lane.b32.xlu0 %v11037_v31, %s13292_s25 }
 0xd52   : > { %11043 = vrot.lane.b32.xlu1 %v11042_v33, %s13292_s25  ;;  %9954 = vmatprep.subr.bf16.mxu1 %v9953_v34 }
 0xd53   : > { %9956 = vmatpush3.bf16.msra.mxu1 %v9953_v34 }
 0xd55   : > { %11053 = vrot.lane.b32.xlu0 %v11052_v35, %s13281_s21 }
 0xd56   : > { %11048 = vrot.lane.b32.xlu1 %v11047_v37, %s13281_s21  ;;  %9477 = vmatmul.mubr.msk.f32.vlgmr.msra.gmra.mrb[16].mxu1 %vm405_vm0, %v8462_v36  ;;  %v8473_v36 = vld [vmem:[%s13243_s3 + $0x4c0] sm:$0xff] }
 0xd57   : > { %9479 = vmatprep.mubr.msk.f32.mxu1 %vm405_vm0, %v8463_v38 }
 0xd59   : > { %11058 = vrot.lane.b32.xlu0 %v11057_v39, %s13281_s21 }
 0xd5a   : > { %11063 = vrot.lane.b32.xlu1 %v11062_v42, %s13281_s21  ;;  %9480 = vmatmul.mubr.msk.f32.gmra.mrb[18].mxu1 %vm405_vm0, %v8464_v40 }
 0xd5b   : > { %9490 = vmatprep.mubr.msk.f32.mxu1 %vm405_vm0, %v8457_v43 }
 0xd5d   : > { %11073 = vrot.lane.b32.xlu0 %v11052_v35, %s13278_s26 }
 0xd5e   : > { %11068 = vrot.lane.b32.xlu1 %v11047_v37, %s13278_s26 }
 0xd61   : > { %11083 = vrot.lane.b32.xlu0 %v11057_v39, %s13278_s26 }
 0xd62   : > { %11078 = vrot.lane.b32.xlu1 %v11062_v42, %s13278_s26  ;;  %v8474_v42 = vld [vmem:[%s13243_s3 + $0x4c8] sm:$0xff] }
 0xd65   : > { %6563 = vperm.xlu0 %11088, %v12815_v47  }
 0xd66   : > { %6558 = vperm.xlu1 %11087, %v12810_v46  }
 0xd69   : > { %11089 = vset.pattern.permute.xlu0 %v11345_v28 }
 0xd6a   : > { %6568 = vperm.xlu1 %11087, %v12822_v48   ;;  %6589 = vperm.xlu0 %11089, %v12810_v46  }
 0xd6e   : > { %6573 = vperm.xlu1 %11087, %v12829_v49   ;;  %11092 = vset.pattern.permute.xlu0 %v11346_v4 }
 0xd6f   : > { %6613 = vperm.xlu0 %11092, %v12815_v47  }
 0xd72   : > { %11090 = vset.pattern.permute.xlu1 %v11345_v28 }
 0xd73   : > { %6593 = vperm.xlu1 %11090, %v12815_v47   ;;  %6617 = vperm.xlu0 %11092, %v12822_v48  }
 0xd77   : > { %11091 = vset.pattern.permute.xlu1 %v11346_v4  ;;  %11095 = vset.pattern.permute.xlu0 %v11308_v26 }
 0xd78   : > { %6609 = vperm.xlu1 %11091, %v12810_v46  }
 0xd7c   : > { %11093 = vset.pattern.permute.xlu1 %v11345_v28 }
 0xd7d   : > { %6597 = vperm.xlu1 %11093, %v12822_v48  }
 0xd81   : > { %6601 = vperm.xlu1 %11093, %v12829_v49  }
 0xd85   : > { %11094 = vset.pattern.permute.xlu1 %v11346_v4 }
 0xd86   : > { %6621 = vperm.xlu1 %11094, %v12829_v49  }
 0xd8a   : > { %11096 = vset.pattern.permute.xlu1 %v11308_v26 }
 0xdbf   : > { %v11029_v9 = vpop.permute.xlu0 %11028 }
 0xdc0   : > { %v11031_v54 = vunpack.i.h.bf16 %v11029_v9  ;;  %v11030_v11 = vunpack.i.l.bf16 %v11029_v9  ;;  %v11034_v5 = vpop.permute.xlu1 %11033 }
 0xdc1   : > { %v11036_v55 = vunpack.i.h.bf16 %v11034_v5  ;;  %v11035_v56 = vunpack.i.l.bf16 %v11034_v5 }
 0xdc2   : > { %v6172_v12 = vsel %vm527_vm1, %v11030_v11, %v11031_v54  ;;  %v8475_v54 = vld [vmem:[%s13243_s3 + $0x4d0] sm:$0xff] }
 0xdc3   : > { %v11039_v57 = vpop.permute.xlu0 %11038  ;;  %v6171_v58 = vsel %vm527_vm1, %v11035_v56, %v11036_v55  ;;  %v8476_v56 = vld [vmem:[%s13243_s3 + $0x4d8] sm:$0xff] }
 0xdc4   : > { %v11041_v59 = vunpack.i.h.bf16 %v11039_v57  ;;  %v11040_v24 = vunpack.i.l.bf16 %v11039_v57  ;;  %v11044_v41 = vpop.permute.xlu1 %11043  ;;  %v9957_v23 = vpack.c.bf16 %v6172_v12, %v6171_v58  ;;  %v8481_v58 = vld [vmem:[%s13243_s3 + $0x4e0] sm:$0xff] }
 0xdc5   : > { %v11046_v63 = vunpack.i.h.bf16 %v11044_v41  ;;  %v11045_v30 = vunpack.i.l.bf16 %v11044_v41  ;;  %v8484_v41 = vld [vmem:[%s13243_s3 + $0x4f8] sm:$0xff] }
 0xdc6   : > { %9958 = vmatprep.subr.bf16.mxu1 %v9957_v23  ;;  %v6174_v52 = vsel %vm527_vm1, %v11040_v24, %v11041_v59  ;;  %v8482_v59 = vld [vmem:[%s13243_s3 + $0x4e8] sm:$0xff]  ;;  %v8483_v24 = vld [vmem:[%s13243_s3 + $0x4f0] sm:$0xff] }
 0xdc7   : > { %v11054_v6 = vpop.permute.xlu0 %11053  ;;  %9960 = vmatpush3.bf16.msra.mxu1 %v9957_v23  ;;  %v6173_v32 = vsel %vm527_vm1, %v11045_v30, %v11046_v63  ;;  %v6644_v23 = vld [vmem:[%s13245_s5] sm:$0xff]  ;;  %v6649_v30 = vld [vmem:[%s13246_s6 + $0x8] sm:$0xff] }
 0xdc8   : > { %v11056_v0 = vunpack.i.h.bf16 %v11054_v6  ;;  %v11055_v53 = vunpack.i.l.bf16 %v11054_v6  ;;  %v11049_v1 = vpop.permute.xlu1 %11048  ;;  %v9961_v27 = vpack.c.bf16 %v6174_v52, %v6173_v32  ;;  %9532 = vmatprep.mubr.msk.f32.mxu0 %vm405_vm0, %v6644_v23  ;;  %v6648_v63 = vld [vmem:[%s13246_s6] sm:$0xff]  ;;  %6659 = vperm.xlu1 %11096, %v6649_v30   ;;  %v6651_v52 = vld [vmem:[%s13246_s6 + $0x18] sm:$0xff]  ;;  %v6650_v6 = vld [vmem:[%s13246_s6 + $0x10] sm:$0xff] }
 0xdc9   : > { %v11051_v50 = vunpack.i.h.bf16 %v11049_v1  ;;  %v11050_v44 = vunpack.i.l.bf16 %v11049_v1  ;;  %6654 = vperm.xlu0 %11095, %v6648_v63   ;;  %v11235_v23 = vld [vmem:[%s11468_s14 + $0x8] sm:$0xff] }
 0xdca   : > { %9962 = vmatprep.subr.bf16.mxu1 %v9961_v27  ;;  %v6314_v3 = vsel %vm670_vm2, %v11055_v53, %v11056_v0 }
 0xdcb   : > { %v11059_v13 = vpop.permute.xlu0 %11058  ;;  %9964 = vmatpush3.bf16.msra.mxu1 %v9961_v27  ;;  %v6313_v15 = vsel %vm670_vm2, %v11050_v44, %v11051_v50 }
 0xdcc   : > { %v11061_v16 = vunpack.i.h.bf16 %v11059_v13  ;;  %v11060_v17 = vunpack.i.l.bf16 %v11059_v13  ;;  %v11064_v18 = vpop.permute.xlu1 %11063  ;;  %v9965_v19 = vpack.c.bf16 %v6314_v3, %v6313_v15  ;;  %6664 = vperm.xlu1 %11096, %v6650_v6  }
 0xdcd   : > { %v11066_v61 = vunpack.i.h.bf16 %v11064_v18  ;;  %v11065_v20 = vunpack.i.l.bf16 %v11064_v18  ;;  %6669 = vperm.xlu0 %11095, %v6651_v52   ;;  %v11236_v52 = vld [vmem:[%s11468_s14] sm:$0xff] }
 0xdce   : > { %9491 = vmatmul.mubr.msk.f32.vlgmr.msra.gmra.mrb[16].mxu1 %vm405_vm0, %v8458_v29  ;;  %9966 = vmatprep.subr.bf16.mxu1 %v9965_v19  ;;  %v6316_v21 = vsel %vm670_vm2, %v11060_v17, %v11061_v16 }
 0xdcf   : > { %v11074_v22 = vpop.permute.xlu0 %11073  ;;  %9968 = vmatpush3.bf16.msra.mxu1 %v9965_v19  ;;  %9493 = vmatprep.mubr.msk.f32.mxu1 %vm405_vm0, %v8459_v51  ;;  %v6315_v7 = vsel %vm670_vm2, %v11065_v20, %v11066_v61 }
 0xdd0   : > { %v11076_v31 = vunpack.i.h.bf16 %v11074_v22  ;;  %v11075_v33 = vunpack.i.l.bf16 %v11074_v22  ;;  %v11069_v34 = vpop.permute.xlu1 %11068  ;;  %v9969_v35 = vpack.c.bf16 %v6316_v21, %v6315_v7 }
 0xdd1   : > { %v11071_v37 = vunpack.i.h.bf16 %v11069_v34  ;;  %v11070_v38 = vunpack.i.l.bf16 %v11069_v34 }
 0xdd2   : > { %9494 = vmatmul.mubr.msk.f32.gmra.mrb[18].mxu1 %vm405_vm0, %v8460_v2  ;;  %9970 = vmatprep.subr.bf16.mxu1 %v9969_v35  ;;  %v6444_v39 = vsel %vm801_vm3, %v11075_v33, %v11076_v31 }
 0xdd3   : > { %v11084_v40 = vpop.permute.xlu0 %11083  ;;  %9972 = vmatpush3.bf16.msra.mxu1 %v9969_v35  ;;  %9504 = vmatprep.mubr.msk.f32.mxu1 %vm405_vm0, %v8473_v36  ;;  %v6443_v43 = vsel %vm801_vm3, %v11070_v38, %v11071_v37 }
 0xdd4   : > { %v11086_v45 = vunpack.i.h.bf16 %v11084_v40  ;;  %v11085_v28 = vunpack.i.l.bf16 %v11084_v40  ;;  %v11079_v4 = vpop.permute.xlu1 %11078  ;;  %v9973_v9 = vpack.c.bf16 %v6444_v39, %v6443_v43 }
 0xdd5   : > { %v11081_v11 = vunpack.i.h.bf16 %v11079_v4  ;;  %v11080_v5 = vunpack.i.l.bf16 %v11079_v4 }
 0xdd6   : > { %9505 = vmatmul.mubr.msk.f32.vlgmr.msra.gmra.mrb[16].mxu1 %vm405_vm0, %v8474_v42  ;;  %9974 = vmatprep.subr.bf16.mxu1 %v9973_v9  ;;  %v6446_v55 = vsel %vm801_vm3, %v11085_v28, %v11086_v45 }
 0xdd7   : > { %9976 = vmatpush3.bf16.msra.mxu1 %v9973_v9  ;;  %9507 = vmatprep.mubr.msk.f32.mxu1 %vm405_vm0, %v8475_v54  ;;  %v6445_v12 = vsel %vm801_vm3, %v11080_v5, %v11081_v11 }
 0xdd8   : > { %v9977_v57 = vpack.c.bf16 %v6446_v55, %v6445_v12 }
 0xdda   : > { %9508 = vmatmul.mubr.msk.f32.gmra.mrb[18].mxu1 %vm405_vm0, %v8476_v56  ;;  %9978 = vmatprep.subr.bf16.mxu1 %v9977_v57 }
 0xddb   : > { %9980 = vmatpush3.bf16.msra.mxu1 %v9977_v57  ;;  %9518 = vmatprep.mubr.msk.f32.mxu1 %vm405_vm0, %v8481_v58  ;;  %v8497_v57 = vld [vmem:[%s13243_s3 + $0x520] sm:$0xff] }
 0xdde   : > { %9519 = vmatmul.mubr.msk.f32.vlgmr.msra.gmra.mrb[16].mxu1 %vm405_vm0, %v8482_v59 }
 0xddf   : > { %9521 = vmatprep.mubr.msk.f32.mxu1 %vm405_vm0, %v8483_v24 }
 0xde2   : > { %9522 = vmatmul.mubr.msk.f32.gmra.mrb[18].mxu1 %vm405_vm0, %v8484_v41 }
 0xde3   : > { %9546 = vmatprep.mubr.msk.f32.mxu1 %vm405_vm0, %v8497_v57 }
 0xde4   : > { %v6564_v50 = vpop.permute.xlu0 %6563 }
 0xde5   : > { %v6559_v32 = vpop.permute.xlu1 %6558 }
 0xde9   : > { %v6569_v0 = vpop.permute.xlu1 %6568  ;;  %v6590_v3 = vpop.permute.xlu0 %6589 }
 0xded   : > { %v6574_v53 = vpop.permute.xlu1 %6573 }
 0xdee   : > { %v6614_v2 = vpop.permute.xlu0 %6613 }
 0xdf2   : > { %v6594_v1 = vpop.permute.xlu1 %6593  ;;  %v6618_v4 = vpop.permute.xlu0 %6617 }
 0xdf7   : > { %v6610_v27 = vpop.permute.xlu1 %6609 }
 0xdfc   : > { %v6598_v44 = vpop.permute.xlu1 %6597 }
 0xe00   : > { %v6602_v61 = vpop.permute.xlu1 %6601 }
 0xe05   : > { %v6622_v39 = vpop.permute.xlu1 %6621 }
 0xe47   : > { %v6660_v12 = vpop.permute.xlu1 %6659 }
 0xeb1   : > { %v9520_v13 = vpop.f32.mrb[16].mxu1 }
 0xeb2   : > { %v6577_v29 = vadd.f32 %v9520_v13, %v6564_v50  ;;  %v6529_v15 = vpop.f32.mrb[17].mxu1  ;;  %v11237_v13 = vld [vmem:[%s11468_s14 + $0x18] sm:$0xff] }
 0xeb3   : > { %v6576_v16 = vadd.f32 %v6559_v32, %v6529_v15  ;;  %v11238_v15 = vld [vmem:[%s11468_s14 + $0x10] sm:$0xff] }
 0xeb4   : > { %v6581_v17 = vmax.f32 %v6577_v29, 0.0 }
 0xeb5   : > { %v6580_v18 = vmax.f32 %v6576_v16, 0.0  ;;  %v9523_v19 = vpop.f32.mrb[18].mxu1 }
 0xeb6   : > { %v6585_v51 = vsel %vm11628_vm5, %v6581_v17, 0.0  ;;  %v6579_v20 = vadd.f32 %v9523_v19, %v6574_v53  ;;  %v6539_v21 = vpop.f32.mrb[19].mxu1 }
 0xeb7   : > { %v6584_v22 = vsel %vm11628_vm5, %v6580_v18, 0.0  ;;  %v6605_v7 = vmul.f32 %v6594_v1, %v6585_v51  ;;  %v6578_v31 = vadd.f32 %v6569_v0, %v6539_v21  ;;  %v6665_v0 = vpop.permute.xlu1 %6664  ;;  %v8499_v21 = vld [vmem:[%s13243_s3 + $0x530] sm:$0xff] }
 0xeb8   : > { %v6604_v33 = vmul.f32 %v6590_v3, %v6584_v22  ;;  %v6583_v34 = vmax.f32 %v6579_v20, 0.0 }
 0xeb9   : > { %v6625_v35 = vadd.f32 %v6614_v2, %v6605_v7  ;;  %v6582_v36 = vmax.f32 %v6578_v31, 0.0  ;;  %v8500_v2 = vld [vmem:[%s13243_s3 + $0x538] sm:$0xff]  ;;  %v8493_v31 = vld [vmem:[%s13243_s3 + $0x500] sm:$0xff] }
 0xeba   : > { %v6624_v37 = vadd.f32 %v6610_v27, %v6604_v33  ;;  %v6587_v38 = vsel %vm11628_vm5, %v6583_v34, 0.0  ;;  %v11347_v33 = vmov 30   ;;  %v11348_v34 = vmov 31  }
 0xebb   : > { %v6633_v40 = vadd.f32 %v6625_v35, %v12630_v25  ;;  %v6586_v42 = vsel %vm11628_vm5, %v6582_v36, 0.0  ;;  %v6607_v43 = vmul.f32 %v6602_v61, %v6587_v38  ;;  %v6645_v25 = vld [vmem:[%s13245_s5 + $0x8] sm:$0xff]  ;;  %11157 = vset.pattern.permute.xlu1 %v11347_v33  ;;  %11158 = vset.pattern.permute.xlu0 %v11347_v33  ;;  %v11349_v35 = vmov 32   ;;  %v8511_v33 = vld [vmem:[%s13243_s3 + $0x550] sm:$0xff] }
 0xebc   : > { %v6606_v45 = vmul.f32 %v6598_v44, %v6586_v42  ;;  %v6632_v28 = vadd.f32 %v6624_v37, %v12635_v14  ;;  %v6646_v14 = vld [vmem:[%s13245_s5 + $0x10] sm:$0xff]  ;;  %v8498_v61 = vld [vmem:[%s13243_s3 + $0x528] sm:$0xff] }
 0xebd   : > { %v6627_v9 = vadd.f32 %v6622_v39, %v6607_v43 }
 0xebe   : > { %v6626_v54 = vadd.f32 %v6618_v4, %v6606_v45  ;;  %v9981_v11 = vpack.c.bf16 %v6633_v40, %v6632_v28 }
 0xebf   : > { %v6635_v5 = vadd.f32 %v6627_v9, %v12644_v8  ;;  %v6647_v8 = vld [vmem:[%s13245_s5 + $0x18] sm:$0xff] }
 0xec0   : > { %v6634_v55 = vadd.f32 %v6626_v54, %v12648_v62  ;;  %9982 = vmatprep.subr.bf16.mxu0 %v9981_v11  ;;  %v6655_v62 = vpop.permute.xlu0 %6654 }
 0xec1   : > { %9984 = vmatpush3.bf16.msra.mxu0 %v9981_v11 }
 0xec2   : > { %v9985_v56 = vpack.c.bf16 %v6635_v5, %v6634_v55 }
 0xec4   : > { %9986 = vmatprep.subr.bf16.mxu0 %v9985_v56  ;;  %v6670_v30 = vpop.permute.xlu0 %6669 }
 0xec5   : > { %9988 = vmatpush3.bf16.msra.mxu0 %v9985_v56 }
 0xec8   : > { %9533 = vmatmul.mubr.msk.f32.vlgmr.msra.gmra.mrb[20].mxu0 %vm405_vm0, %v6645_v25 }
 0xec9   : > { %9535 = vmatprep.mubr.msk.f32.mxu0 %vm405_vm0, %v6646_v14 }
 0xecc   : > { %9536 = vmatmul.mubr.msk.f32.gmra.mrb[22].mxu0 %vm405_vm0, %v6647_v8 }
 0xf9b   : > { %v9534_v58 = vpop.f32.mrb[20].mxu0 }
 0xf9c   : > { %v6756_v59 = vadd.f32 %v9534_v58, %v6660_v12  ;;  %v6750_v24 = vpop.f32.mrb[21].mxu0 }
 0xf9d   : > { %v6751_v41 = vadd.f32 %v6750_v24, %v6655_v62 }
 0xf9e   : > { %v6770_v63 = vadd.f32 %v11235_v23, %v6756_v59  ;;  %v8494_v23 = vld [vmem:[%s13243_s3 + $0x508] sm:$0xff] }
 0xf9f   : > { %v6769_v6 = vadd.f32 %v11236_v52, %v6751_v41  ;;  %v9537_v32 = vpop.f32.mrb[22].mxu0 }
 0xfa0   : > { %v6766_v53 = vadd.f32 %v9537_v32, %v6670_v30  ;;  %v6760_v1 = vpop.f32.mrb[23].mxu0  ;;  %v11097_v27 = vpack.i.bf16 %v6770_v63, %v11304_v10  ;;  %v11122_v51 = vpack.i.bf16 %v11304_v10, %v6770_v63 }
 0xfa1   : > { %v6761_v50 = vadd.f32 %v6760_v1, %v6665_v0  ;;  %v11102_v44 = vpack.i.bf16 %v6769_v6, %v11304_v10  ;;  %v9989_v3 = vpack.c.bf16 %v6770_v63, %v6769_v6  ;;  %v11117_v20 = vpack.i.bf16 %v11304_v10, %v6769_v6  ;;  %v8495_v0 = vld [vmem:[%s13243_s3 + $0x510] sm:$0xff] }
 0xfa2   : > { %v6772_v29 = vadd.f32 %v11237_v13, %v6766_v53  ;;  %11098 = vrot.lane.b32.xlu0 %v11097_v27, %s13292_s25 }
 0xfa3   : > { %v6771_v16 = vadd.f32 %v11238_v15, %v6761_v50  ;;  %11103 = vrot.lane.b32.xlu1 %v11102_v44, %s13292_s25  ;;  %9990 = vmatprep.subr.bf16.mxu1 %v9989_v3  ;;  %v8496_v44 = vld [vmem:[%s13243_s3 + $0x518] sm:$0xff] }
 0xfa4   : > { %9992 = vmatpush3.bf16.msra.mxu1 %v9989_v3  ;;  %v11107_v17 = vpack.i.bf16 %v6772_v29, %v11304_v10  ;;  %v11127_v22 = vpack.i.bf16 %v11304_v10, %v6772_v29 }
 0xfa5   : > { %v11112_v18 = vpack.i.bf16 %v6771_v16, %v11304_v10  ;;  %v9993_v19 = vpack.c.bf16 %v6772_v29, %v6771_v16  ;;  %v11132_v7 = vpack.i.bf16 %v11304_v10, %v6771_v16 }
 0xfa6   : > { %11108 = vrot.lane.b32.xlu0 %v11107_v17, %s13292_s25  ;;  %v8509_v17 = vld [vmem:[%s13243_s3 + $0x540] sm:$0xff] }
 0xfa7   : > { %11113 = vrot.lane.b32.xlu1 %v11112_v18, %s13292_s25  ;;  %9994 = vmatprep.subr.bf16.mxu1 %v9993_v19 }
 0xfa8   : > { %9996 = vmatpush3.bf16.msra.mxu1 %v9993_v19 }
 0xfaa   : > { %11123 = vrot.lane.b32.xlu0 %v11122_v51, %s13281_s21 }
 0xfab   : > { %11118 = vrot.lane.b32.xlu1 %v11117_v20, %s13281_s21  ;;  %9547 = vmatmul.mubr.msk.f32.vlgmr.msra.gmra.mrb[20].mxu1 %vm405_vm0, %v8498_v61 }
 0xfac   : > { %9549 = vmatprep.mubr.msk.f32.mxu1 %vm405_vm0, %v8499_v21 }
 0xfae   : > { %11128 = vrot.lane.b32.xlu0 %v11127_v22, %s13281_s21 }
 0xfaf   : > { %11133 = vrot.lane.b32.xlu1 %v11132_v7, %s13281_s21  ;;  %9550 = vmatmul.mubr.msk.f32.gmra.mrb[22].mxu1 %vm405_vm0, %v8500_v2 }
 0xfb0   : > { %9560 = vmatprep.mubr.msk.f32.mxu1 %vm405_vm0, %v8493_v31 }
 0xfb2   : > { %11143 = vrot.lane.b32.xlu0 %v11122_v51, %s13278_s26 }
 0xfb3   : > { %11138 = vrot.lane.b32.xlu1 %v11117_v20, %s13278_s26  ;;  %v8510_v20 = vld [vmem:[%s13243_s3 + $0x548] sm:$0xff] }
 0xfb6   : > { %11153 = vrot.lane.b32.xlu0 %v11127_v22, %s13278_s26 }
 0xfb7   : > { %11148 = vrot.lane.b32.xlu1 %v11132_v7, %s13278_s26 }
 0xfba   : > { %7308 = vperm.xlu0 %11158, %v12815_v47  }
 0xfbb   : > { %7303 = vperm.xlu1 %11157, %v12810_v46  }
 0xfbe   : > { %11159 = vset.pattern.permute.xlu0 %v11348_v34 }
 0xfbf   : > { %7313 = vperm.xlu1 %11157, %v12822_v48   ;;  %7334 = vperm.xlu0 %11159, %v12810_v46  }
 0xfc3   : > { %7318 = vperm.xlu1 %11157, %v12829_v49   ;;  %11162 = vset.pattern.permute.xlu0 %v11349_v35 }
 0xfc4   : > { %7358 = vperm.xlu0 %11162, %v12815_v47  }
 0xfc7   : > { %11160 = vset.pattern.permute.xlu1 %v11348_v34 }
 0xfc8   : > { %7338 = vperm.xlu1 %11160, %v12815_v47   ;;  %7362 = vperm.xlu0 %11162, %v12822_v48  }
 0xfcc   : > { %11161 = vset.pattern.permute.xlu1 %v11349_v35 }
 0xfcd   : > { %7354 = vperm.xlu1 %11161, %v12810_v46  }
 0xfd1   : > { %11163 = vset.pattern.permute.xlu1 %v11348_v34 }
 0xfd2   : > { %7342 = vperm.xlu1 %11163, %v12822_v48  }
 0xfd6   : > { %7346 = vperm.xlu1 %11163, %v12829_v49  }
 0xfda   : > { %11164 = vset.pattern.permute.xlu1 %v11349_v35 }
 0xfdb   : > { %7366 = vperm.xlu1 %11164, %v12829_v49  }
0x1014   : > { %v11099_v36 = vpop.permute.xlu0 %11098 }
0x1015   : > { %v11101_v37 = vunpack.i.h.bf16 %v11099_v36  ;;  %v11100_v38 = vunpack.i.l.bf16 %v11099_v36  ;;  %v11104_v39 = vpop.permute.xlu1 %11103 }
0x1016   : > { %v11106_v40 = vunpack.i.h.bf16 %v11104_v39  ;;  %v11105_v42 = vunpack.i.l.bf16 %v11104_v39 }
0x1017   : > { %v6917_v43 = vsel %vm527_vm1, %v11100_v38, %v11101_v37  ;;  %v8512_v37 = vld [vmem:[%s13243_s3 + $0x558] sm:$0xff] }
0x1018   : > { %v11109_v45 = vpop.permute.xlu0 %11108  ;;  %v6916_v28 = vsel %vm527_vm1, %v11105_v42, %v11106_v40  ;;  %v8517_v40 = vld [vmem:[%s13243_s3 + $0x560] sm:$0xff]  ;;  %v8518_v42 = vld [vmem:[%s13243_s3 + $0x568] sm:$0xff] }
0x1019   : > { %v11111_v4 = vunpack.i.h.bf16 %v11109_v45  ;;  %v11110_v9 = vunpack.i.l.bf16 %v11109_v45  ;;  %v11114_v54 = vpop.permute.xlu1 %11113  ;;  %v9997_v11 = vpack.c.bf16 %v6917_v43, %v6916_v28  ;;  %v8519_v43 = vld [vmem:[%s13243_s3 + $0x570] sm:$0xff]  ;;  %v8520_v45 = vld [vmem:[%s13243_s3 + $0x578] sm:$0xff] }
0x101a   : > { %v11116_v5 = vunpack.i.h.bf16 %v11114_v54  ;;  %v11115_v55 = vunpack.i.l.bf16 %v11114_v54 }
0x101b   : > { %9998 = vmatprep.subr.bf16.mxu1 %v9997_v11  ;;  %v6919_v56 = vsel %vm527_vm1, %v11110_v9, %v11111_v4 }
0x101c   : > { %v11124_v25 = vpop.permute.xlu0 %11123  ;;  %10000 = vmatpush3.bf16.msra.mxu1 %v9997_v11  ;;  %v6918_v14 = vsel %vm527_vm1, %v11115_v55, %v11116_v5 }
0x101d   : > { %v11126_v8 = vunpack.i.h.bf16 %v11124_v25  ;;  %v11125_v62 = vunpack.i.l.bf16 %v11124_v25  ;;  %v11119_v12 = vpop.permute.xlu1 %11118  ;;  %v10001_v57 = vpack.c.bf16 %v6919_v56, %v6918_v14 }
0x101e   : > { %v11121_v58 = vunpack.i.h.bf16 %v11119_v12  ;;  %v11120_v59 = vunpack.i.l.bf16 %v11119_v12 }
0x101f   : > { %10002 = vmatprep.subr.bf16.mxu1 %v10001_v57  ;;  %v7059_v24 = vsel %vm670_vm2, %v11125_v62, %v11126_v8 }
0x1020   : > { %v11129_v41 = vpop.permute.xlu0 %11128  ;;  %10004 = vmatpush3.bf16.msra.mxu1 %v10001_v57  ;;  %v7058_v63 = vsel %vm670_vm2, %v11120_v59, %v11121_v58  ;;  %v8529_v59 = vld [vmem:[%s13243_s3 + $0x5a0] sm:$0xff] }
0x1021   : > { %v11131_v30 = vunpack.i.h.bf16 %v11129_v41  ;;  %v11130_v52 = vunpack.i.l.bf16 %v11129_v41  ;;  %v11134_v6 = vpop.permute.xlu1 %11133  ;;  %v10005_v32 = vpack.c.bf16 %v7059_v24, %v7058_v63  ;;  %9602 = vmatprep.mubr.msk.f32.mxu0 %vm405_vm0, %v8529_v59 }
0x1022   : > { %v11136_v53 = vunpack.i.h.bf16 %v11134_v6  ;;  %v11135_v1 = vunpack.i.l.bf16 %v11134_v6 }
0x1023   : > { %9561 = vmatmul.mubr.msk.f32.vlgmr.msra.gmra.mrb[20].mxu1 %vm405_vm0, %v8494_v23  ;;  %10006 = vmatprep.subr.bf16.mxu1 %v10005_v32  ;;  %v7061_v27 = vsel %vm670_vm2, %v11130_v52, %v11131_v30 }
0x1024   : > { %v11144_v50 = vpop.permute.xlu0 %11143  ;;  %10008 = vmatpush3.bf16.msra.mxu1 %v10005_v32  ;;  %9563 = vmatprep.mubr.msk.f32.mxu1 %vm405_vm0, %v8495_v0  ;;  %v7060_v3 = vsel %vm670_vm2, %v11135_v1, %v11136_v53 }
0x1025   : > { %v11146_v13 = vunpack.i.h.bf16 %v11144_v50  ;;  %v11145_v29 = vunpack.i.l.bf16 %v11144_v50  ;;  %v11139_v15 = vpop.permute.xlu1 %11138  ;;  %v10009_v16 = vpack.c.bf16 %v7061_v27, %v7060_v3 }
0x1026   : > { %v11141_v18 = vunpack.i.h.bf16 %v11139_v15  ;;  %v11140_v19 = vunpack.i.l.bf16 %v11139_v15 }
0x1027   : > { %9564 = vmatmul.mubr.msk.f32.gmra.mrb[22].mxu1 %vm405_vm0, %v8496_v44  ;;  %10010 = vmatprep.subr.bf16.mxu1 %v10009_v16  ;;  %v7189_v51 = vsel %vm801_vm3, %v11145_v29, %v11146_v13 }
0x1028   : > { %v11154_v61 = vpop.permute.xlu0 %11153  ;;  %10012 = vmatpush3.bf16.msra.mxu1 %v10009_v16  ;;  %9574 = vmatprep.mubr.msk.f32.mxu1 %vm405_vm0, %v8509_v17  ;;  %v7188_v21 = vsel %vm801_vm3, %v11140_v19, %v11141_v18 }
0x1029   : > { %v11156_v22 = vunpack.i.h.bf16 %v11154_v61  ;;  %v11155_v2 = vunpack.i.l.bf16 %v11154_v61  ;;  %v11149_v7 = vpop.permute.xlu1 %11148  ;;  %v10013_v31 = vpack.c.bf16 %v7189_v51, %v7188_v21 }
0x102a   : > { %v11151_v34 = vunpack.i.h.bf16 %v11149_v7  ;;  %v11150_v35 = vunpack.i.l.bf16 %v11149_v7  ;;  %v8530_v7 = vld [vmem:[%s13243_s3 + $0x5a8] sm:$0xff] }
0x102b   : > { %9575 = vmatmul.mubr.msk.f32.vlgmr.msra.gmra.mrb[20].mxu1 %vm405_vm0, %v8510_v20  ;;  %10014 = vmatprep.subr.bf16.mxu1 %v10013_v31  ;;  %v7191_v36 = vsel %vm801_vm3, %v11155_v2, %v11156_v22 }
0x102c   : > { %10016 = vmatpush3.bf16.msra.mxu1 %v10013_v31  ;;  %9577 = vmatprep.mubr.msk.f32.mxu1 %vm405_vm0, %v8511_v33  ;;  %v7190_v38 = vsel %vm801_vm3, %v11150_v35, %v11151_v34  ;;  %v8531_v33 = vld [vmem:[%s13243_s3 + $0x5b0] sm:$0xff]  ;;  %v8532_v35 = vld [vmem:[%s13243_s3 + $0x5b8] sm:$0xff] }
0x102d   : > { %v10017_v39 = vpack.c.bf16 %v7191_v36, %v7190_v38  ;;  %v11351_v38 = vmov 34  }
0x102f   : > { %9578 = vmatmul.mubr.msk.f32.gmra.mrb[22].mxu1 %vm405_vm0, %v8512_v37  ;;  %10018 = vmatprep.subr.bf16.mxu1 %v10017_v39  ;;  %v8525_v37 = vld [vmem:[%s13243_s3 + $0x580] sm:$0xff] }
0x1030   : > { %10020 = vmatpush3.bf16.msra.mxu1 %v10017_v39  ;;  %9588 = vmatprep.mubr.msk.f32.mxu1 %vm405_vm0, %v8517_v40  ;;  %v11352_v39 = vmov 35  }
0x1033   : > { %9589 = vmatmul.mubr.msk.f32.vlgmr.msra.gmra.mrb[20].mxu1 %vm405_vm0, %v8518_v42 }
0x1034   : > { %9591 = vmatprep.mubr.msk.f32.mxu1 %vm405_vm0, %v8519_v43 }
0x1037   : > { %9592 = vmatmul.mubr.msk.f32.gmra.mrb[22].mxu1 %vm405_vm0, %v8520_v45 }
0x1039   : > { %v7309_v5 = vpop.permute.xlu0 %7308 }
0x103a   : > { %v7304_v28 = vpop.permute.xlu1 %7303 }
0x103e   : > { %v7314_v4 = vpop.permute.xlu1 %7313  ;;  %v7335_v56 = vpop.permute.xlu0 %7334 }
0x1042   : > { %v7319_v9 = vpop.permute.xlu1 %7318 }
0x1043   : > { %v7359_v52 = vpop.permute.xlu0 %7358 }
0x1047   : > { %v7339_v54 = vpop.permute.xlu1 %7338  ;;  %v7363_v19 = vpop.permute.xlu0 %7362 }
0x104c   : > { %v7355_v11 = vpop.permute.xlu1 %7354 }
0x1051   : > { %v7343_v55 = vpop.permute.xlu1 %7342 }
0x1055   : > { %v7347_v41 = vpop.permute.xlu1 %7346 }
0x105a   : > { %v7367_v3 = vpop.permute.xlu1 %7366 }
0x1106   : > { %v9590_v25 = vpop.f32.mrb[20].mxu1 }
0x1107   : > { %v7322_v14 = vadd.f32 %v9590_v25, %v7309_v5  ;;  %v7274_v8 = vpop.f32.mrb[21].mxu1 }
0x1108   : > { %v7321_v62 = vadd.f32 %v7304_v28, %v7274_v8 }
0x1109   : > { %v7326_v12 = vmax.f32 %v7322_v14, 0.0 }
0x110a   : > { %v7325_v57 = vmax.f32 %v7321_v62, 0.0  ;;  %v9593_v58 = vpop.f32.mrb[22].mxu1 }
0x110b   : > { %v7330_v24 = vsel %vm11628_vm5, %v7326_v12, 0.0  ;;  %v7324_v23 = vadd.f32 %v9593_v58, %v7319_v9  ;;  %v7284_v63 = vpop.f32.mrb[23].mxu1 }
0x110c   : > { %v7329_v30 = vsel %vm11628_vm5, %v7325_v57, 0.0  ;;  %v7350_v6 = vmul.f32 %v7339_v54, %v7330_v24  ;;  %v7323_v32 = vadd.f32 %v7314_v4, %v7284_v63 }
0x110d   : > { %v7349_v0 = vmul.f32 %v7335_v56, %v7329_v30  ;;  %v7328_v53 = vmax.f32 %v7324_v23, 0.0 }
0x110e   : > { %v7370_v1 = vadd.f32 %v7359_v52, %v7350_v6  ;;  %v7327_v27 = vmax.f32 %v7323_v32, 0.0  ;;  %v8527_v32 = vld [vmem:[%s13243_s3 + $0x590] sm:$0xff] }
0x110f   : > { %v7369_v50 = vadd.f32 %v7355_v11, %v7349_v0  ;;  %v7332_v44 = vsel %vm11628_vm5, %v7328_v53, 0.0 }
0x1110   : > { %v7331_v13 = vsel %vm11628_vm5, %v7327_v27, 0.0  ;;  %v7352_v29 = vmul.f32 %v7347_v41, %v7332_v44  ;;  %v11165_v15 = vpack.i.bf16 %v7370_v1, %v11304_v10  ;;  %v11190_v2 = vpack.i.bf16 %v11304_v10, %v7370_v1  ;;  %v8526_v41 = vld [vmem:[%s13243_s3 + $0x588] sm:$0xff] }
0x1111   : > { %v7351_v16 = vmul.f32 %v7343_v55, %v7331_v13  ;;  %v11170_v17 = vpack.i.bf16 %v7369_v50, %v11304_v10  ;;  %v10021_v18 = vpack.c.bf16 %v7370_v1, %v7369_v50  ;;  %v11185_v31 = vpack.i.bf16 %v11304_v10, %v7369_v50  ;;  %v8528_v50 = vld [vmem:[%s13243_s3 + $0x598] sm:$0xff] }
0x1112   : > { %v7372_v51 = vadd.f32 %v7367_v3, %v7352_v29  ;;  %11166 = vrot.lane.b32.xlu1 %v11165_v15, %s13292_s25 }
0x1113   : > { %v7371_v61 = vadd.f32 %v7363_v19, %v7351_v16  ;;  %11171 = vrot.lane.b32.xlu0 %v11170_v17, %s13292_s25  ;;  %10022 = vmatprep.subr.bf16.mxu0 %v10021_v18  ;;  %v8541_v16 = vld [vmem:[%s13243_s3 + $0x5c0] sm:$0xff] }
0x1114   : > { %10024 = vmatpush3.bf16.msra.mxu0 %v10021_v18  ;;  %v11175_v20 = vpack.i.bf16 %v7372_v51, %v11304_v10  ;;  %v11195_v34 = vpack.i.bf16 %v11304_v10, %v7372_v51 }
0x1115   : > { %v11180_v21 = vpack.i.bf16 %v7371_v61, %v11304_v10  ;;  %v10025_v22 = vpack.c.bf16 %v7372_v51, %v7371_v61  ;;  %v11200_v36 = vpack.i.bf16 %v11304_v10, %v7371_v61  ;;  %v11350_v10 = vmov 33   ;;  %v8542_v61 = vld [vmem:[%s13243_s3 + $0x5c8] sm:$0xff] }
0x1116   : > { %11176 = vrot.lane.b32.xlu1 %v11175_v20, %s13292_s25  ;;  %11225 = vset.pattern.permute.xlu0 %v11350_v10 }
0x1117   : > { %11181 = vrot.lane.b32.xlu0 %v11180_v21, %s13292_s25  ;;  %10026 = vmatprep.subr.bf16.mxu0 %v10025_v22  ;;  %s13199_s25 = scalar_lea.sflag [#allocation5], %s334_s17 }
0x1118   : > { %10028 = vmatpush3.bf16.msra.mxu0 %v10025_v22  ;;  %11226 = vset.pattern.permute.xlu1 %v11350_v10 }
0x111a   : > { %11191 = vrot.lane.b32.xlu1 %v11190_v2, %s13281_s21 }
0x111b   : > { %11186 = vrot.lane.b32.xlu0 %v11185_v31, %s13281_s21  ;;  %9603 = vmatmul.mubr.msk.f32.vlgmr.msra.gmra.mrb[24].mxu0 %vm405_vm0, %v8530_v7 }
0x111c   : > { %9605 = vmatprep.mubr.msk.f32.mxu0 %vm405_vm0, %v8531_v33 }
0x111e   : > { %11196 = vrot.lane.b32.xlu1 %v11195_v34, %s13281_s21 }
0x111f   : > { %11201 = vrot.lane.b32.xlu0 %v11200_v36, %s13281_s21  ;;  %9606 = vmatmul.mubr.msk.f32.gmra.mrb[26].mxu0 %vm405_vm0, %v8532_v35 }
0x1120   : > { %9616 = vmatprep.mubr.msk.f32.mxu0 %vm405_vm0, %v8525_v37 }
0x1122   : > { %11211 = vrot.lane.b32.xlu1 %v11190_v2, %s13278_s26 }
0x1123   : > { %11206 = vrot.lane.b32.xlu0 %v11185_v31, %s13278_s26  ;;  %v8543_v31 = vld [vmem:[%s13243_s3 + $0x5d0] sm:$0xff] }
0x1126   : > { %11221 = vrot.lane.b32.xlu1 %v11195_v34, %s13278_s26 }
0x1127   : > { %11216 = vrot.lane.b32.xlu0 %v11200_v36, %s13278_s26  ;;  %v8544_v36 = vld [vmem:[%s13243_s3 + $0x5d8] sm:$0xff] }
0x112a   : > { %7908 = vperm.xlu1 %11226, %v12815_v47  }
0x112b   : > { %7903 = vperm.xlu0 %11225, %v12810_v46  }
0x112e   : > { %7913 = vperm.xlu1 %11226, %v12822_v48  }
0x112f   : > { %7918 = vperm.xlu0 %11225, %v12829_v49  }
0x1132   : > { %11227 = vset.pattern.permute.xlu1 %v11351_v38 }
0x1133   : > { %7934 = vperm.xlu1 %11227, %v12810_v46   ;;  %11228 = vset.pattern.permute.xlu0 %v11351_v38 }
0x1134   : > { %7938 = vperm.xlu0 %11228, %v12815_v47  }
0x1137   : > { %11229 = vset.pattern.permute.xlu1 %v11352_v39 }
0x1138   : > { %7954 = vperm.xlu1 %11229, %v12810_v46   ;;  %7942 = vperm.xlu0 %11228, %v12822_v48  }
0x113c   : > { %7958 = vperm.xlu1 %11229, %v12815_v47   ;;  %11231 = vset.pattern.permute.xlu0 %v11352_v39 }
0x113d   : > { %7962 = vperm.xlu0 %11231, %v12822_v48  }
0x1140   : > { %11230 = vset.pattern.permute.xlu1 %v11351_v38  ;;  %v8549_v38 = vld [vmem:[%s13243_s3 + $0x5e0] sm:$0xff] }
0x1141   : > { %7946 = vperm.xlu1 %11230, %v12829_v49   ;;  %11234 = vset.pattern.permute.xlu0 %v11308_v26 }
0x1145   : > { %11232 = vset.pattern.permute.xlu1 %v11352_v39  ;;  %v8550_v39 = vld [vmem:[%s13243_s3 + $0x5e8] sm:$0xff] }
0x1146   : > { %7966 = vperm.xlu1 %11232, %v12829_v49  }
0x114a   : > { %11233 = vset.pattern.permute.xlu1 %v11308_v26 }
0x1184   : > { %v11167_v40 = vpop.permute.xlu1 %11166 }
0x1185   : > { %v11169_v42 = vunpack.i.h.bf16 %v11167_v40  ;;  %v11168_v46 = vunpack.i.l.bf16 %v11167_v40  ;;  %v11172_v43 = vpop.permute.xlu0 %11171  ;;  %v8551_v40 = vld [vmem:[%s13243_s3 + $0x5f0] sm:$0xff] }
0x1186   : > { %v11174_v45 = vunpack.i.h.bf16 %v11172_v43  ;;  %v11173_v28 = vunpack.i.l.bf16 %v11172_v43  ;;  %v7983_v43 = vld [vmem:[%s13248_s8] sm:$0xff] }
0x1187   : > { %v7517_v47 = vsel %vm527_vm1, %v11168_v46, %v11169_v42  ;;  %v8552_v42 = vld [vmem:[%s13243_s3 + $0x5f8] sm:$0xff]  ;;  %v7981_v46 = vld [vmem:[%s13247_s7] sm:$0xff]  ;;  %7987 = vperm.xlu1 %11233, %v7983_v43  }
0x1188   : > { %v11177_v4 = vpop.permute.xlu1 %11176  ;;  %v7516_v48 = vsel %vm527_vm1, %v11173_v28, %v11174_v45  ;;  %9658 = vmatprep.mubr.msk.f32.mxu1 %vm405_vm0, %v7981_v46  ;;  %v7984_v45 = vld [vmem:[%s13248_s8 + $0x8] sm:$0xff] }
0x1189   : > { %v11179_v9 = vunpack.i.h.bf16 %v11177_v4  ;;  %v11178_v54 = vunpack.i.l.bf16 %v11177_v4  ;;  %v11182_v11 = vpop.permute.xlu0 %11181  ;;  %v10029_v5 = vpack.c.bf16 %v7517_v47, %v7516_v48  ;;  %7992 = vperm.xlu0 %11234, %v7984_v45  }
0x118a   : > { %v11184_v55 = vunpack.i.h.bf16 %v11182_v11  ;;  %v11183_v56 = vunpack.i.l.bf16 %v11182_v11 }
0x118b   : > { %10030 = vmatprep.subr.bf16.mxu0 %v10029_v5  ;;  %v7519_v26 = vsel %vm527_vm1, %v11178_v54, %v11179_v9 }
0x118c   : > { %v11192_v49 = vpop.permute.xlu1 %11191  ;;  %10032 = vmatpush3.bf16.msra.mxu0 %v10029_v5  ;;  %v7518_v25 = vsel %vm527_vm1, %v11183_v56, %v11184_v55 }
0x118d   : > { %v11194_v14 = vunpack.i.h.bf16 %v11192_v49  ;;  %v11193_v8 = vunpack.i.l.bf16 %v11192_v49  ;;  %v11187_v62 = vpop.permute.xlu0 %11186  ;;  %v10033_v12 = vpack.c.bf16 %v7519_v26, %v7518_v25 }
0x118e   : > { %v11189_v57 = vunpack.i.h.bf16 %v11187_v62  ;;  %v11188_v58 = vunpack.i.l.bf16 %v11187_v62 }
0x118f   : > { %10034 = vmatprep.subr.bf16.mxu0 %v10033_v12  ;;  %v7659_v59 = vsel %vm670_vm2, %v11193_v8, %v11194_v14 }
0x1190   : > { %v11197_v24 = vpop.permute.xlu1 %11196  ;;  %10036 = vmatpush3.bf16.msra.mxu0 %v10033_v12  ;;  %v7658_v23 = vsel %vm670_vm2, %v11188_v58, %v11189_v57 }
0x1191   : > { %v11199_v63 = vunpack.i.h.bf16 %v11197_v24  ;;  %v11198_v30 = vunpack.i.l.bf16 %v11197_v24  ;;  %v11202_v52 = vpop.permute.xlu0 %11201  ;;  %v10037_v6 = vpack.c.bf16 %v7659_v59, %v7658_v23 }
0x1192   : > { %v11204_v0 = vunpack.i.h.bf16 %v11202_v52  ;;  %v11203_v53 = vunpack.i.l.bf16 %v11202_v52 }
0x1193   : > { %9617 = vmatmul.mubr.msk.f32.vlgmr.msra.gmra.mrb[24].mxu0 %vm405_vm0, %v8526_v41  ;;  %10038 = vmatprep.subr.bf16.mxu0 %v10037_v6  ;;  %v7661_v1 = vsel %vm670_vm2, %v11198_v30, %v11199_v63 }
0x1194   : > { %v11212_v27 = vpop.permute.xlu1 %11211  ;;  %10040 = vmatpush3.bf16.msra.mxu0 %v10037_v6  ;;  %9619 = vmatprep.mubr.msk.f32.mxu0 %vm405_vm0, %v8527_v32  ;;  %v7660_v44 = vsel %vm670_vm2, %v11203_v53, %v11204_v0 }
0x1195   : > { %v11214_v3 = vunpack.i.h.bf16 %v11212_v27  ;;  %v11213_v13 = vunpack.i.l.bf16 %v11212_v27  ;;  %v11207_v29 = vpop.permute.xlu0 %11206  ;;  %v10041_v15 = vpack.c.bf16 %v7661_v1, %v7660_v44 }
0x1196   : > { %v11209_v17 = vunpack.i.h.bf16 %v11207_v29  ;;  %v11208_v18 = vunpack.i.l.bf16 %v11207_v29 }
0x1197   : > { %9620 = vmatmul.mubr.msk.f32.gmra.mrb[26].mxu0 %vm405_vm0, %v8528_v50  ;;  %10042 = vmatprep.subr.bf16.mxu0 %v10041_v15  ;;  %v7789_v19 = vsel %vm801_vm3, %v11213_v13, %v11214_v3 }
0x1198   : > { %v11222_v51 = vpop.permute.xlu1 %11221  ;;  %10044 = vmatpush3.bf16.msra.mxu0 %v10041_v15  ;;  %9630 = vmatprep.mubr.msk.f32.mxu0 %vm405_vm0, %v8541_v16  ;;  %v7788_v20 = vsel %vm801_vm3, %v11208_v18, %v11209_v17  ;;  %v7982_v16 = vld [vmem:[%s13247_s7 + $0x8] sm:$0xff] }
0x1199   : > { %v11224_v21 = vunpack.i.h.bf16 %v11222_v51  ;;  %v11223_v22 = vunpack.i.l.bf16 %v11222_v51  ;;  %v11217_v2 = vpop.permute.xlu0 %11216  ;;  %v10045_v7 = vpack.c.bf16 %v7789_v19, %v7788_v20  ;;  %v11239_v20 = vld [vmem:[%s11463_s27] ss:$0 sm:$0xff]  ;;  %s11353_s27 = smov [#allocation4]  }
0x119a   : > { %v11219_v33 = vunpack.i.h.bf16 %v11217_v2  ;;  %v11218_v34 = vunpack.i.l.bf16 %v11217_v2  ;;  %s11244_s0 = sshll.u32 %s11353_s27, 4  ;;  %s11245_s0 = int_to_ptr.vmem [resolvable:$false] %s11244_s0 }
0x119b   : > { %9631 = vmatmul.mubr.msk.f32.vlgmr.msra.gmra.mrb[24].mxu0 %vm405_vm0, %v8542_v61  ;;  %10046 = vmatprep.subr.bf16.mxu0 %v10045_v7  ;;  %v7791_v35 = vsel %vm801_vm3, %v11223_v22, %v11224_v21  ;;  %s11246_s1 = scalar_lea.vmem %s11245_s0, 512  ;;  %p11247_p0 = scmp.lt.s32.totalorder %s13192_s23, %s11245_s0 }
0x119c   : > { %10048 = vmatpush3.bf16.msra.mxu0 %v10045_v7  ;;  %9633 = vmatprep.mubr.msk.f32.mxu0 %vm405_vm0, %v8543_v31  ;;  %v7790_v37 = vsel %vm801_vm3, %v11218_v34, %v11219_v33  ;;  %p11248_p1 = scmp.lt.s32.totalorder %s11246_s1, %s11240_s13 }
0x119d   : > { %v10049_v10 = vpack.c.bf16 %v7791_v35, %v7790_v37 }
0x119e   : > { %p11249_p2 = por %p11248_p1, %p11247_p0 }
0x119f   : > { %9634 = vmatmul.mubr.msk.f32.gmra.mrb[26].mxu0 %vm405_vm0, %v8544_v36  ;;  %10050 = vmatprep.subr.bf16.mxu0 %v10049_v10 }
0x11a0   : > { %10052 = vmatpush3.bf16.msra.mxu0 %v10049_v10  ;;  %9644 = vmatprep.mubr.msk.f32.mxu0 %vm405_vm0, %v8549_v38  ;;  %p11250_p3 = pnand %p11249_p2, %p11243_p13 }
0x11a3   : > { %9645 = vmatmul.mubr.msk.f32.vlgmr.msra.gmra.mrb[24].mxu0 %vm405_vm0, %v8550_v39 }
0x11a4   : > { %9647 = vmatprep.mubr.msk.f32.mxu0 %vm405_vm0, %v8551_v40 }
0x11a7   : > { %9648 = vmatmul.mubr.msk.f32.gmra.mrb[26].mxu0 %vm405_vm0, %v8552_v42 }
0x11a9   : > { %v7909_v28 = vpop.permute.xlu1 %7908 }
0x11aa   : > { %v7904_v48 = vpop.permute.xlu0 %7903 }
0x11ad   : > { %v7914_v47 = vpop.permute.xlu1 %7913 }
0x11ae   : > { %v7919_v54 = vpop.permute.xlu0 %7918 }
0x11b2   : > { %v7935_v4 = vpop.permute.xlu1 %7934 }
0x11b3   : > { %v7939_v5 = vpop.permute.xlu0 %7938 }
0x11b7   : > { %v7955_v9 = vpop.permute.xlu1 %7954  ;;  %v7943_v41 = vpop.permute.xlu0 %7942 }
0x11bb   : > { %v7959_v11 = vpop.permute.xlu1 %7958 }
0x11bc   : > { %v7963_v50 = vpop.permute.xlu0 %7962 }
0x11c0   : > { %v7947_v14 = vpop.permute.xlu1 %7946 }
0x11c5   : > { %v7967_v0 = vpop.permute.xlu1 %7966 }
0x1206   : > { %v7988_v17 = vpop.permute.xlu1 %7987 }
0x1208   : > { %v7993_v60 = vpop.permute.xlu0 %7992 }
0x1276   : > { %v9646_v55 = vpop.f32.mrb[24].mxu0 }
0x1277   : > { %v7922_v56 = vadd.f32 %v9646_v55, %v7909_v28  ;;  %v7874_v26 = vpop.f32.mrb[25].mxu0 }
0x1278   : > { %v7921_v49 = vadd.f32 %v7904_v48, %v7874_v26 }
0x1279   : > { %v7926_v25 = vmax.f32 %v7922_v56, 0.0 }
0x127a   : > { %v7925_v8 = vmax.f32 %v7921_v49, 0.0  ;;  %v9649_v62 = vpop.f32.mrb[26].mxu0 }
0x127b   : > { %v7930_v12 = vsel %vm11628_vm5, %v7926_v25, 0.0  ;;  %v7924_v57 = vadd.f32 %v9649_v62, %v7919_v54  ;;  %v7884_v58 = vpop.f32.mrb[27].mxu0 }
0x127c   : > { %v7950_v59 = vmul.f32 %v7939_v5, %v7930_v12  ;;  %v7929_v24 = vsel %vm11628_vm5, %v7925_v8, 0.0  ;;  %v7923_v23 = vadd.f32 %v7914_v47, %v7884_v58 }
0x127d   : > { %v7949_v63 = vmul.f32 %v7935_v4, %v7929_v24  ;;  %v7928_v30 = vmax.f32 %v7924_v57, 0.0 }
0x127e   : > { %v7927_v52 = vmax.f32 %v7923_v23, 0.0  ;;  %v7970_v6 = vadd.f32 %v7959_v11, %v7950_v59 }
0x127f   : > { %v7932_v32 = vsel %vm11628_vm5, %v7928_v30, 0.0  ;;  %v7969_v53 = vadd.f32 %v7955_v9, %v7949_v63 }
0x1280   : > { %v7931_v1 = vsel %vm11628_vm5, %v7927_v52, 0.0  ;;  %v7952_v27 = vmul.f32 %v7947_v14, %v7932_v32 }
0x1281   : > { %v7951_v44 = vmul.f32 %v7943_v41, %v7931_v1  ;;  %v10053_v3 = vpack.c.bf16 %v7970_v6, %v7969_v53 }
0x1282   : > { %v7972_v13 = vadd.f32 %v7967_v0, %v7952_v27 }
0x1283   : > { %v7971_v29 = vadd.f32 %v7963_v50, %v7951_v44  ;;  %10054 = vmatprep.subr.bf16.mxu1 %v10053_v3 }
0x1284   : > { %10056 = vmatpush3.bf16.msra.mxu1 %v10053_v3 }
0x1285   : > { %v10057_v15 = vpack.c.bf16 %v7972_v13, %v7971_v29 }
0x1287   : > { %10058 = vmatprep.subr.bf16.mxu1 %v10057_v15 }
0x1288   : > { %10060 = vmatpush3.bf16.msra.mxu1 %v10057_v15 }
0x128b   : > { %9659 = vmatmul.mubr.msk.f32.vlgmr.msra.gmra.mrb[24].mxu1 %vm405_vm0, %v7982_v16 }
0x135e   : > { %v9660_v18 = vpop.f32.mrb[24].mxu1 }
0x135f   : > { %v8073_v19 = vadd.f32 %v9660_v18, %v7993_v60  ;;  %v8067_v51 = vpop.f32.mrb[25].mxu1 }
0x1360   : > { %v8068_v61 = vadd.f32 %v8067_v51, %v7988_v17 }
0x1361   : > { %v8077_v21 = vmul.f32 %v11239_v20, %v8073_v19 }
0x1362   : > { %v8076_v22 = vmul.f32 %v11239_v20, %v8068_v61 }
0x1363   : > { %8079 = vst [vmem:[%s336_s29 + $0x8] sm:$0xff] %v8077_v21 }
0x1364   : > { %8078 = vst [vmem:[%s336_s29] sm:$0xff] %v8076_v22 }
0x1365   : > { %11253 = shalt.err (!%p11250_p3)
}
0x1366   : > { %s11254_s2 = scalar_lea.hbm %s13197_s16, 256  ;;  %s11258_s17 = scalar_lea.hbm %s13249_s9, 512 }
0x1367   : > { %p11255_p4 = scmp.ne.s32.totalorder %s13197_s16, %s11254_s2  ;;  %p11259_p9 = scmp.lt.u32.totalorder %s13197_s16, %s13249_s9 }
0x1368   : > { %p11260_p10 = scmp.lt.u32.totalorder %s11258_s17, %s11254_s2  ;;  %p11262_p12 = scmp.lt.u32.totalorder %s11254_s2, %s13197_s16 }
0x1369   : > { %p11256_p7 = pnand %p11255_p4, %p11444_p5 }
0x136a   : > { %p11261_p11 = por %p11260_p10, %p11259_p9 }
0x136b   : > { %p11257_p8 = pneg %p11256_p7 }
0x136c   : > { %p11263_p13 = por %p11262_p12, %p11261_p11 }
0x136e   : > { %p11264_p0 = pnand %p11263_p13, %p11257_p8 }
0x1370   : > { %11267 = shalt.err (!%p11264_p0)
}
0x1371   : > { %s11354_s28 = smov 128   ;;  %s11355_s22 = smov 8  }
0x1372   : > { %10205 = dma.vmem_to_hbm [thread:$0]  (%p11444_p5), %s13192_s23, 256, %s13197_s16, %s13199_s25, %s11354_s28, %s11354_s28, %s11355_s22  }
0x1373 PF: > { %p10211_p1 = scmp.ge.s32.totalorder %s11302_s12, 2  ;;  %s8109_s14 = sand.u32 1, %s11290_s30  }
0x1374   : > { %s8110_s13 = scalar_lea.sflag [#allocation5], %s8109_s14 }
0x1375   : > { %p10208_p2 = pnand %p10211_p1, %p11448_p6 }
0x1377   : > { %11285 = dma.done.wait (!%p10208_p2), %s8110_s13, 256  }
0x1378   : > { %11287 = vsyncadd (!%p10208_p2), %s8110_s13, 4294967040  ;;  %p19_p3 = scmp.ge.s32.totalorder %s11431_s15, 4   ;;  %s13293_s30 = smov %s11294_s10 }
0x1379   : > { %s13294_s10 = smov %s11298_s11  ;;  %s13295_s11 = smov %s11442_s18 }
0x137a   : > { %s13296_s12 = smov %s11431_s15  ;;  %21 = sbr.rel (!%p19_p3) target bundleno = 7 (0x7), region = 141 }
0x1381   :  { %8115 = vsyncpa [#allocation5], 1 }
0x1382   :  { %8117 = vsyncpa [#allocation5 + $0x1], 1 }

</bundles_post_ra>
